<compile_context>
chip_gen: v5e
topology: v5e:2x2
jax: 0.10.0
libtpu: 0.0.40
codegen_flags: <defaults>
</compile_context>

<pallas_src>
import functools

import jax
import jax.numpy as jnp
from jax import lax
from jax.experimental import pallas as pl
from jax.experimental.pallas import tpu as pltpu


def basic_block_kernel(x_ref, w1_ref, w2_ref, b1_ref, b2_ref, o_ref, acc_ref, *, w_real):
    """Fused conv3x3 -> bias -> ReLU -> conv3x3 -> bias -> +residual -> ReLU (NHWC tile)."""
    H, W, C = o_ref.shape            # W: padded width (multiple of 8), C: padded channels
    HW = H * W
    n_ext = (H + 2) * W
    mxu_dtype = w1_ref.dtype         # bf16 MXU operand dtype

    # f32 copy of the input tile: residual add and all roll/mask/reshape work stay in the
    # 32-bit sublane layout (proven lowering path); matmul operands are downcast per tap.
    xf = x_ref[...].astype(jnp.float32)                        # (H, W, C)

    # Hoisted per-tile constants shared by both convs.
    j_iota = lax.broadcasted_iota(jnp.int32, (1, W, 1), 1)     # column index (broadcasts)
    zrow = jnp.zeros((1, W, C), jnp.float32)                   # zero halo row

    def conv3x3(x3f, w_ref):
        """3x3 SAME conv of x3f (H, W, C) f32 against w_ref (3,3,C,C); result -> acc_ref."""
        # Zero-halo'd tensor: row -1 and row H are zero, so every dh tap becomes a static,
        # 8-aligned row slice (no row masks, no roll by W±1).
        x_ext = jnp.concatenate([zrow, x3f, zrow], axis=0)     # (H+2, W, C)

        # Width-shift variants (dw = -1, 0, +1), shared by the three kh taps.  The column
        # that would wrap across rows after the flat ±1 roll is zeroed at the source, so
        # the SAME zero-padding at the left/right image edges is exact.
        x_dw = {}
        for dw in (-1, 0, 1):
            v = x_ext
            if dw != 0:
                src_col = W - 1 if dw == -1 else 0
                v = jnp.where(j_iota == src_col, 0.0, v)
            v = v.reshape(n_ext, C)                            # free relayout (W % 8 == 0)
            if dw != 0:
                v = pltpu.roll(v, (-dw) % n_ext, 0)            # v[r] <- x_ext[(r+dw) mod n]
            x_dw[dw] = v

        first = True
        for kh, dh in enumerate((-1, 0, 1)):
            base = (1 + dh) * W                                # static, 8-aligned offset
            for kw, dw in enumerate((-1, 0, 1)):
                xs = x_dw[dw][base:base + HW].astype(mxu_dtype)    # bf16 MXU operand
                contrib = jnp.dot(xs, w_ref[kh, kw],
                                  preferred_element_type=jnp.float32)
                if first:
                    acc_ref[...] = contrib                     # no zeros materialization
                    first = False
                else:
                    acc_ref[...] += contrib                    # MXU-path f32 accumulate

    # conv1 (BN1 scale pre-folded into w1) + bias + ReLU.
    conv3x3(xf, w1_ref)
    y1 = jnp.maximum(acc_ref[...] + b1_ref[...], 0.0).reshape(H, W, C)
    if w_real < W:
        # Zero the padded width columns so conv2's SAME zero-padding stays exact.
        y1 = jnp.where(j_iota < w_real, y1, 0.0)

    # conv2 (BN2 scale pre-folded into w2) + bias + residual + ReLU.
    conv3x3(y1, w2_ref)
    out = jnp.maximum(acc_ref[...] + b2_ref[...] + xf.reshape(HW, C), 0.0)
    o_ref[...] = out.reshape(H, W, C).astype(o_ref.dtype)


def _invariant_spec(shape, index_map):
    """Grid-invariant operand: fetched once, single VMEM buffer (saves VMEM on v7x)."""
    if hasattr(pl, "Buffered"):
        try:
            return pl.BlockSpec(shape, index_map, pipeline_mode=pl.Buffered(1))
        except TypeError:  # older BlockSpec without pipeline_mode
            pass
    return pl.BlockSpec(shape, index_map)


@functools.partial(jax.jit, static_argnames=("eps",))
def basic_block(x_nchw, w1_oihw, w2_oihw,
                gamma1, beta1, mean1, var1,
                gamma2, beta2, mean2, var2, eps=1e-5):
    """BasicBlock forward (stride=1, downsample=None), inference-mode BatchNorm.

    x_nchw: (N, C, H, W); w*_oihw: (C, C, 3, 3); BN params: (C,).  Returns (N, C, H, W).
    """
    N, C, H, W = x_nchw.shape
    compute_dtype = jnp.bfloat16     # bf16 MXU operands; accumulation stays f32

    # Fold BN (inference) into per-output-channel scale/bias; fold the scale into the conv
    # weights so the kernel only needs a bias add.
    s1 = gamma1 / jnp.sqrt(var1 + eps)
    b1 = beta1 - mean1 * s1
    s2 = gamma2 / jnp.sqrt(var2 + eps)
    b2 = beta2 - mean2 * s2

    # OIHW -> HWIO with the BN scale folded over Cout; bf16 MXU operands.
    w1 = (jnp.transpose(w1_oihw, (2, 3, 1, 0)) * s1).astype(compute_dtype)
    w2 = (jnp.transpose(w2_oihw, (2, 3, 1, 0)) * s2).astype(compute_dtype)

    # NCHW -> NHWC (channels on lanes), bf16 activations (halves input DMA bytes).
    x = jnp.transpose(x_nchw, (0, 2, 3, 1)).astype(compute_dtype)

    # Pad channels to a lane-dense multiple of 128 and width to a sublane multiple of 8
    # (free reshapes / aligned halo slices; right-pad columns are re-zeroed for conv2).
    Cp = max(128, -(-C // 128) * 128)
    Wp = -(-W // 8) * 8
    pc, pw = Cp - C, Wp - W
    if pc or pw:
        x = jnp.pad(x, ((0, 0), (0, 0), (0, pw), (0, pc)))
        w1 = jnp.pad(w1, ((0, 0), (0, 0), (0, pc), (0, pc)))
        w2 = jnp.pad(w2, ((0, 0), (0, 0), (0, pc), (0, pc)))
        b1 = jnp.pad(b1, (0, pc))
        b2 = jnp.pad(b2, (0, pc))
    b1 = b1.reshape(1, Cp).astype(jnp.float32)
    b2 = b2.reshape(1, Cp).astype(jnp.float32)

    # VMEM budget from the actual live set (clamped so it is safe on v7x's 64 MiB).
    est = (2 * H * Wp * Cp * 2            # x blocks (double-buffered, bf16)
           + 2 * H * Wp * Cp * 4          # out blocks (double-buffered, f32)
           + 2 * 9 * Cp * Cp * 2          # w1 + w2 (single-buffered, bf16)
           + H * Wp * Cp * 4              # f32 accumulator scratch
           + 4 * (H + 2) * Wp * Cp * 4    # halo'd tensor + dw variants (f32)
           + 4 * H * Wp * Cp * 4)         # y1 / residual / misc temporaries
    vmem_limit = int(min(max(2 * est, 32 * 1024 * 1024), 64 * 1024 * 1024))

    out = pl.pallas_call(
        functools.partial(basic_block_kernel, w_real=W),
        out_shape=jax.ShapeDtypeStruct((N, H, Wp, Cp), jnp.float32),
        grid=(N,),
        in_specs=[
            pl.BlockSpec((None, H, Wp, Cp), lambda n: (n, 0, 0, 0)),
            _invariant_spec((3, 3, Cp, Cp), lambda n: (0, 0, 0, 0)),
            _invariant_spec((3, 3, Cp, Cp), lambda n: (0, 0, 0, 0)),
            _invariant_spec((1, Cp), lambda n: (0, 0)),
            _invariant_spec((1, Cp), lambda n: (0, 0)),
        ],
        out_specs=pl.BlockSpec((None, H, Wp, Cp), lambda n: (n, 0, 0, 0)),
        scratch_shapes=[pltpu.VMEM((H * Wp, Cp), jnp.float32)],
        compiler_params=pltpu.CompilerParams(
            dimension_semantics=("parallel",),
            vmem_limit_bytes=vmem_limit),
    )(x, w1, w2, b1, b2)

    # Drop channel/width padding and return to NCHW.
    return jnp.transpose(out[:, :, :W, :C], (0, 3, 1, 2)).astype(x_nchw.dtype)


def reference_block(x, w1, w2, g1, be1, m1, v1, g2, be2, m2, v2, eps=1e-5):
    """Pure-JAX f32 reference with PyTorch semantics (NCHW / OIHW, inference-mode BN)."""
    dn = lax.conv_dimension_numbers(x.shape, w1.shape, ("NCHW", "OIHW", "NCHW"))

    def bn(y, g, b, m, v):
        inv = g / jnp.sqrt(v + eps)
        return y * inv[None, :, None, None] + (b - m * inv)[None, :, None, None]

    y = lax.conv_general_dilated(x, w1, (1, 1), "SAME", dimension_numbers=dn)
    y = jnp.maximum(bn(y, g1, be1, m1, v1), 0.0)
    y2 = lax.conv_general_dilated(y, w2, (1, 1), "SAME", dimension_numbers=dn)
    y2 = bn(y2, g2, be2, m2, v2)
    return jnp.maximum(y2 + x, 0.0)


if __name__ == "__main__":
    # Shapes consistent with BasicBlock(inplanes=4, planes=4, stride=1).
    N, C, H, W = 2, 4, 16, 16
    key = jax.random.PRNGKey(0)
    keys = jax.random.split(key, 11)

    x = jax.random.normal(keys[0], (N, C, H, W), jnp.float32)

    # Conv weights in PyTorch OIHW layout (Cout, Cin, kh, kw), no bias.
    w1 = jax.random.normal(keys[1], (C, C, 3, 3), jnp.float32) * 0.1
    w2 = jax.random.normal(keys[2], (C, C, 3, 3), jnp.float32) * 0.1

    # BatchNorm parameters (inference mode, eps = 1e-5 like PyTorch).
    gamma1 = 1.0 + 0.1 * jax.random.normal(keys[3], (C,), jnp.float32)
    beta1 = 0.1 * jax.random.normal(keys[4], (C,), jnp.float32)
    mean1 = 0.1 * jax.random.normal(keys[5], (C,), jnp.float32)
    var1 = jnp.abs(jax.random.normal(keys[6], (C,), jnp.float32)) + 0.5

    gamma2 = 1.0 + 0.1 * jax.random.normal(keys[7], (C,), jnp.float32)
    beta2 = 0.1 * jax.random.normal(keys[8], (C,), jnp.float32)
    mean2 = 0.1 * jax.random.normal(keys[9], (C,), jnp.float32)
    var2 = jnp.abs(jax.random.normal(keys[10], (C,), jnp.float32)) + 0.5

    out = basic_block(x, w1, w2, gamma1, beta1, mean1, var1,
                      gamma2, beta2, mean2, var2)
    out = jax.block_until_ready(out)

    ref = reference_block(x, w1, w2, gamma1, beta1, mean1, var1,
                          gamma2, beta2, mean2, var2)
    ref = jax.block_until_ready(ref)

    assert out.shape == (N, C, H, W)
    # Tolerance reflects bf16 MXU operands (activations/weights); accumulation is f32.
    max_diff = jnp.max(jnp.abs(out - ref))
    assert jnp.allclose(out, ref, atol=5e-2, rtol=5e-2), f"max abs diff {max_diff}"

    print("KERNEL_OK")
</pallas_src>

<mosaic_0001>
module attributes {stable_mosaic.version = 11 : i64} {
  func.func @basic_block_kernel(%arg0: i32, %arg1: memref<1x16x16x128xbf16, #tpu.memory_space<vmem>>, %arg2: memref<3x3x128x128xbf16, #tpu.memory_space<vmem>>, %arg3: memref<3x3x128x128xbf16, #tpu.memory_space<vmem>>, %arg4: memref<1x128xf32, #tpu.memory_space<vmem>>, %arg5: memref<1x128xf32, #tpu.memory_space<vmem>>, %arg6: memref<1x16x16x128xf32, #tpu.memory_space<vmem>>, %arg7: memref<256x128xf32, #tpu.memory_space<vmem>>) attributes {dimension_semantics = [#tpu.dimension_semantics<parallel>], iteration_bounds = array<i64: 2>, scalar_prefetch = 0 : i64, scratch_operands = 1 : i64, tpu.core_type = #tpu.core_type<tc>, window_params = [{transform_indices = @transform_0, window_bounds = array<i64: 1, 16, 16, 128>}, {pipeline_mode = #tpu.pipeline_mode<synchronous>, transform_indices = @transform_1, window_bounds = array<i64: 3, 3, 128, 128>}, {pipeline_mode = #tpu.pipeline_mode<synchronous>, transform_indices = @transform_2, window_bounds = array<i64: 3, 3, 128, 128>}, {pipeline_mode = #tpu.pipeline_mode<synchronous>, transform_indices = @transform_3, window_bounds = array<i64: 1, 128>}, {pipeline_mode = #tpu.pipeline_mode<synchronous>, transform_indices = @transform_4, window_bounds = array<i64: 1, 128>}, {transform_indices = @transform_5, window_bounds = array<i64: 1, 16, 16, 128>}]} {
    %c0 = arith.constant 0 : index
    %c0_0 = arith.constant 0 : index
    %c0_1 = arith.constant 0 : index
    %c0_2 = arith.constant 0 : index
    %0 = vector.load %arg1[%c0, %c0_0, %c0_1, %c0_2] : memref<1x16x16x128xbf16, #tpu.memory_space<vmem>>, vector<1x16x16x128xbf16>
    %1 = vector.shape_cast %0 : vector<1x16x16x128xbf16> to vector<16x16x128xbf16>
    %2 = arith.extf %1 : vector<16x16x128xbf16> to vector<16x16x128xf32>
    %3 = tpu.iota {dimensions = array<i32: 1>} : vector<1x16x1xi32>
    %cst = arith.constant 0.000000e+00 : f32
    %4 = vector.broadcast %cst : f32 to vector<1x16x128xf32>
    %5 = tpu.concatenate %4, %2, %4 in 0 : vector<1x16x128xf32>, vector<16x16x128xf32>, vector<1x16x128xf32> -> vector<18x16x128xf32>
    %c15_i32 = arith.constant 15 : i32
    %6 = vector.broadcast %c15_i32 : i32 to vector<1x16x1xi32>
    %7 = arith.cmpi eq, %3, %6 : vector<1x16x1xi32>
    %cst_3 = arith.constant 0.000000e+00 : f32
    %8 = vector.shape_cast %7 : vector<1x16x1xi1> to vector<1x16x1xi1>
    %9 = vector.broadcast %8 : vector<1x16x1xi1> to vector<18x16x128xi1>
    %10 = vector.broadcast %cst_3 : f32 to vector<18x16x128xf32>
    %11 = arith.select %9, %10, %5 : vector<18x16x128xi1>, vector<18x16x128xf32>
    %12 = vector.shape_cast %11 : vector<18x16x128xf32> to vector<288x128xf32>
    %c1_i32 = arith.constant 1 : i32
    %13 = tpu.dynamic_rotate %12 by %c1_i32 dim 0 : vector<288x128xf32>, i32 -> vector<288x128xf32>
    %14 = vector.shape_cast %5 : vector<18x16x128xf32> to vector<288x128xf32>
    %c0_i32 = arith.constant 0 : i32
    %15 = vector.broadcast %c0_i32 : i32 to vector<1x16x1xi32>
    %16 = arith.cmpi eq, %3, %15 : vector<1x16x1xi32>
    %cst_4 = arith.constant 0.000000e+00 : f32
    %17 = vector.shape_cast %16 : vector<1x16x1xi1> to vector<1x16x1xi1>
    %18 = vector.broadcast %17 : vector<1x16x1xi1> to vector<18x16x128xi1>
    %19 = vector.broadcast %cst_4 : f32 to vector<18x16x128xf32>
    %20 = arith.select %18, %19, %5 : vector<18x16x128xi1>, vector<18x16x128xf32>
    %21 = vector.shape_cast %20 : vector<18x16x128xf32> to vector<288x128xf32>
    %c287_i32 = arith.constant 287 : i32
    %22 = tpu.dynamic_rotate %21 by %c287_i32 dim 0 : vector<288x128xf32>, i32 -> vector<288x128xf32>
    %23 = vector.extract_strided_slice %13 {offsets = [0, 0], sizes = [256, 128], strides = [1, 1]} : vector<288x128xf32> to vector<256x128xf32>
    %24 = arith.truncf %23 : vector<256x128xf32> to vector<256x128xbf16>
    %c0_5 = arith.constant 0 : index
    %c0_6 = arith.constant 0 : index
    %c0_7 = arith.constant 0 : index
    %c0_8 = arith.constant 0 : index
    %25 = vector.load %arg2[%c0_5, %c0_6, %c0_7, %c0_8] : memref<3x3x128x128xbf16, #tpu.memory_space<vmem>>, vector<1x1x128x128xbf16>
    %26 = vector.shape_cast %25 : vector<1x1x128x128xbf16> to vector<128x128xbf16>
    %cst_9 = arith.constant dense<0.000000e+00> : vector<256x128xf32>
    %27 = tpu.matmul %24, %26, %cst_9 {dimension_numbers = #tpu.dot_dimension_numbers<[1], [0], [0], [1], [0, 0, 1, 1], [], []>} : vector<256x128xbf16>, vector<128x128xbf16>, vector<256x128xf32> -> vector<256x128xf32>
    %c0_10 = arith.constant 0 : index
    %c0_11 = arith.constant 0 : index
    %28 = vector.load %arg7[%c0_10, %c0_11] : memref<256x128xf32, #tpu.memory_space<vmem>>, vector<256x128xf32>
    tpu.vector_store %arg7[%c0_10, %c0_11], %27 {strides = array<i32>} : memref<256x128xf32, #tpu.memory_space<vmem>>, vector<256x128xf32>,
    %29 = vector.extract_strided_slice %14 {offsets = [0, 0], sizes = [256, 128], strides = [1, 1]} : vector<288x128xf32> to vector<256x128xf32>
    %30 = arith.truncf %29 : vector<256x128xf32> to vector<256x128xbf16>
    %c0_12 = arith.constant 0 : index
    %c1 = arith.constant 1 : index
    %c0_13 = arith.constant 0 : index
    %c0_14 = arith.constant 0 : index
    %31 = vector.load %arg2[%c0_12, %c1, %c0_13, %c0_14] : memref<3x3x128x128xbf16, #tpu.memory_space<vmem>>, vector<1x1x128x128xbf16>
    %32 = vector.shape_cast %31 : vector<1x1x128x128xbf16> to vector<128x128xbf16>
    %cst_15 = arith.constant dense<0.000000e+00> : vector<256x128xf32>
    %33 = tpu.matmul %30, %32, %cst_15 {dimension_numbers = #tpu.dot_dimension_numbers<[1], [0], [0], [1], [0, 0, 1, 1], [], []>} : vector<256x128xbf16>, vector<128x128xbf16>, vector<256x128xf32> -> vector<256x128xf32>
    %c0_16 = arith.constant 0 : index
    %c0_17 = arith.constant 0 : index
    %34 = vector.load %arg7[%c0_16, %c0_17] : memref<256x128xf32, #tpu.memory_space<vmem>>, vector<256x128xf32>
    %35 = arith.addf %34, %33 : vector<256x128xf32>
    %c0_18 = arith.constant 0 : index
    %c0_19 = arith.constant 0 : index
    %36 = vector.load %arg7[%c0_18, %c0_19] : memref<256x128xf32, #tpu.memory_space<vmem>>, vector<256x128xf32>
    tpu.vector_store %arg7[%c0_18, %c0_19], %35 {strides = array<i32>} : memref<256x128xf32, #tpu.memory_space<vmem>>, vector<256x128xf32>,
    %37 = vector.extract_strided_slice %22 {offsets = [0, 0], sizes = [256, 128], strides = [1, 1]} : vector<288x128xf32> to vector<256x128xf32>
    %38 = arith.truncf %37 : vector<256x128xf32> to vector<256x128xbf16>
    %c0_20 = arith.constant 0 : index
    %c2 = arith.constant 2 : index
    %c0_21 = arith.constant 0 : index
    %c0_22 = arith.constant 0 : index
    %39 = vector.load %arg2[%c0_20, %c2, %c0_21, %c0_22] : memref<3x3x128x128xbf16, #tpu.memory_space<vmem>>, vector<1x1x128x128xbf16>
    %40 = vector.shape_cast %39 : vector<1x1x128x128xbf16> to vector<128x128xbf16>
    %cst_23 = arith.constant dense<0.000000e+00> : vector<256x128xf32>
    %41 = tpu.matmul %38, %40, %cst_23 {dimension_numbers = #tpu.dot_dimension_numbers<[1], [0], [0], [1], [0, 0, 1, 1], [], []>} : vector<256x128xbf16>, vector<128x128xbf16>, vector<256x128xf32> -> vector<256x128xf32>
    %c0_24 = arith.constant 0 : index
    %c0_25 = arith.constant 0 : index
    %42 = vector.load %arg7[%c0_24, %c0_25] : memref<256x128xf32, #tpu.memory_space<vmem>>, vector<256x128xf32>
    %43 = arith.addf %42, %41 : vector<256x128xf32>
    %c0_26 = arith.constant 0 : index
    %c0_27 = arith.constant 0 : index
    %44 = vector.load %arg7[%c0_26, %c0_27] : memref<256x128xf32, #tpu.memory_space<vmem>>, vector<256x128xf32>
    tpu.vector_store %arg7[%c0_26, %c0_27], %43 {strides = array<i32>} : memref<256x128xf32, #tpu.memory_space<vmem>>, vector<256x128xf32>,
    %45 = vector.extract_strided_slice %13 {offsets = [16, 0], sizes = [256, 128], strides = [1, 1]} : vector<288x128xf32> to vector<256x128xf32>
    %46 = arith.truncf %45 : vector<256x128xf32> to vector<256x128xbf16>
    %c1_28 = arith.constant 1 : index
    %c0_29 = arith.constant 0 : index
    %c0_30 = arith.constant 0 : index
    %c0_31 = arith.constant 0 : index
    %47 = vector.load %arg2[%c1_28, %c0_29, %c0_30, %c0_31] : memref<3x3x128x128xbf16, #tpu.memory_space<vmem>>, vector<1x1x128x128xbf16>
    %48 = vector.shape_cast %47 : vector<1x1x128x128xbf16> to vector<128x128xbf16>
    %cst_32 = arith.constant dense<0.000000e+00> : vector<256x128xf32>
    %49 = tpu.matmul %46, %48, %cst_32 {dimension_numbers = #tpu.dot_dimension_numbers<[1], [0], [0], [1], [0, 0, 1, 1], [], []>} : vector<256x128xbf16>, vector<128x128xbf16>, vector<256x128xf32> -> vector<256x128xf32>
    %c0_33 = arith.constant 0 : index
    %c0_34 = arith.constant 0 : index
    %50 = vector.load %arg7[%c0_33, %c0_34] : memref<256x128xf32, #tpu.memory_space<vmem>>, vector<256x128xf32>
    %51 = arith.addf %50, %49 : vector<256x128xf32>
    %c0_35 = arith.constant 0 : index
    %c0_36 = arith.constant 0 : index
    %52 = vector.load %arg7[%c0_35, %c0_36] : memref<256x128xf32, #tpu.memory_space<vmem>>, vector<256x128xf32>
    tpu.vector_store %arg7[%c0_35, %c0_36], %51 {strides = array<i32>} : memref<256x128xf32, #tpu.memory_space<vmem>>, vector<256x128xf32>,
    %53 = vector.extract_strided_slice %14 {offsets = [16, 0], sizes = [256, 128], strides = [1, 1]} : vector<288x128xf32> to vector<256x128xf32>
    %54 = arith.truncf %53 : vector<256x128xf32> to vector<256x128xbf16>
    %c1_37 = arith.constant 1 : index
    %c1_38 = arith.constant 1 : index
    %c0_39 = arith.constant 0 : index
    %c0_40 = arith.constant 0 : index
    %55 = vector.load %arg2[%c1_37, %c1_38, %c0_39, %c0_40] : memref<3x3x128x128xbf16, #tpu.memory_space<vmem>>, vector<1x1x128x128xbf16>
    %56 = vector.shape_cast %55 : vector<1x1x128x128xbf16> to vector<128x128xbf16>
    %cst_41 = arith.constant dense<0.000000e+00> : vector<256x128xf32>
    %57 = tpu.matmul %54, %56, %cst_41 {dimension_numbers = #tpu.dot_dimension_numbers<[1], [0], [0], [1], [0, 0, 1, 1], [], []>} : vector<256x128xbf16>, vector<128x128xbf16>, vector<256x128xf32> -> vector<256x128xf32>
    %c0_42 = arith.constant 0 : index
    %c0_43 = arith.constant 0 : index
    %58 = vector.load %arg7[%c0_42, %c0_43] : memref<256x128xf32, #tpu.memory_space<vmem>>, vector<256x128xf32>
    %59 = arith.addf %58, %57 : vector<256x128xf32>
    %c0_44 = arith.constant 0 : index
    %c0_45 = arith.constant 0 : index
    %60 = vector.load %arg7[%c0_44, %c0_45] : memref<256x128xf32, #tpu.memory_space<vmem>>, vector<256x128xf32>
    tpu.vector_store %arg7[%c0_44, %c0_45], %59 {strides = array<i32>} : memref<256x128xf32, #tpu.memory_space<vmem>>, vector<256x128xf32>,
    %61 = vector.extract_strided_slice %22 {offsets = [16, 0], sizes = [256, 128], strides = [1, 1]} : vector<288x128xf32> to vector<256x128xf32>
    %62 = arith.truncf %61 : vector<256x128xf32> to vector<256x128xbf16>
    %c1_46 = arith.constant 1 : index
    %c2_47 = arith.constant 2 : index
    %c0_48 = arith.constant 0 : index
    %c0_49 = arith.constant 0 : index
    %63 = vector.load %arg2[%c1_46, %c2_47, %c0_48, %c0_49] : memref<3x3x128x128xbf16, #tpu.memory_space<vmem>>, vector<1x1x128x128xbf16>
    %64 = vector.shape_cast %63 : vector<1x1x128x128xbf16> to vector<128x128xbf16>
    %cst_50 = arith.constant dense<0.000000e+00> : vector<256x128xf32>
    %65 = tpu.matmul %62, %64, %cst_50 {dimension_numbers = #tpu.dot_dimension_numbers<[1], [0], [0], [1], [0, 0, 1, 1], [], []>} : vector<256x128xbf16>, vector<128x128xbf16>, vector<256x128xf32> -> vector<256x128xf32>
    %c0_51 = arith.constant 0 : index
    %c0_52 = arith.constant 0 : index
    %66 = vector.load %arg7[%c0_51, %c0_52] : memref<256x128xf32, #tpu.memory_space<vmem>>, vector<256x128xf32>
    %67 = arith.addf %66, %65 : vector<256x128xf32>
    %c0_53 = arith.constant 0 : index
    %c0_54 = arith.constant 0 : index
    %68 = vector.load %arg7[%c0_53, %c0_54] : memref<256x128xf32, #tpu.memory_space<vmem>>, vector<256x128xf32>
    tpu.vector_store %arg7[%c0_53, %c0_54], %67 {strides = array<i32>} : memref<256x128xf32, #tpu.memory_space<vmem>>, vector<256x128xf32>,
    %69 = vector.extract_strided_slice %13 {offsets = [32, 0], sizes = [256, 128], strides = [1, 1]} : vector<288x128xf32> to vector<256x128xf32>
    %70 = arith.truncf %69 : vector<256x128xf32> to vector<256x128xbf16>
    %c2_55 = arith.constant 2 : index
    %c0_56 = arith.constant 0 : index
    %c0_57 = arith.constant 0 : index
    %c0_58 = arith.constant 0 : index
    %71 = vector.load %arg2[%c2_55, %c0_56, %c0_57, %c0_58] : memref<3x3x128x128xbf16, #tpu.memory_space<vmem>>, vector<1x1x128x128xbf16>
    %72 = vector.shape_cast %71 : vector<1x1x128x128xbf16> to vector<128x128xbf16>
    %cst_59 = arith.constant dense<0.000000e+00> : vector<256x128xf32>
    %73 = tpu.matmul %70, %72, %cst_59 {dimension_numbers = #tpu.dot_dimension_numbers<[1], [0], [0], [1], [0, 0, 1, 1], [], []>} : vector<256x128xbf16>, vector<128x128xbf16>, vector<256x128xf32> -> vector<256x128xf32>
    %c0_60 = arith.constant 0 : index
    %c0_61 = arith.constant 0 : index
    %74 = vector.load %arg7[%c0_60, %c0_61] : memref<256x128xf32, #tpu.memory_space<vmem>>, vector<256x128xf32>
    %75 = arith.addf %74, %73 : vector<256x128xf32>
    %c0_62 = arith.constant 0 : index
    %c0_63 = arith.constant 0 : index
    %76 = vector.load %arg7[%c0_62, %c0_63] : memref<256x128xf32, #tpu.memory_space<vmem>>, vector<256x128xf32>
    tpu.vector_store %arg7[%c0_62, %c0_63], %75 {strides = array<i32>} : memref<256x128xf32, #tpu.memory_space<vmem>>, vector<256x128xf32>,
    %77 = vector.extract_strided_slice %14 {offsets = [32, 0], sizes = [256, 128], strides = [1, 1]} : vector<288x128xf32> to vector<256x128xf32>
    %78 = arith.truncf %77 : vector<256x128xf32> to vector<256x128xbf16>
    %c2_64 = arith.constant 2 : index
    %c1_65 = arith.constant 1 : index
    %c0_66 = arith.constant 0 : index
    %c0_67 = arith.constant 0 : index
    %79 = vector.load %arg2[%c2_64, %c1_65, %c0_66, %c0_67] : memref<3x3x128x128xbf16, #tpu.memory_space<vmem>>, vector<1x1x128x128xbf16>
    %80 = vector.shape_cast %79 : vector<1x1x128x128xbf16> to vector<128x128xbf16>
    %cst_68 = arith.constant dense<0.000000e+00> : vector<256x128xf32>
    %81 = tpu.matmul %78, %80, %cst_68 {dimension_numbers = #tpu.dot_dimension_numbers<[1], [0], [0], [1], [0, 0, 1, 1], [], []>} : vector<256x128xbf16>, vector<128x128xbf16>, vector<256x128xf32> -> vector<256x128xf32>
    %c0_69 = arith.constant 0 : index
    %c0_70 = arith.constant 0 : index
    %82 = vector.load %arg7[%c0_69, %c0_70] : memref<256x128xf32, #tpu.memory_space<vmem>>, vector<256x128xf32>
    %83 = arith.addf %82, %81 : vector<256x128xf32>
    %c0_71 = arith.constant 0 : index
    %c0_72 = arith.constant 0 : index
    %84 = vector.load %arg7[%c0_71, %c0_72] : memref<256x128xf32, #tpu.memory_space<vmem>>, vector<256x128xf32>
    tpu.vector_store %arg7[%c0_71, %c0_72], %83 {strides = array<i32>} : memref<256x128xf32, #tpu.memory_space<vmem>>, vector<256x128xf32>,
    %85 = vector.extract_strided_slice %22 {offsets = [32, 0], sizes = [256, 128], strides = [1, 1]} : vector<288x128xf32> to vector<256x128xf32>
    %86 = arith.truncf %85 : vector<256x128xf32> to vector<256x128xbf16>
    %c2_73 = arith.constant 2 : index
    %c2_74 = arith.constant 2 : index
    %c0_75 = arith.constant 0 : index
    %c0_76 = arith.constant 0 : index
    %87 = vector.load %arg2[%c2_73, %c2_74, %c0_75, %c0_76] : memref<3x3x128x128xbf16, #tpu.memory_space<vmem>>, vector<1x1x128x128xbf16>
    %88 = vector.shape_cast %87 : vector<1x1x128x128xbf16> to vector<128x128xbf16>
    %cst_77 = arith.constant dense<0.000000e+00> : vector<256x128xf32>
    %89 = tpu.matmul %86, %88, %cst_77 {dimension_numbers = #tpu.dot_dimension_numbers<[1], [0], [0], [1], [0, 0, 1, 1], [], []>} : vector<256x128xbf16>, vector<128x128xbf16>, vector<256x128xf32> -> vector<256x128xf32>
    %c0_78 = arith.constant 0 : index
    %c0_79 = arith.constant 0 : index
    %90 = vector.load %arg7[%c0_78, %c0_79] : memref<256x128xf32, #tpu.memory_space<vmem>>, vector<256x128xf32>
    %91 = arith.addf %90, %89 : vector<256x128xf32>
    %c0_80 = arith.constant 0 : index
    %c0_81 = arith.constant 0 : index
    %92 = vector.load %arg7[%c0_80, %c0_81] : memref<256x128xf32, #tpu.memory_space<vmem>>, vector<256x128xf32>
    tpu.vector_store %arg7[%c0_80, %c0_81], %91 {strides = array<i32>} : memref<256x128xf32, #tpu.memory_space<vmem>>, vector<256x128xf32>,
    %c0_82 = arith.constant 0 : index
    %c0_83 = arith.constant 0 : index
    %93 = vector.load %arg7[%c0_82, %c0_83] : memref<256x128xf32, #tpu.memory_space<vmem>>, vector<256x128xf32>
    %c0_84 = arith.constant 0 : index
    %c0_85 = arith.constant 0 : index
    %94 = vector.load %arg4[%c0_84, %c0_85] : memref<1x128xf32, #tpu.memory_space<vmem>>, vector<1x128xf32>
    %95 = vector.broadcast %94 : vector<1x128xf32> to vector<256x128xf32>
    %96 = arith.addf %93, %95 : vector<256x128xf32>
    %cst_86 = arith.constant 0.000000e+00 : f32
    %97 = vector.broadcast %cst_86 : f32 to vector<256x128xf32>
    %98 = arith.maximumf %96, %97 : vector<256x128xf32>
    %99 = vector.shape_cast %98 : vector<256x128xf32> to vector<16x16x128xf32>
    %100 = tpu.concatenate %4, %99, %4 in 0 : vector<1x16x128xf32>, vector<16x16x128xf32>, vector<1x16x128xf32> -> vector<18x16x128xf32>
    %c15_i32_87 = arith.constant 15 : i32
    %101 = vector.broadcast %c15_i32_87 : i32 to vector<1x16x1xi32>
    %102 = arith.cmpi eq, %3, %101 : vector<1x16x1xi32>
    %cst_88 = arith.constant 0.000000e+00 : f32
    %103 = vector.shape_cast %102 : vector<1x16x1xi1> to vector<1x16x1xi1>
    %104 = vector.broadcast %103 : vector<1x16x1xi1> to vector<18x16x128xi1>
    %105 = vector.broadcast %cst_88 : f32 to vector<18x16x128xf32>
    %106 = arith.select %104, %105, %100 : vector<18x16x128xi1>, vector<18x16x128xf32>
    %107 = vector.shape_cast %106 : vector<18x16x128xf32> to vector<288x128xf32>
    %c1_i32_89 = arith.constant 1 : i32
    %108 = tpu.dynamic_rotate %107 by %c1_i32_89 dim 0 : vector<288x128xf32>, i32 -> vector<288x128xf32>
    %109 = vector.shape_cast %100 : vector<18x16x128xf32> to vector<288x128xf32>
    %c0_i32_90 = arith.constant 0 : i32
    %110 = vector.broadcast %c0_i32_90 : i32 to vector<1x16x1xi32>
    %111 = arith.cmpi eq, %3, %110 : vector<1x16x1xi32>
    %cst_91 = arith.constant 0.000000e+00 : f32
    %112 = vector.shape_cast %111 : vector<1x16x1xi1> to vector<1x16x1xi1>
    %113 = vector.broadcast %112 : vector<1x16x1xi1> to vector<18x16x128xi1>
    %114 = vector.broadcast %cst_91 : f32 to vector<18x16x128xf32>
    %115 = arith.select %113, %114, %100 : vector<18x16x128xi1>, vector<18x16x128xf32>
    %116 = vector.shape_cast %115 : vector<18x16x128xf32> to vector<288x128xf32>
    %c287_i32_92 = arith.constant 287 : i32
    %117 = tpu.dynamic_rotate %116 by %c287_i32_92 dim 0 : vector<288x128xf32>, i32 -> vector<288x128xf32>
    %118 = vector.extract_strided_slice %108 {offsets = [0, 0], sizes = [256, 128], strides = [1, 1]} : vector<288x128xf32> to vector<256x128xf32>
    %119 = arith.truncf %118 : vector<256x128xf32> to vector<256x128xbf16>
    %c0_93 = arith.constant 0 : index
    %c0_94 = arith.constant 0 : index
    %c0_95 = arith.constant 0 : index
    %c0_96 = arith.constant 0 : index
    %120 = vector.load %arg3[%c0_93, %c0_94, %c0_95, %c0_96] : memref<3x3x128x128xbf16, #tpu.memory_space<vmem>>, vector<1x1x128x128xbf16>
    %121 = vector.shape_cast %120 : vector<1x1x128x128xbf16> to vector<128x128xbf16>
    %cst_97 = arith.constant dense<0.000000e+00> : vector<256x128xf32>
    %122 = tpu.matmul %119, %121, %cst_97 {dimension_numbers = #tpu.dot_dimension_numbers<[1], [0], [0], [1], [0, 0, 1, 1], [], []>} : vector<256x128xbf16>, vector<128x128xbf16>, vector<256x128xf32> -> vector<256x128xf32>
    %c0_98 = arith.constant 0 : index
    %c0_99 = arith.constant 0 : index
    %123 = vector.load %arg7[%c0_98, %c0_99] : memref<256x128xf32, #tpu.memory_space<vmem>>, vector<256x128xf32>
    tpu.vector_store %arg7[%c0_98, %c0_99], %122 {strides = array<i32>} : memref<256x128xf32, #tpu.memory_space<vmem>>, vector<256x128xf32>,
    %124 = vector.extract_strided_slice %109 {offsets = [0, 0], sizes = [256, 128], strides = [1, 1]} : vector<288x128xf32> to vector<256x128xf32>
    %125 = arith.truncf %124 : vector<256x128xf32> to vector<256x128xbf16>
    %c0_100 = arith.constant 0 : index
    %c1_101 = arith.constant 1 : index
    %c0_102 = arith.constant 0 : index
    %c0_103 = arith.constant 0 : index
    %126 = vector.load %arg3[%c0_100, %c1_101, %c0_102, %c0_103] : memref<3x3x128x128xbf16, #tpu.memory_space<vmem>>, vector<1x1x128x128xbf16>
    %127 = vector.shape_cast %126 : vector<1x1x128x128xbf16> to vector<128x128xbf16>
    %cst_104 = arith.constant dense<0.000000e+00> : vector<256x128xf32>
    %128 = tpu.matmul %125, %127, %cst_104 {dimension_numbers = #tpu.dot_dimension_numbers<[1], [0], [0], [1], [0, 0, 1, 1], [], []>} : vector<256x128xbf16>, vector<128x128xbf16>, vector<256x128xf32> -> vector<256x128xf32>
    %c0_105 = arith.constant 0 : index
    %c0_106 = arith.constant 0 : index
    %129 = vector.load %arg7[%c0_105, %c0_106] : memref<256x128xf32, #tpu.memory_space<vmem>>, vector<256x128xf32>
    %130 = arith.addf %129, %128 : vector<256x128xf32>
    %c0_107 = arith.constant 0 : index
    %c0_108 = arith.constant 0 : index
    %131 = vector.load %arg7[%c0_107, %c0_108] : memref<256x128xf32, #tpu.memory_space<vmem>>, vector<256x128xf32>
    tpu.vector_store %arg7[%c0_107, %c0_108], %130 {strides = array<i32>} : memref<256x128xf32, #tpu.memory_space<vmem>>, vector<256x128xf32>,
    %132 = vector.extract_strided_slice %117 {offsets = [0, 0], sizes = [256, 128], strides = [1, 1]} : vector<288x128xf32> to vector<256x128xf32>
    %133 = arith.truncf %132 : vector<256x128xf32> to vector<256x128xbf16>
    %c0_109 = arith.constant 0 : index
    %c2_110 = arith.constant 2 : index
    %c0_111 = arith.constant 0 : index
    %c0_112 = arith.constant 0 : index
    %134 = vector.load %arg3[%c0_109, %c2_110, %c0_111, %c0_112] : memref<3x3x128x128xbf16, #tpu.memory_space<vmem>>, vector<1x1x128x128xbf16>
    %135 = vector.shape_cast %134 : vector<1x1x128x128xbf16> to vector<128x128xbf16>
    %cst_113 = arith.constant dense<0.000000e+00> : vector<256x128xf32>
    %136 = tpu.matmul %133, %135, %cst_113 {dimension_numbers = #tpu.dot_dimension_numbers<[1], [0], [0], [1], [0, 0, 1, 1], [], []>} : vector<256x128xbf16>, vector<128x128xbf16>, vector<256x128xf32> -> vector<256x128xf32>
    %c0_114 = arith.constant 0 : index
    %c0_115 = arith.constant 0 : index
    %137 = vector.load %arg7[%c0_114, %c0_115] : memref<256x128xf32, #tpu.memory_space<vmem>>, vector<256x128xf32>
    %138 = arith.addf %137, %136 : vector<256x128xf32>
    %c0_116 = arith.constant 0 : index
    %c0_117 = arith.constant 0 : index
    %139 = vector.load %arg7[%c0_116, %c0_117] : memref<256x128xf32, #tpu.memory_space<vmem>>, vector<256x128xf32>
    tpu.vector_store %arg7[%c0_116, %c0_117], %138 {strides = array<i32>} : memref<256x128xf32, #tpu.memory_space<vmem>>, vector<256x128xf32>,
    %140 = vector.extract_strided_slice %108 {offsets = [16, 0], sizes = [256, 128], strides = [1, 1]} : vector<288x128xf32> to vector<256x128xf32>
    %141 = arith.truncf %140 : vector<256x128xf32> to vector<256x128xbf16>
    %c1_118 = arith.constant 1 : index
    %c0_119 = arith.constant 0 : index
    %c0_120 = arith.constant 0 : index
    %c0_121 = arith.constant 0 : index
    %142 = vector.load %arg3[%c1_118, %c0_119, %c0_120, %c0_121] : memref<3x3x128x128xbf16, #tpu.memory_space<vmem>>, vector<1x1x128x128xbf16>
    %143 = vector.shape_cast %142 : vector<1x1x128x128xbf16> to vector<128x128xbf16>
    %cst_122 = arith.constant dense<0.000000e+00> : vector<256x128xf32>
    %144 = tpu.matmul %141, %143, %cst_122 {dimension_numbers = #tpu.dot_dimension_numbers<[1], [0], [0], [1], [0, 0, 1, 1], [], []>} : vector<256x128xbf16>, vector<128x128xbf16>, vector<256x128xf32> -> vector<256x128xf32>
    %c0_123 = arith.constant 0 : index
    %c0_124 = arith.constant 0 : index
    %145 = vector.load %arg7[%c0_123, %c0_124] : memref<256x128xf32, #tpu.memory_space<vmem>>, vector<256x128xf32>
    %146 = arith.addf %145, %144 : vector<256x128xf32>
    %c0_125 = arith.constant 0 : index
    %c0_126 = arith.constant 0 : index
    %147 = vector.load %arg7[%c0_125, %c0_126] : memref<256x128xf32, #tpu.memory_space<vmem>>, vector<256x128xf32>
    tpu.vector_store %arg7[%c0_125, %c0_126], %146 {strides = array<i32>} : memref<256x128xf32, #tpu.memory_space<vmem>>, vector<256x128xf32>,
    %148 = vector.extract_strided_slice %109 {offsets = [16, 0], sizes = [256, 128], strides = [1, 1]} : vector<288x128xf32> to vector<256x128xf32>
    %149 = arith.truncf %148 : vector<256x128xf32> to vector<256x128xbf16>
    %c1_127 = arith.constant 1 : index
    %c1_128 = arith.constant 1 : index
    %c0_129 = arith.constant 0 : index
    %c0_130 = arith.constant 0 : index
    %150 = vector.load %arg3[%c1_127, %c1_128, %c0_129, %c0_130] : memref<3x3x128x128xbf16, #tpu.memory_space<vmem>>, vector<1x1x128x128xbf16>
    %151 = vector.shape_cast %150 : vector<1x1x128x128xbf16> to vector<128x128xbf16>
    %cst_131 = arith.constant dense<0.000000e+00> : vector<256x128xf32>
    %152 = tpu.matmul %149, %151, %cst_131 {dimension_numbers = #tpu.dot_dimension_numbers<[1], [0], [0], [1], [0, 0, 1, 1], [], []>} : vector<256x128xbf16>, vector<128x128xbf16>, vector<256x128xf32> -> vector<256x128xf32>
    %c0_132 = arith.constant 0 : index
    %c0_133 = arith.constant 0 : index
    %153 = vector.load %arg7[%c0_132, %c0_133] : memref<256x128xf32, #tpu.memory_space<vmem>>, vector<256x128xf32>
    %154 = arith.addf %153, %152 : vector<256x128xf32>
    %c0_134 = arith.constant 0 : index
    %c0_135 = arith.constant 0 : index
    %155 = vector.load %arg7[%c0_134, %c0_135] : memref<256x128xf32, #tpu.memory_space<vmem>>, vector<256x128xf32>
    tpu.vector_store %arg7[%c0_134, %c0_135], %154 {strides = array<i32>} : memref<256x128xf32, #tpu.memory_space<vmem>>, vector<256x128xf32>,
    %156 = vector.extract_strided_slice %117 {offsets = [16, 0], sizes = [256, 128], strides = [1, 1]} : vector<288x128xf32> to vector<256x128xf32>
    %157 = arith.truncf %156 : vector<256x128xf32> to vector<256x128xbf16>
    %c1_136 = arith.constant 1 : index
    %c2_137 = arith.constant 2 : index
    %c0_138 = arith.constant 0 : index
    %c0_139 = arith.constant 0 : index
    %158 = vector.load %arg3[%c1_136, %c2_137, %c0_138, %c0_139] : memref<3x3x128x128xbf16, #tpu.memory_space<vmem>>, vector<1x1x128x128xbf16>
    %159 = vector.shape_cast %158 : vector<1x1x128x128xbf16> to vector<128x128xbf16>
    %cst_140 = arith.constant dense<0.000000e+00> : vector<256x128xf32>
    %160 = tpu.matmul %157, %159, %cst_140 {dimension_numbers = #tpu.dot_dimension_numbers<[1], [0], [0], [1], [0, 0, 1, 1], [], []>} : vector<256x128xbf16>, vector<128x128xbf16>, vector<256x128xf32> -> vector<256x128xf32>
    %c0_141 = arith.constant 0 : index
    %c0_142 = arith.constant 0 : index
    %161 = vector.load %arg7[%c0_141, %c0_142] : memref<256x128xf32, #tpu.memory_space<vmem>>, vector<256x128xf32>
    %162 = arith.addf %161, %160 : vector<256x128xf32>
    %c0_143 = arith.constant 0 : index
    %c0_144 = arith.constant 0 : index
    %163 = vector.load %arg7[%c0_143, %c0_144] : memref<256x128xf32, #tpu.memory_space<vmem>>, vector<256x128xf32>
    tpu.vector_store %arg7[%c0_143, %c0_144], %162 {strides = array<i32>} : memref<256x128xf32, #tpu.memory_space<vmem>>, vector<256x128xf32>,
    %164 = vector.extract_strided_slice %108 {offsets = [32, 0], sizes = [256, 128], strides = [1, 1]} : vector<288x128xf32> to vector<256x128xf32>
    %165 = arith.truncf %164 : vector<256x128xf32> to vector<256x128xbf16>
    %c2_145 = arith.constant 2 : index
    %c0_146 = arith.constant 0 : index
    %c0_147 = arith.constant 0 : index
    %c0_148 = arith.constant 0 : index
    %166 = vector.load %arg3[%c2_145, %c0_146, %c0_147, %c0_148] : memref<3x3x128x128xbf16, #tpu.memory_space<vmem>>, vector<1x1x128x128xbf16>
    %167 = vector.shape_cast %166 : vector<1x1x128x128xbf16> to vector<128x128xbf16>
    %cst_149 = arith.constant dense<0.000000e+00> : vector<256x128xf32>
    %168 = tpu.matmul %165, %167, %cst_149 {dimension_numbers = #tpu.dot_dimension_numbers<[1], [0], [0], [1], [0, 0, 1, 1], [], []>} : vector<256x128xbf16>, vector<128x128xbf16>, vector<256x128xf32> -> vector<256x128xf32>
    %c0_150 = arith.constant 0 : index
    %c0_151 = arith.constant 0 : index
    %169 = vector.load %arg7[%c0_150, %c0_151] : memref<256x128xf32, #tpu.memory_space<vmem>>, vector<256x128xf32>
    %170 = arith.addf %169, %168 : vector<256x128xf32>
    %c0_152 = arith.constant 0 : index
    %c0_153 = arith.constant 0 : index
    %171 = vector.load %arg7[%c0_152, %c0_153] : memref<256x128xf32, #tpu.memory_space<vmem>>, vector<256x128xf32>
    tpu.vector_store %arg7[%c0_152, %c0_153], %170 {strides = array<i32>} : memref<256x128xf32, #tpu.memory_space<vmem>>, vector<256x128xf32>,
    %172 = vector.extract_strided_slice %109 {offsets = [32, 0], sizes = [256, 128], strides = [1, 1]} : vector<288x128xf32> to vector<256x128xf32>
    %173 = arith.truncf %172 : vector<256x128xf32> to vector<256x128xbf16>
    %c2_154 = arith.constant 2 : index
    %c1_155 = arith.constant 1 : index
    %c0_156 = arith.constant 0 : index
    %c0_157 = arith.constant 0 : index
    %174 = vector.load %arg3[%c2_154, %c1_155, %c0_156, %c0_157] : memref<3x3x128x128xbf16, #tpu.memory_space<vmem>>, vector<1x1x128x128xbf16>
    %175 = vector.shape_cast %174 : vector<1x1x128x128xbf16> to vector<128x128xbf16>
    %cst_158 = arith.constant dense<0.000000e+00> : vector<256x128xf32>
    %176 = tpu.matmul %173, %175, %cst_158 {dimension_numbers = #tpu.dot_dimension_numbers<[1], [0], [0], [1], [0, 0, 1, 1], [], []>} : vector<256x128xbf16>, vector<128x128xbf16>, vector<256x128xf32> -> vector<256x128xf32>
    %c0_159 = arith.constant 0 : index
    %c0_160 = arith.constant 0 : index
    %177 = vector.load %arg7[%c0_159, %c0_160] : memref<256x128xf32, #tpu.memory_space<vmem>>, vector<256x128xf32>
    %178 = arith.addf %177, %176 : vector<256x128xf32>
    %c0_161 = arith.constant 0 : index
    %c0_162 = arith.constant 0 : index
    %179 = vector.load %arg7[%c0_161, %c0_162] : memref<256x128xf32, #tpu.memory_space<vmem>>, vector<256x128xf32>
    tpu.vector_store %arg7[%c0_161, %c0_162], %178 {strides = array<i32>} : memref<256x128xf32, #tpu.memory_space<vmem>>, vector<256x128xf32>,
    %180 = vector.extract_strided_slice %117 {offsets = [32, 0], sizes = [256, 128], strides = [1, 1]} : vector<288x128xf32> to vector<256x128xf32>
    %181 = arith.truncf %180 : vector<256x128xf32> to vector<256x128xbf16>
    %c2_163 = arith.constant 2 : index
    %c2_164 = arith.constant 2 : index
    %c0_165 = arith.constant 0 : index
    %c0_166 = arith.constant 0 : index
    %182 = vector.load %arg3[%c2_163, %c2_164, %c0_165, %c0_166] : memref<3x3x128x128xbf16, #tpu.memory_space<vmem>>, vector<1x1x128x128xbf16>
    %183 = vector.shape_cast %182 : vector<1x1x128x128xbf16> to vector<128x128xbf16>
    %cst_167 = arith.constant dense<0.000000e+00> : vector<256x128xf32>
    %184 = tpu.matmul %181, %183, %cst_167 {dimension_numbers = #tpu.dot_dimension_numbers<[1], [0], [0], [1], [0, 0, 1, 1], [], []>} : vector<256x128xbf16>, vector<128x128xbf16>, vector<256x128xf32> -> vector<256x128xf32>
    %c0_168 = arith.constant 0 : index
    %c0_169 = arith.constant 0 : index
    %185 = vector.load %arg7[%c0_168, %c0_169] : memref<256x128xf32, #tpu.memory_space<vmem>>, vector<256x128xf32>
    %186 = arith.addf %185, %184 : vector<256x128xf32>
    %c0_170 = arith.constant 0 : index
    %c0_171 = arith.constant 0 : index
    %187 = vector.load %arg7[%c0_170, %c0_171] : memref<256x128xf32, #tpu.memory_space<vmem>>, vector<256x128xf32>
    tpu.vector_store %arg7[%c0_170, %c0_171], %186 {strides = array<i32>} : memref<256x128xf32, #tpu.memory_space<vmem>>, vector<256x128xf32>,
    %c0_172 = arith.constant 0 : index
    %c0_173 = arith.constant 0 : index
    %188 = vector.load %arg7[%c0_172, %c0_173] : memref<256x128xf32, #tpu.memory_space<vmem>>, vector<256x128xf32>
    %c0_174 = arith.constant 0 : index
    %c0_175 = arith.constant 0 : index
    %189 = vector.load %arg5[%c0_174, %c0_175] : memref<1x128xf32, #tpu.memory_space<vmem>>, vector<1x128xf32>
    %190 = vector.broadcast %189 : vector<1x128xf32> to vector<256x128xf32>
    %191 = arith.addf %188, %190 : vector<256x128xf32>
    %192 = vector.shape_cast %2 : vector<16x16x128xf32> to vector<256x128xf32>
    %193 = arith.addf %191, %192 : vector<256x128xf32>
    %cst_176 = arith.constant 0.000000e+00 : f32
    %194 = vector.broadcast %cst_176 : f32 to vector<256x128xf32>
    %195 = arith.maximumf %193, %194 : vector<256x128xf32>
    %196 = vector.shape_cast %195 : vector<256x128xf32> to vector<16x16x128xf32>
    %c0_177 = arith.constant 0 : index
    %c0_178 = arith.constant 0 : index
    %c0_179 = arith.constant 0 : index
    %c0_180 = arith.constant 0 : index
    %197 = vector.load %arg6[%c0_177, %c0_178, %c0_179, %c0_180] : memref<1x16x16x128xf32, #tpu.memory_space<vmem>>, vector<1x16x16x128xf32>
    %198 = vector.shape_cast %197 : vector<1x16x16x128xf32> to vector<16x16x128xf32>
    %199 = vector.shape_cast %196 : vector<16x16x128xf32> to vector<1x16x16x128xf32>
    tpu.vector_store %arg6[%c0_177, %c0_178, %c0_179, %c0_180], %199 {strides = array<i32>} : memref<1x16x16x128xf32, #tpu.memory_space<vmem>>, vector<1x16x16x128xf32>,
    return
  }
  func.func @transform_0(%arg0: i32) -> (i32, i32, i32, i32) {
    %c0_i32 = arith.constant 0 : i32
    %c0_i32_0 = arith.constant 0 : i32
    %c0_i32_1 = arith.constant 0 : i32
    %c0_i32_2 = arith.constant 0 : i32
    return %arg0, %c0_i32, %c0_i32_0, %c0_i32_1 : i32, i32, i32, i32
  }
  func.func @transform_1(%arg0: i32) -> (i32, i32, i32, i32) {
    %c0_i32 = arith.constant 0 : i32
    %c0_i32_0 = arith.constant 0 : i32
    %c0_i32_1 = arith.constant 0 : i32
    %c0_i32_2 = arith.constant 0 : i32
    %c0_i32_3 = arith.constant 0 : i32
    return %c0_i32, %c0_i32_0, %c0_i32_1, %c0_i32_2 : i32, i32, i32, i32
  }
  func.func @transform_2(%arg0: i32) -> (i32, i32, i32, i32) {
    %c0_i32 = arith.constant 0 : i32
    %c0_i32_0 = arith.constant 0 : i32
    %c0_i32_1 = arith.constant 0 : i32
    %c0_i32_2 = arith.constant 0 : i32
    %c0_i32_3 = arith.constant 0 : i32
    return %c0_i32, %c0_i32_0, %c0_i32_1, %c0_i32_2 : i32, i32, i32, i32
  }
  func.func @transform_3(%arg0: i32) -> (i32, i32) {
    %c0_i32 = arith.constant 0 : i32
    %c0_i32_0 = arith.constant 0 : i32
    %c0_i32_1 = arith.constant 0 : i32
    return %c0_i32, %c0_i32_0 : i32, i32
  }
  func.func @transform_4(%arg0: i32) -> (i32, i32) {
    %c0_i32 = arith.constant 0 : i32
    %c0_i32_0 = arith.constant 0 : i32
    %c0_i32_1 = arith.constant 0 : i32
    return %c0_i32, %c0_i32_0 : i32, i32
  }
  func.func @transform_5(%arg0: i32) -> (i32, i32, i32, i32) {
    %c0_i32 = arith.constant 0 : i32
    %c0_i32_0 = arith.constant 0 : i32
    %c0_i32_1 = arith.constant 0 : i32
    %c0_i32_2 = arith.constant 0 : i32
    return %arg0, %c0_i32, %c0_i32_0, %c0_i32_1 : i32, i32, i32, i32
  }
}

</mosaic_0001>

<bundles_post_ra>
// kernel: basic_block.1
= control target key start
LH: loop header
LB: loop body
LE: loop exit
PB: predicated region body
PF: predicated region fallthrough
CT: control target
= control target key end

     0   :  { %s6681_s18 = smov 0   ;;  %s8943_s0 = inlined_call_operand.vmem [shape: bf16[2,16,16,128], index: 0, kind: input, shape index: {}]   ;;  %s8944_s1 = inlined_call_operand.vmem [shape: bf16[3,3,128,128], index: 1, kind: input, shape index: {}]   ;;  %s8945_s2 = inlined_call_operand.vmem [shape: bf16[3,3,128,128], index: 2, kind: input, shape index: {}]   ;;  %s8946_s3 = inlined_call_operand.vmem [shape: f32[1,128], index: 3, kind: input, shape index: {}]   ;;  %s8947_s4 = inlined_call_operand.vmem [shape: f32[1,128], index: 4, kind: input, shape index: {}]   ;;  %s8948_s5 = inlined_call_operand.vmem [shape: f32[2,16,16,128], index: 5, kind: output, shape index: {}]  }
   0x1 LB: > { %s5486_s19 = sadd.s32 4294967295, %s6646_s18   ;;  %p5490_p0 = scmp.ge.s32.totalorder %s6646_s18, 1  ;;  %s6646_s18 = sphi %s6681_s18, %s15_s18  }
   0x2   : > { %p187_p1 = scmp.lt.s32.totalorder %s6646_s18, 3 }
   0x4   : > { %p188_p2 = pnand %p5490_p0, %p187_p1 }
   0x6   : > { %191 = sbr.rel (%p188_p2) target bundleno = 1462 (0x5b6), region = 40 }
   0xb   : > { %v6380_v0 = vld [vmem:[%s8944_s1 + $0x38] sm:$0xff]  ;;  %p215_p3 = scmp.lt.s32.totalorder %s5486_s19, 1  ;;  %v6379_v2 = vld [vmem:[%s8944_s1 + $0x30] sm:$0xff]  ;;  %v289_v4 = vlaneseq  ;;  %v6378_v5 = vld [vmem:[%s8944_s1 + $0x28] sm:$0xff]  ;;  %v8949_v41 = vmov 0.0|0.0   ;;  %vm6649_vm3 = vmmov 1  }
   0xc   : > { %v6388_v1 = vld [vmem:[%s8944_s1 + $0x78] sm:$0xff]  ;;  %580 = vmatpush.bf16.msra.mxu0 %v6380_v0  ;;  %6596 = vmatpush.bf16.msra.mxu2 %v6380_v0  ;;  %v6387_v3 = vld [vmem:[%s8944_s1 + $0x70] sm:$0xff]  ;;  %v6386_v6 = vld [vmem:[%s8944_s1 + $0x68] sm:$0xff]  ;;  %v9071_v61 = vmov 0 }
   0xd   : > { %s9299_s19 = smov (!%p215_p3, %s5486_s19), 1  ;;  %6604 = vmatpush.bf16.msra.mxu3 %v6388_v1  ;;  %782 = vmatpush.bf16.msra.mxu1 %v6388_v1  ;;  %v6710_v7 = vshrl.u32 %v289_v4, 7  ;;  %v6377_v8 = vld [vmem:[%s8944_s1 + $0x20] sm:$0xff]  ;;  %v6376_v13 = vld [vmem:[%s8944_s1 + $0x18] sm:$0xff]  ;;  %v6375_v17 = vld [vmem:[%s8944_s1 + $0x10] sm:$0xff] }
   0xe   : > { %s6371_s30 = sshll.u32 %s9299_s19, 7  ;;  %v6385_v9 = vld [vmem:[%s8944_s1 + $0x60] sm:$0xff]  ;;  %v6384_v14 = vld [vmem:[%s8944_s1 + $0x58] sm:$0xff]  ;;  %v6383_v19 = vld [vmem:[%s8944_s1 + $0x50] sm:$0xff]  ;;  %s6372_s26 = sshll.u32 %s9299_s19, 8 }
   0xf   : > { %s6715_s10 = scalar_lea.vmem %s8943_s0, %s6371_s30  ;;  %v6730_v12 = vadd.s32 8, %v6710_v7  ;;  %v6374_v22 = vld [vmem:[%s8944_s1 + $0x8] sm:$0xff]  ;;  %vm362_vm1 = vcmp.lt.s32.totalorder %v6710_v7, 1  ;;  %v6373_v27 = vld [vmem:[%s8944_s1] sm:$0xff]  ;;  %v6396_v31 = vld [vmem:[%s8944_s1 + $0xb8] sm:$0xff]  ;;  %vm396_vm5 = vcmp.eq.s32.totalorder %v6710_v7, 0  ;;  %s8804_s29 = scalar_lea.vmem %s8948_s5, %s6372_s26 }
  0x10   : > { %581 = vmatpush.bf16.msra.mxu0 %v6379_v2  ;;  %6597 = vmatpush.bf16.msra.mxu2 %v6379_v2  ;;  %v6724_v10 = vld [vmem:[%s6715_s10 + $0x30] sm:$0xff]   ;;  %v6727_v11 = vld [vmem:[%s6715_s10 + $0x38] sm:$0xff]   ;;  %v6382_v26 = vld [vmem:[%s8944_s1 + $0x48] sm:$0xff]  ;;  %vm466_vm6 = vcmp.lt.s32.totalorder %v6710_v7, 7 }
  0x11   : > { %6605 = vmatpush.bf16.msra.mxu3 %v6387_v3  ;;  %783 = vmatpush.bf16.msra.mxu1 %v6387_v3  ;;  %9061 = vst [vmem:[#allocation3_spill] sm:$0xff] %v6730_v12  ;;  %v6739_v15 = vunpack.c.h.bf16 %v6724_v10  ;;  %v6742_v16 = vunpack.c.h.bf16 %v6727_v11  ;;  %vm293_vm0 = vcmp.eq.s32.totalorder %v6730_v12, 15  ;;  %v6749_v18 = vunpack.c.l.bf16 %v6727_v11  ;;  %v6381_v30 = vld [vmem:[%s8944_s1 + $0x40] sm:$0xff]  ;;  %v6404_v32 = vld [vmem:[%s8944_s1 + $0xf8] sm:$0xff]  ;;  %v6395_v39 = vld [vmem:[%s8944_s1 + $0xb0] sm:$0xff] }
  0x12   : > { %v6790_v33 = vld [vmem:[%s6715_s10] sm:$0xff]   ;;  %v6412_v36 = vld [vmem:[%s8944_s1 + $0x138] sm:$0xff]  ;;  %v6403_v40 = vld [vmem:[%s8944_s1 + $0xf0] sm:$0xff] }
  0x13   : > { %9062 = vst [vmem:[#allocation4_spill] sm:$0xff] %v6739_v15  ;;  %v6757_v20 = vsel %vm293_vm0, 0.0, %v6739_v15  ;;  %v313_v21 = vsel %vm293_vm0, 0.0, %v6742_v16  ;;  %v344_v24 = vrot.slane %v6749_v18, 7  ;;  %v6793_v34 = vld [vmem:[%s6715_s10 + $0x40] sm:$0xff]   ;;  %v6801_v37 = vunpack.c.h.bf16 %v6790_v33  ;;  %v6411_v46 = vld [vmem:[%s8944_s1 + $0x130] sm:$0xff]  ;;  %vm5527_vm2 = vmneg %vm362_vm1 }
  0x14   : > { %582 = vmatpush.bf16.msra.mxu0 %v6378_v5  ;;  %6598 = vmatpush.bf16.msra.mxu2 %v6378_v5  ;;  %9063 = vst [vmem:[#allocation5_spill] sm:$0xff] %v6742_v16  ;;  %v8951_v23 = vrot.slane %v6757_v20, 7  ;;  %v345_v25 = vrot.slane %v313_v21, 7  ;;  %v6804_v38 = vunpack.c.h.bf16 %v6793_v34  ;;  %v6817_v42 = vunpack.c.l.bf16 %v6790_v33  ;;  %v6394_v47 = vld [vmem:[%s8944_s1 + $0xa8] sm:$0xff]  ;;  %vm6861_vm4 = vmpackc.low %vm6649_vm3, %vm5527_vm2  ;;  %v6393_v2 = vld [vmem:[%s8944_s1 + $0xa0] sm:$0xff] }
  0x15   : > { %6606 = vmatpush.bf16.msra.mxu3 %v6386_v6  ;;  %784 = vmatpush.bf16.msra.mxu1 %v6386_v6  ;;  %9064 = vst [vmem:[#allocation6_spill] sm:$0xff] %v6749_v18  ;;  %v6820_v43 = vunpack.c.l.bf16 %v6793_v34  ;;  %v299_v44 = vsel %vm293_vm0, 0.0, %v6801_v37  ;;  %v6402_v48 = vld [vmem:[%s8944_s1 + $0xe8] sm:$0xff]  ;;  %v9072_v61 = vsel %vm6861_vm4, 4294967295, %v9071_v61  ;;  %v6401_v3 = vld [vmem:[%s8944_s1 + $0xe0] sm:$0xff]  ;;  %vm5627_vm7 = vmneg %vm466_vm6 }
  0x16   : > { %v380_v28 = vsel %vm362_vm1, %v344_v24, %v345_v25  ;;  %v381_v29 = vsel %vm362_vm1, %v8951_v23, %v344_v24  ;;  %9066 = vst [vmem:[#allocation8_spill] sm:$0xff] %v6801_v37  ;;  %v315_v45 = vsel %vm293_vm0, 0.0, %v6804_v38  ;;  %v330_v49 = vrot.slane %v6817_v42, 7  ;;  %v6410_v53 = vld [vmem:[%s8944_s1 + $0x128] sm:$0xff]  ;;  %v6409_v4 = vld [vmem:[%s8944_s1 + $0x120] sm:$0xff]  ;;  %v6909_v24 = vld [vmem:[%s6715_s10 + $0x10] sm:$0xff]  }
  0x17   : > { %v6795_v35 = vpack.c.bf16 %v380_v28, %v381_v29  ;;  %9067 = vst [vmem:[#allocation9_spill] sm:$0xff] %v6804_v38  ;;  %v331_v50 = vrot.slane %v299_v44, 7  ;;  %v346_v51 = vrot.slane %v6820_v43, 7  ;;  %v347_v52 = vrot.slane %v315_v45, 7  ;;  %v6851_v57 = vld [vmem:[%s6715_s10 + $0x8] sm:$0xff]   ;;  %v6413_v12 = vld [vmem:[%s8944_s1 + $0x140] sm:$0xff]  ;;  %vm7210_vm8 = vmpackc.low %vm5627_vm7, %vm6649_vm3 }
  0x18   : > { %583 = vmatpush.bf16.msra.mxu0 %v6377_v8  ;;  %6599 = vmatpush.bf16.msra.mxu2 %v6377_v8  ;;  %9068 = vst [vmem:[#allocation10_spill] sm:$0xff] %v6817_v42  ;;  %v6854_v58 = vld [vmem:[%s6715_s10 + $0x48] sm:$0xff]   ;;  %v6866_v62 = vunpack.c.h.bf16 %v6851_v57  ;;  %v6878_v0 = vunpack.c.l.bf16 %v6851_v57  ;;  %v6919_v28 = vunpack.c.h.bf16 %v6909_v24  ;;  %vm7634_vm9 = vmpackc.low %vm466_vm6, %vm6649_vm3 }
  0x19   : > { %6607 = vmatpush.bf16.msra.mxu3 %v6385_v9  ;;  %785 = vmatpush.bf16.msra.mxu1 %v6385_v9  ;;  %9065 = vst [vmem:[#allocation7_spill] sm:$0xff] %v6795_v35  ;;  %v394_v54 = vsel %vm362_vm1, %v330_v49, %v331_v50  ;;  %v378_v55 = vsel %vm362_vm1, %v346_v51, %v347_v52  ;;  %v6869_v63 = vunpack.c.h.bf16 %v6854_v58  ;;  %v6881_v1 = vunpack.c.l.bf16 %v6854_v58  ;;  %vm8015_vm10 = vmpackc.low %vm6649_vm3, %vm362_vm1 }
  0x1a   : > { %9069 = vst [vmem:[#allocation11_spill] sm:$0xff] %v6820_v43  ;;  %v379_v56 = vsel %vm362_vm1, %v345_v25, %v346_v51  ;;  %v6856_v59 = vpack.c.bf16 %v394_v54, %v330_v49  ;;  %v301_v5 = vsel %vm293_vm0, 0.0, %v6866_v62  ;;  %v332_v8 = vrot.slane %v6878_v0, 7  ;;  %v6912_v25 = vld [vmem:[%s6715_s10 + $0x50] sm:$0xff]   ;;  %v6963_v54 = vld [vmem:[%s6715_s10 + $0x58] sm:$0xff]  }
  0x1b   : > { %v6858_v60 = vpack.c.bf16 %v378_v55, %v379_v56  ;;  %9073 = vst [vmem:[#allocation13_spill] sm:$0xff] %v9072_v61  ;;  %v317_v6 = vsel %vm293_vm0, 0.0, %v6869_v63  ;;  %v333_v9 = vrot.slane %v301_v5, 7  ;;  %v6922_v29 = vunpack.c.h.bf16 %v6912_v25 }
  0x1c   : > { %584 = vmatpush.bf16.msra.mxu0 %v6376_v13  ;;  %6600 = vmatpush.bf16.msra.mxu2 %v6376_v13  ;;  %9074 = vst [vmem:[#allocation14_spill] sm:$0xff] %v6866_v62  ;;  %v348_v13 = vrot.slane %v6881_v1, 7  ;;  %v6983_v5 = vunpack.c.l.bf16 %v6963_v54 }
  0x1d   : > { %6608 = vmatpush.bf16.msra.mxu3 %v6384_v14  ;;  %786 = vmatpush.bf16.msra.mxu1 %v6384_v14  ;;  %9070 = vst [vmem:[#allocation12_spill] sm:$0xff] %v6858_v60  ;;  %v349_v14 = vrot.slane %v317_v6, 7  ;;  %v319_v44 = vsel %vm293_vm0, 0.0, %v6922_v29  ;;  %v6391_v6 = vld [vmem:[%s8944_s1 + $0x90] sm:$0xff] }
  0x1e   : > { %9075 = vst [vmem:[#allocation15_spill] sm:$0xff] %v6869_v63 }
  0x1f   : > { %9076 = vst [vmem:[#allocation16_spill] sm:$0xff] %v6878_v0  ;;  %v376_v21 = vsel %vm362_vm1, %v348_v13, %v349_v14 }
  0x20   : > { %585 = vmatpush.bf16.msra.mxu0 %v6375_v17  ;;  %6601 = vmatpush.bf16.msra.mxu2 %v6375_v17  ;;  %9077 = vst [vmem:[#allocation17_spill] sm:$0xff] %v6881_v1  ;;  %v392_v17 = vsel %vm362_vm1, %v332_v8, %v333_v9 }
  0x21   : > { %6609 = vmatpush.bf16.msra.mxu3 %v6383_v19  ;;  %787 = vmatpush.bf16.msra.mxu1 %v6383_v19  ;;  %v393_v19 = vsel %vm362_vm1, %v331_v50, %v332_v8  ;;  %9078 = vst [vmem:[#allocation18_spill] sm:$0xff] %v6919_v28  ;;  %v6399_v8 = vld [vmem:[%s8944_s1 + $0xd0] sm:$0xff] }
  0x22   : > { %9079 = vst [vmem:[#allocation19_spill] sm:$0xff] %v6922_v29 }
  0x23   : > { %9082 = vst [vmem:[#allocation22_spill] sm:$0xff] %v6963_v54 }
  0x24   : > { %586 = vmatpush.bf16.msra.mxu0 %v6374_v22  ;;  %6602 = vmatpush.bf16.msra.mxu2 %v6374_v22  ;;  %v377_v22 = vsel %vm362_vm1, %v347_v52, %v348_v13  ;;  %9086 = vst [vmem:[#allocation26_spill] sm:$0xff] %v6983_v5 }
  0x25   : > { %6610 = vmatpush.bf16.msra.mxu3 %v6382_v26  ;;  %788 = vmatpush.bf16.msra.mxu1 %v6382_v26  ;;  %v6914_v26 = vpack.c.bf16 %v392_v17, %v393_v19 }
  0x28   : > { %587 = vmatpush.bf16.msra.mxu0 %v6373_v27  ;;  %6603 = vmatpush.bf16.msra.mxu2 %v6373_v27  ;;  %v6916_v27 = vpack.c.bf16 %v376_v21, %v377_v22  ;;  %v352_v21 = vrot.slane %v6983_v5, 7 }
  0x29   : > { %6611 = vmatpush.bf16.msra.mxu3 %v6381_v30  ;;  %789 = vmatpush.bf16.msra.mxu1 %v6381_v30  ;;  %v6929_v30 = vunpack.c.l.bf16 %v6909_v24 }
  0x2b   : > { %588 = vmatmul.bf16.vlgmr.msra.gmra.mxu0 %v8949_v41  ;;  %628 = vmatmul.bf16.vlgmr.msra.gmra.mxu2 %v6795_v35  ;;  %9080 = vst [vmem:[#allocation20_spill] sm:$0xff] %v6929_v30  ;;  %v334_v45 = vrot.slane %v6929_v30, 7 }
  0x2c   : > { %1048 = vmatpush.bf16.msrb.mxu2 %v6396_v31  ;;  %830 = vmatmul.bf16.vlgmr.msra.gmra.mxu3 %v6727_v11  ;;  %v6932_v31 = vunpack.c.l.bf16 %v6912_v25 }
  0x2d   : > { %1299 = vmatpush.bf16.msrb.mxu3 %v6404_v32  ;;  %790 = vmatmul.bf16.vlgmr.msra.gmra.mxu1 %v8949_v41  ;;  %v6392_v32 = vld [vmem:[%s8944_s1 + $0x98] sm:$0xff]  ;;  %v391_v50 = vsel %vm362_vm1, %v333_v9, %v334_v45  ;;  %v6407_v9 = vld [vmem:[%s8944_s1 + $0x110] sm:$0xff] }
  0x2e   : > { %1550 = vmatpush.bf16.msrb.mxu0 %v6412_v36  ;;  %9081 = vst [vmem:[#allocation21_spill] sm:$0xff] %v6932_v31  ;;  %v6400_v36 = vld [vmem:[%s8944_s1 + $0xd8] sm:$0xff] }
  0x30   : > { %1049 = vmatpush.bf16.msrb.mxu2 %v6395_v39  ;;  %v6408_v39 = vld [vmem:[%s8944_s1 + $0x118] sm:$0xff] }
  0x31   : > { %1300 = vmatpush.bf16.msrb.mxu3 %v6403_v40  ;;  %v303_v40 = vsel %vm293_vm0, 0.0, %v6919_v28 }
  0x32   : > { %1551 = vmatpush.bf16.msrb.mxu0 %v6411_v46  ;;  %v335_v46 = vrot.slane %v303_v40, 7 }
  0x34   : > { %1050 = vmatpush.bf16.msrb.mxu2 %v6394_v47  ;;  %v350_v47 = vrot.slane %v6932_v31, 7  ;;  %v390_v49 = vsel %vm362_vm1, %v334_v45, %v335_v46  ;;  %v7014_v45 = vld [vmem:[%s6715_s10 + $0x60] sm:$0xff]  }
  0x35   : > { %1301 = vmatpush.bf16.msrb.mxu3 %v6402_v48  ;;  %v351_v48 = vrot.slane %v319_v44, 7  ;;  %v6965_v55 = vpack.c.bf16 %v390_v49, %v391_v50  ;;  %v7011_v44 = vld [vmem:[%s6715_s10 + $0x20] sm:$0xff]   ;;  %9087 = vst [vmem:[#allocation27_spill] sm:$0xff] %v7014_v45 }
  0x36   : > { %1552 = vmatpush.bf16.msrb.mxu0 %v6410_v53  ;;  %v375_v52 = vsel %vm362_vm1, %v349_v14, %v350_v47  ;;  %v6960_v53 = vld [vmem:[%s6715_s10 + $0x18] sm:$0xff]   ;;  %v7021_v50 = vunpack.c.h.bf16 %v7011_v44 }
  0x37   : > { %v374_v51 = vsel %vm362_vm1, %v350_v47, %v351_v48  ;;  %v373_v40 = vsel %vm362_vm1, %v351_v48, %v352_v21  ;;  %v7034_v48 = vunpack.c.l.bf16 %v7014_v45 }
  0x38   : > { %1051 = vmatpush.bf16.msrb.mxu2 %v6393_v2  ;;  %v6967_v56 = vpack.c.bf16 %v374_v51, %v375_v52  ;;  %v6970_v2 = vunpack.c.h.bf16 %v6960_v53  ;;  %9090 = vst [vmem:[#allocation30_spill] sm:$0xff] %v7021_v50  ;;  %v7024_v51 = vunpack.c.h.bf16 %v7014_v45  ;;  %v6390_v52 = vld [vmem:[%s8944_s1 + $0x88] sm:$0xff] }
  0x39   : > { %1302 = vmatpush.bf16.msrb.mxu3 %v6401_v3  ;;  %v6973_v3 = vunpack.c.h.bf16 %v6963_v54  ;;  %9093 = vst [vmem:[#allocation33_spill] sm:$0xff] %v7034_v48 }
  0x3a   : > { %1553 = vmatpush.bf16.msrb.mxu0 %v6409_v4  ;;  %9083 = vst [vmem:[#allocation23_spill] sm:$0xff] %v6970_v2  ;;  %v6980_v4 = vunpack.c.l.bf16 %v6960_v53  ;;  %v305_v13 = vsel %vm293_vm0, 0.0, %v6970_v2 }
  0x3b   : > { %5530 = vmatmul.msk.bf16.gmra.mxu0 %vm6861_vm4, %v6856_v59  ;;  %633 = vmatmul.bf16.gmra.mxu2 %v6858_v60  ;;  %9084 = vst [vmem:[#allocation24_spill] sm:$0xff] %v6973_v3  ;;  %v321_v14 = vsel %vm293_vm0, 0.0, %v6973_v3  ;;  %v337_v19 = vrot.slane %v305_v13, 7  ;;  %v323_v13 = vsel %vm293_vm0, 0.0, %v7024_v51 }
  0x3c   : > { %835 = vmatmul.bf16.gmra.mxu3 %v6793_v34  ;;  %1052 = vmatpush.bf16.msrb.mxu2 %v6392_v32  ;;  %9085 = vst [vmem:[#allocation25_spill] sm:$0xff] %v6980_v4  ;;  %v336_v17 = vrot.slane %v6980_v4, 7  ;;  %v353_v22 = vrot.slane %v321_v14, 7  ;;  %v6420_v14 = vld [vmem:[%s8944_s1 + $0x178] sm:$0xff] }
  0x3d   : > { %795 = vmatmul.bf16.gmra.mxu1 %v6790_v33  ;;  %1303 = vmatpush.bf16.msrb.mxu3 %v6400_v36  ;;  %9091 = vst [vmem:[#allocation31_spill] sm:$0xff] %v7024_v51 }
  0x3e   : > { %1554 = vmatpush.bf16.msrb.mxu0 %v6408_v39  ;;  %v388_v32 = vsel %vm362_vm1, %v336_v17, %v337_v19  ;;  %v389_v36 = vsel %vm362_vm1, %v335_v46, %v336_v17  ;;  %v372_v39 = vsel %vm362_vm1, %v352_v21, %v353_v22  ;;  %v7031_v46 = vunpack.c.l.bf16 %v7011_v44  ;;  %1801 = vmatpush.bf16.msrb.mxu1 %v6420_v14 }
  0x3f   : > { %v7016_v47 = vpack.c.bf16 %v388_v32, %v389_v36  ;;  %v7018_v49 = vpack.c.bf16 %v372_v39, %v373_v40  ;;  %v354_v32 = vrot.slane %v7034_v48, 7  ;;  %v355_v36 = vrot.slane %v323_v13, 7 }
  0x40   : > { %1053 = vmatpush.bf16.msrb.mxu2 %v6391_v6  ;;  %9092 = vst [vmem:[#allocation32_spill] sm:$0xff] %v7031_v46  ;;  %v6398_v6 = vld [vmem:[%s8944_s1 + $0xc8] sm:$0xff]  ;;  %v338_v17 = vrot.slane %v7031_v46, 7 }
  0x41   : > { %1304 = vmatpush.bf16.msrb.mxu3 %v6399_v8  ;;  %9088 = vst [vmem:[#allocation28_spill] sm:$0xff] %v7016_v47  ;;  %v6406_v8 = vld [vmem:[%s8944_s1 + $0x108] sm:$0xff]  ;;  %v370_v41 = vsel %vm362_vm1, %v354_v32, %v355_v36 }
  0x42   : > { %1555 = vmatpush.bf16.msrb.mxu0 %v6407_v9  ;;  %9089 = vst [vmem:[#allocation29_spill] sm:$0xff] %v7018_v49  ;;  %v307_v9 = vsel %vm293_vm0, 0.0, %v7021_v50  ;;  %v387_v40 = vsel %vm362_vm1, %v337_v19, %v338_v17  ;;  %v6419_v19 = vld [vmem:[%s8944_s1 + $0x170] sm:$0xff] }
  0x43   : > { %v339_v21 = vrot.slane %v307_v9, 7  ;;  %1802 = vmatpush.bf16.msrb.mxu1 %v6419_v19  ;;  %v6417_v19 = vld [vmem:[%s8944_s1 + $0x160] sm:$0xff] }
  0x44   : > { %1054 = vmatpush.bf16.msrb.mxu2 %v6390_v52  ;;  %v371_v52 = vsel %vm362_vm1, %v353_v22, %v354_v32  ;;  %v6397_v32 = vld [vmem:[%s8944_s1 + $0xc0] sm:$0xff] }
  0x45   : > { %1305 = vmatpush.bf16.msrb.mxu3 %v6398_v6  ;;  %v386_v39 = vsel %vm362_vm1, %v338_v17, %v339_v21  ;;  %v7065_v6 = vld [vmem:[%s6715_s10 + $0x28] sm:$0xff]   ;;  %v7072_v14 = vpack.c.bf16 %v370_v41, %v371_v52  ;;  %v6389_v17 = vld [vmem:[%s8944_s1 + $0x80] sm:$0xff] }
  0x46   : > { %1556 = vmatpush.bf16.msrb.mxu0 %v6406_v8  ;;  %v7068_v8 = vld [vmem:[%s6715_s10 + $0x68] sm:$0xff]   ;;  %v7070_v9 = vpack.c.bf16 %v386_v39, %v387_v40  ;;  %v7075_v13 = vunpack.c.h.bf16 %v7065_v6  ;;  %v7088_v41 = vunpack.c.l.bf16 %v7065_v6 }
  0x47   : > { %9094 = vst [vmem:[#allocation34_spill] sm:$0xff] %v7068_v8  ;;  %v7078_v23 = vunpack.c.h.bf16 %v7068_v8  ;;  %v7091_v22 = vunpack.c.l.bf16 %v7068_v8  ;;  %v6418_v52 = vld [vmem:[%s8944_s1 + $0x168] sm:$0xff] }
  0x48   : > { %9095 = vst [vmem:[#allocation35_spill] sm:$0xff] %v7072_v14  ;;  %v309_v39 = vsel %vm293_vm0, 0.0, %v7075_v13  ;;  %1055 = vmatpush.bf16.msrb.mxu2 %v6389_v17  ;;  %1803 = vmatpush.bf16.msrb.mxu1 %v6418_v52  ;;  %v6416_v52 = vld [vmem:[%s8944_s1 + $0x158] sm:$0xff] }
  0x49   : > { %9096 = vst [vmem:[#allocation36_spill] sm:$0xff] %v7075_v13  ;;  %v325_v40 = vsel %vm293_vm0, 0.0, %v7078_v23  ;;  %1306 = vmatpush.bf16.msrb.mxu3 %v6397_v32  ;;  %v341_v51 = vrot.slane %v309_v39, 7  ;;  %v7125_v32 = vld [vmem:[%s6715_s10 + $0x70] sm:$0xff]  }
  0x4a   : > { %9097 = vst [vmem:[#allocation37_spill] sm:$0xff] %v7078_v23 }
  0x4b   : > { %598 = vmatmul.bf16.gmra.mxu0 %v6914_v26  ;;  %638 = vmatmul.bf16.gmra.mxu2 %v6916_v27  ;;  %9098 = vst [vmem:[#allocation38_spill] sm:$0xff] %v7088_v41 }
  0x4c   : > { %840 = vmatmul.bf16.gmra.mxu3 %v6854_v58  ;;  %9099 = vst [vmem:[#allocation39_spill] sm:$0xff] %v7091_v22  ;;  %1804 = vmatpush.bf16.msrb.mxu1 %v6417_v19  ;;  %v6414_v19 = vld [vmem:[%s8944_s1 + $0x148] sm:$0xff] }
  0x4d   : > { %800 = vmatmul.bf16.gmra.mxu1 %v6851_v57 }
  0x50   : > { %1805 = vmatpush.bf16.msrb.mxu1 %v6416_v52 }
  0x5b   : > { %603 = vmatmul.bf16.gmra.mxu0 %v6965_v55  ;;  %643 = vmatmul.bf16.gmra.mxu2 %v6967_v56 }
  0x5c   : > { %845 = vmatmul.bf16.gmra.mxu3 %v6912_v25 }
  0x5d   : > { %805 = vmatmul.bf16.gmra.mxu1 %v6909_v24 }
  0x6b   : > { %608 = vmatmul.bf16.gmra.mxu0 %v7016_v47  ;;  %648 = vmatmul.bf16.gmra.mxu2 %v7018_v49  ;;  %v356_v49 = vrot.slane %v7091_v22, 7  ;;  %v7135_v22 = vunpack.c.h.bf16 %v7125_v32 }
  0x6c   : > { %850 = vmatmul.bf16.gmra.mxu3 %v6963_v54  ;;  %v357_v54 = vrot.slane %v325_v40, 7 }
  0x6d   : > { %810 = vmatmul.bf16.gmra.mxu1 %v6960_v53  ;;  %v369_v17 = vsel %vm362_vm1, %v355_v36, %v356_v49  ;;  %9102 = vst [vmem:[#allocation42_spill] sm:$0xff] %v7135_v22  ;;  %v7159_v36 = vsel %vm293_vm0, 0.0, %v7135_v22 }
  0x6e   : > { %v8976_v52 = vrot.slane %v7159_v36, 7 }
  0x7b   : > { %613 = vmatmul.bf16.gmra.mxu0 %v7070_v9  ;;  %653 = vmatmul.bf16.gmra.mxu2 %v7072_v14  ;;  %v6405_v14 = vld [vmem:[%s8944_s1 + $0x100] sm:$0xff] }
  0x7c   : > { %855 = vmatmul.bf16.gmra.mxu3 %v7014_v45  ;;  %1557 = vmatpush.bf16.msrb.mxu0 %v6405_v14  ;;  %v340_v45 = vrot.slane %v7088_v41, 7  ;;  %v368_v14 = vsel %vm362_vm1, %v356_v49, %v357_v54  ;;  %v6428_v49 = vld [vmem:[%s8944_s1 + $0x1b8] sm:$0xff] }
  0x7d   : > { %815 = vmatmul.bf16.gmra.mxu1 %v7011_v44  ;;  %v7129_v40 = vpack.c.bf16 %v368_v14, %v369_v17  ;;  %2052 = vmatpush.bf16.msra.mxu2 %v6428_v49  ;;  %v9105_v49 = vrot.slane %v6757_v20, 7  ;;  %v404_v20 = vsel %vm396_vm5, 0.0, %v6878_v0  ;;  %v6443_v0 = vld [vmem:[%s8944_s1 + $0x230] sm:$0xff] }
  0x7e   : > { %v384_v23 = vsel %vm362_vm1, %v340_v45, %v341_v51  ;;  %v385_v3 = vsel %vm362_vm1, %v339_v21, %v340_v45  ;;  %v6415_v45 = vld [vmem:[%s8944_s1 + $0x150] sm:$0xff]  ;;  %v6436_v21 = vld [vmem:[%s8944_s1 + $0x1f8] sm:$0xff] }
  0x7f   : > { %v7127_v39 = vpack.c.bf16 %v384_v23, %v385_v3  ;;  %9101 = vst [vmem:[#allocation41_spill] sm:$0xff] %v7129_v40  ;;  %v7145_v23 = vunpack.c.l.bf16 %v6724_v10  ;;  %v7148_v3 = vunpack.c.l.bf16 %v7125_v32  ;;  %1806 = vmatpush.bf16.msrb.mxu1 %v6415_v45  ;;  %2302 = vmatpush.bf16.msra.mxu3 %v6436_v21  ;;  %v6444_v45 = vld [vmem:[%s8944_s1 + $0x238] sm:$0xff] }
  0x80   : > { %2553 = vmatpush.bf16.msra.mxu0 %v6444_v45 }
  0x81   : > { %9100 = vst [vmem:[#allocation40_spill] sm:$0xff] %v7127_v39  ;;  %v342_v14 = vrot.slane %v7145_v23, 7  ;;  %v358_v17 = vrot.slane %v7148_v3, 7 }
  0x82   : > { %9103 = vst [vmem:[#allocation43_spill] sm:$0xff] %v7145_v23 }
  0x83   : > { %9104 = vst [vmem:[#allocation44_spill] sm:$0xff] %v7148_v3  ;;  %1807 = vmatpush.bf16.msrb.mxu1 %v6414_v19  ;;  %v382_v21 = vsel %vm362_vm1, %v342_v14, %v9105_v49  ;;  %v383_v22 = vsel %vm362_vm1, %v341_v51, %v342_v14  ;;  %v366_v19 = vsel %vm362_vm1, %v358_v17, %v8976_v52  ;;  %v436_v51 = vrot.slane %v404_v20, 1 }
  0x84   : > { %2554 = vmatpush.bf16.msra.mxu0 %v6443_v0 }
  0x87   : > { %1808 = vmatpush.bf16.msrb.mxu1 %v6413_v12  ;;  %v402_v12 = vsel %vm396_vm5, 0.0, %v6817_v42 }
  0x8b   : > { %618 = vmatmul.bf16.gmra.mxu0 %v7127_v39  ;;  %658 = vmatmul.bf16.gmra.mxu2 %v7129_v40  ;;  %v367_v40 = vsel %vm362_vm1, %v357_v54, %v358_v17  ;;  %v435_v54 = vrot.slane %v6801_v37, 1  ;;  %v8975_v17 = vmov 0.0  }
  0x8c   : > { %860 = vmatmul.bf16.gmra.mxu3 %v7068_v8  ;;  %v7185_v8 = vpack.c.bf16 %v382_v21, %v383_v22  ;;  %v7187_v3 = vpack.c.bf16 %v366_v19, %v367_v40  ;;  %v434_v22 = vrot.slane %v402_v12, 1  ;;  %v9106_v21 = vmov 0 }
  0x8d   : > { %820 = vmatmul.bf16.gmra.mxu1 %v7065_v6  ;;  %v497_v40 = vsel %vm466_vm6, %v435_v54, %v436_v51  ;;  %v9107_v21 = vsel %vm7210_vm8, 4294967295, %v9106_v21 }
  0x8e   : > { %v498_v14 = vsel %vm466_vm6, %v434_v22, %v435_v54  ;;  %v5629_v45 = vpack.c.bf16 %v434_v22, %v8975_v17  ;;  %9108 = vst [vmem:[#allocation45_spill] sm:$0xff] %v9107_v21  ;;  %v6427_v54 = vld [vmem:[%s8944_s1 + $0x1b0] sm:$0xff] }
  0x8f   : > { %v968_v19 = vpack.c.bf16 %v497_v40, %v498_v14  ;;  %v6435_v22 = vld [vmem:[%s8944_s1 + $0x1f0] sm:$0xff]  ;;  %v406_v14 = vsel %vm396_vm5, 0.0, %v6929_v30  ;;  %2053 = vmatpush.bf16.msra.mxu2 %v6427_v54 }
  0x90   : > { %2303 = vmatpush.bf16.msra.mxu3 %v6435_v22  ;;  %v438_v17 = vrot.slane %v406_v14, 1 }
  0x9b   : > { %623 = vmatmul.bf16.gmra.mxu0 %v7185_v8  ;;  %663 = vmatmul.bf16.gmra.mxu2 %v7187_v3 }
  0x9c   : > { %865 = vmatmul.bf16.gmra.mxu3 %v7125_v32 }
  0x9d   : > { %825 = vmatmul.bf16.gmra.mxu1 %v6724_v10 }
  0xa8   : > { %v589_v49 = vpop.f32.mrf.mxu0 }
  0xaa   : > { %v791_v20 = vpop.f32.mrf.mxu1 }
  0xab   : > { %v7214_v12 = vadd.f32 %v791_v20, %v589_v49  ;;  %5630 = vmatmul.msk.bf16.vlgmr.msrb.gmra.mxu2 %vm7210_vm8, %v5629_v45  ;;  %1558 = vmatmul.bf16.vlgmr.msrb.gmra.mxu0 %v6790_v33  ;;  %v437_v20 = vrot.slane %v6866_v62, 1 }
  0xac   : > { %5682 = vmatmul.msk.bf16.vlgmr.msrb.gmra.mxu3 %vm6861_vm4, %v6856_v59 }
  0xad   : > { %1809 = vmatmul.bf16.vlgmr.msrb.gmra.mxu1 %v968_v19  ;;  %v495_v30 = vsel %vm466_vm6, %v437_v20, %v438_v17  ;;  %v496_v54 = vsel %vm466_vm6, %v436_v51, %v437_v20  ;;  %v408_v51 = vsel %vm396_vm5, 0.0, %v6980_v4 }
  0xae   : > { %v629_v40 = vpop.f32.mrf.mxu2  ;;  %v7245_v62 = vpack.c.bf16 %v495_v30, %v496_v54 }
  0xaf   : > { %v831_v33 = vpop.f32.mrf.mxu3 }
  0xb0   : > { %v7231_v45 = vadd.f32 %v831_v33, %v629_v40  ;;  %v591_v59 = vpop.f32.mrf.mxu0 }
  0xb2   : > { %v793_v49 = vpop.f32.mrf.mxu1 }
  0xb3   : > { %v7234_v52 = vadd.f32 %v793_v49, %v591_v59 }
  0xb6   : > { %v631_v22 = vpop.f32.mrf.mxu2 }
  0xb7   : > { %v833_v40 = vpop.f32.mrf.mxu3 }
  0xb8   : > { %v7243_v33 = vadd.f32 %v833_v40, %v631_v22  ;;  %v594_v37 = vpop.f32.mrf.mxu0  ;;  %v440_v22 = vrot.slane %v408_v51, 1 }
  0xba   : > { %v796_v14 = vpop.f32.mrf.mxu1 }
  0xbb   : > { %v7247_v59 = vadd.f32 %v796_v14, %v594_v37  ;;  %1061 = vmatmul.bf16.gmra.mxu2 %v968_v19  ;;  %1563 = vmatmul.bf16.gmra.mxu0 %v6851_v57  ;;  %v439_v37 = vrot.slane %v6919_v28, 1 }
  0xbc   : > { %1312 = vmatmul.bf16.gmra.mxu3 %v6914_v26 }
  0xbd   : > { %1814 = vmatmul.bf16.gmra.mxu1 %v7245_v62  ;;  %v493_v57 = vsel %vm466_vm6, %v439_v37, %v440_v22  ;;  %v494_v40 = vsel %vm466_vm6, %v438_v17, %v439_v37  ;;  %v6426_v17 = vld [vmem:[%s8944_s1 + $0x1a8] sm:$0xff] }
  0xbe   : > { %v634_v0 = vpop.f32.mrf.mxu2  ;;  %2054 = vmatpush.bf16.msra.mxu2 %v6426_v17 }
  0xbf   : > { %v836_v49 = vpop.f32.mrf.mxu3 }
  0xc0   : > { %v7255_v20 = vadd.f32 %v836_v49, %v634_v0  ;;  %v596_v30 = vpop.f32.mrf.mxu0  ;;  %v7266_v0 = vpack.c.bf16 %v493_v57, %v494_v40  ;;  %v441_v57 = vrot.slane %v6970_v2, 1 }
  0xc2   : > { %v798_v54 = vpop.f32.mrf.mxu1  ;;  %v492_v17 = vsel %vm466_vm6, %v440_v22, %v441_v57  ;;  %v412_v22 = vsel %vm396_vm5, 0.0, %v7088_v41 }
  0xc3   : > { %v7258_v19 = vadd.f32 %v798_v54, %v596_v30 }
  0xc6   : > { %v636_v14 = vpop.f32.mrf.mxu2 }
  0xc7   : > { %v838_v42 = vpop.f32.mrf.mxu3 }
  0xc8   : > { %v7264_v21 = vadd.f32 %v838_v42, %v636_v14  ;;  %v599_v4 = vpop.f32.mrf.mxu0  ;;  %v6434_v42 = vld [vmem:[%s8944_s1 + $0x1e8] sm:$0xff] }
  0xc9   : > { %2304 = vmatpush.bf16.msra.mxu3 %v6434_v42 }
  0xca   : > { %v801_v49 = vpop.f32.mrf.mxu1 }
  0xcb   : > { %v7268_v61 = vadd.f32 %v801_v49, %v599_v4  ;;  %1066 = vmatmul.bf16.gmra.mxu2 %v7245_v62  ;;  %1568 = vmatmul.bf16.gmra.mxu0 %v6909_v24  ;;  %v410_v4 = vsel %vm396_vm5, 0.0, %v7031_v46  ;;  %v6442_v49 = vld [vmem:[%s8944_s1 + $0x228] sm:$0xff] }
  0xcc   : > { %1317 = vmatmul.bf16.gmra.mxu3 %v6965_v55  ;;  %v442_v40 = vrot.slane %v410_v4, 1  ;;  %2555 = vmatpush.bf16.msra.mxu0 %v6442_v49 }
  0xcd   : > { %1819 = vmatmul.bf16.gmra.mxu1 %v7266_v0 }
  0xce   : > { %v639_v51 = vpop.f32.mrf.mxu2  ;;  %v491_v46 = vsel %vm466_vm6, %v441_v57, %v442_v40 }
  0xcf   : > { %v841_v24 = vpop.f32.mrf.mxu3  ;;  %v7297_v2 = vpack.c.bf16 %v491_v46, %v492_v17 }
  0xd0   : > { %v7283_v30 = vadd.f32 %v841_v24, %v639_v51  ;;  %v601_v54 = vpop.f32.mrf.mxu0 }
  0xd2   : > { %9109 = vst [vmem:[#allocation46_spill] sm:$0xff] %v7283_v30  ;;  %v803_v37 = vpop.f32.mrf.mxu1 }
  0xd3   : > { %v7286_v14 = vadd.f32 %v803_v37, %v601_v54 }
  0xd6   : > { %v641_v42 = vpop.f32.mrf.mxu2 }
  0xd7   : > { %v843_v51 = vpop.f32.mrf.mxu3 }
  0xd8   : > { %v7295_v24 = vadd.f32 %v843_v51, %v641_v42  ;;  %v604_v28 = vpop.f32.mrf.mxu0  ;;  %v444_v42 = vrot.slane %v412_v22, 1 }
  0xda   : > { %9110 = vst [vmem:[#allocation47_spill] sm:$0xff] %v7295_v24  ;;  %v806_v4 = vpop.f32.mrf.mxu1 }
  0xdb   : > { %v7299_v54 = vadd.f32 %v806_v4, %v604_v28  ;;  %1071 = vmatmul.bf16.gmra.mxu2 %v7266_v0  ;;  %1573 = vmatmul.bf16.gmra.mxu0 %v6960_v53  ;;  %v443_v28 = vrot.slane %v7021_v50, 1 }
  0xdc   : > { %1322 = vmatmul.bf16.gmra.mxu3 %v7016_v47 }
  0xdd   : > { %1824 = vmatmul.bf16.gmra.mxu1 %v7297_v2  ;;  %v489_v53 = vsel %vm466_vm6, %v443_v28, %v444_v42  ;;  %v490_v4 = vsel %vm466_vm6, %v442_v40, %v443_v28  ;;  %v6425_v40 = vld [vmem:[%s8944_s1 + $0x1a0] sm:$0xff]  ;;  %v445_v28 = vrot.slane %v7075_v13, 1 }
  0xde   : > { %v644_v37 = vpop.f32.mrf.mxu2  ;;  %2055 = vmatpush.bf16.msra.mxu2 %v6425_v40 }
  0xdf   : > { %v846_v57 = vpop.f32.mrf.mxu3  ;;  %v488_v40 = vsel %vm466_vm6, %v444_v42, %v445_v28  ;;  %v416_v42 = vsel %vm396_vm5, 0.0, %v6749_v18 }
  0xe0   : > { %v7308_v49 = vadd.f32 %v846_v57, %v644_v37  ;;  %v606_v46 = vpop.f32.mrf.mxu0  ;;  %v7319_v37 = vpack.c.bf16 %v489_v53, %v490_v4 }
  0xe2   : > { %9111 = vst [vmem:[#allocation48_spill] sm:$0xff] %v7308_v49  ;;  %v808_v17 = vpop.f32.mrf.mxu1 }
  0xe3   : > { %v7311_v51 = vadd.f32 %v808_v17, %v606_v46 }
  0xe6   : > { %v646_v24 = vpop.f32.mrf.mxu2 }
  0xe7   : > { %v848_v30 = vpop.f32.mrf.mxu3 }
  0xe8   : > { %v7317_v47 = vadd.f32 %v848_v30, %v646_v24  ;;  %v609_v41 = vpop.f32.mrf.mxu0  ;;  %v6433_v30 = vld [vmem:[%s8944_s1 + $0x1e0] sm:$0xff] }
  0xe9   : > { %2305 = vmatpush.bf16.msra.mxu3 %v6433_v30 }
  0xea   : > { %v811_v57 = vpop.f32.mrf.mxu1 }
  0xeb   : > { %v7321_v49 = vadd.f32 %v811_v57, %v609_v41  ;;  %1076 = vmatmul.bf16.gmra.mxu2 %v7297_v2  ;;  %1578 = vmatmul.bf16.gmra.mxu0 %v7011_v44  ;;  %v414_v41 = vsel %vm396_vm5, 0.0, %v7145_v23  ;;  %v6441_v57 = vld [vmem:[%s8944_s1 + $0x220] sm:$0xff] }
  0xec   : > { %1327 = vmatmul.bf16.gmra.mxu3 %v7070_v9  ;;  %v446_v53 = vrot.slane %v414_v41, 1  ;;  %2556 = vmatpush.bf16.msra.mxu0 %v6441_v57 }
  0xed   : > { %1829 = vmatmul.bf16.gmra.mxu1 %v7319_v37 }
  0xee   : > { %v649_v24 = vpop.f32.mrf.mxu2  ;;  %v487_v23 = vsel %vm466_vm6, %v445_v28, %v446_v53 }
  0xef   : > { %v851_v44 = vpop.f32.mrf.mxu3  ;;  %v7350_v13 = vpack.c.bf16 %v487_v23, %v488_v40 }
  0xf0   : > { %v7336_v22 = vadd.f32 %v851_v44, %v649_v24  ;;  %v611_v46 = vpop.f32.mrf.mxu0 }
  0xf2   : > { %9112 = vst [vmem:[#allocation49_spill] sm:$0xff] %v7336_v22  ;;  %v813_v17 = vpop.f32.mrf.mxu1 }
  0xf3   : > { %v7339_v4 = vadd.f32 %v813_v17, %v611_v46 }
  0xf6   : > { %v651_v30 = vpop.f32.mrf.mxu2 }
  0xf7   : > { %v853_v24 = vpop.f32.mrf.mxu3 }
  0xf8   : > { %v7348_v44 = vadd.f32 %v853_v24, %v651_v30  ;;  %v614_v50 = vpop.f32.mrf.mxu0  ;;  %v448_v30 = vrot.slane %v416_v42, 1 }
  0xfa   : > { %9113 = vst [vmem:[#allocation50_spill] sm:$0xff] %v7348_v44  ;;  %v816_v41 = vpop.f32.mrf.mxu1 }
  0xfb   : > { %v7352_v46 = vadd.f32 %v816_v41, %v614_v50  ;;  %1081 = vmatmul.bf16.gmra.mxu2 %v7319_v37  ;;  %1583 = vmatmul.bf16.gmra.mxu0 %v7065_v6  ;;  %v447_v50 = vrot.slane %v6739_v15, 1 }
  0xfc   : > { %1332 = vmatmul.bf16.gmra.mxu3 %v7127_v39 }
  0xfd   : > { %1834 = vmatmul.bf16.gmra.mxu1 %v7350_v13  ;;  %v485_v6 = vsel %vm466_vm6, %v447_v50, %v448_v30  ;;  %v486_v41 = vsel %vm466_vm6, %v446_v53, %v447_v50  ;;  %v6424_v53 = vld [vmem:[%s8944_s1 + $0x198] sm:$0xff]  ;;  %v449_v50 = vrot.slane %v6742_v16, 1 }
  0xfe   : > { %v654_v17 = vpop.f32.mrf.mxu2  ;;  %2056 = vmatpush.bf16.msra.mxu2 %v6424_v53  ;;  %v6440_v53 = vld [vmem:[%s8944_s1 + $0x218] sm:$0xff] }
  0xff   : > { %v856_v28 = vpop.f32.mrf.mxu3  ;;  %v484_v15 = vsel %vm466_vm6, %v448_v30, %v449_v50  ;;  %2557 = vmatpush.bf16.msra.mxu0 %v6440_v53 }
 0x100   : > { %v7361_v57 = vadd.f32 %v856_v28, %v654_v17  ;;  %v616_v23 = vpop.f32.mrf.mxu0  ;;  %v7372_v17 = vpack.c.bf16 %v485_v6, %v486_v41 }
 0x102   : > { %9114 = vst [vmem:[#allocation51_spill] sm:$0xff] %v7361_v57  ;;  %v818_v40 = vpop.f32.mrf.mxu1 }
 0x103   : > { %v7364_v24 = vadd.f32 %v818_v40, %v616_v23 }
 0x106   : > { %v656_v44 = vpop.f32.mrf.mxu2 }
 0x107   : > { %v858_v22 = vpop.f32.mrf.mxu3 }
 0x108   : > { %v7370_v39 = vadd.f32 %v858_v22, %v656_v44  ;;  %v619_v18 = vpop.f32.mrf.mxu0  ;;  %v6432_v22 = vld [vmem:[%s8944_s1 + $0x1d8] sm:$0xff] }
 0x109   : > { %2306 = vmatpush.bf16.msra.mxu3 %v6432_v22 }
 0x10a   : > { %v821_v28 = vpop.f32.mrf.mxu1 }
 0x10b   : > { %v7374_v57 = vadd.f32 %v821_v28, %v619_v18  ;;  %1086 = vmatmul.bf16.gmra.mxu2 %v7350_v13  ;;  %1588 = vmatmul.bf16.gmra.mxu0 %v6724_v10  ;;  %v418_v18 = vsel %vm396_vm5, 0.0, %v6820_v43 }
 0x10c   : > { %1337 = vmatmul.bf16.gmra.mxu3 %v7185_v8  ;;  %v450_v6 = vrot.slane %v418_v18, 1 }
 0x10d   : > { %1839 = vmatmul.bf16.gmra.mxu1 %v7372_v17 }
 0x10e   : > { %v659_v44 = vpop.f32.mrf.mxu2  ;;  %v483_v28 = vsel %vm466_vm6, %v449_v50, %v450_v6 }
 0x10f   : > { %v861_v10 = vpop.f32.mrf.mxu3  ;;  %v7403_v16 = vpack.c.bf16 %v483_v28, %v484_v15  ;;  %v420_v15 = vsel %vm396_vm5, 0.0, %v6881_v1 }
 0x110   : > { %v7389_v42 = vadd.f32 %v861_v10, %v659_v44  ;;  %v621_v23 = vpop.f32.mrf.mxu0 }
 0x112   : > { %9115 = vst [vmem:[#allocation52_spill] sm:$0xff] %v7389_v42  ;;  %v823_v40 = vpop.f32.mrf.mxu1 }
 0x113   : > { %v7392_v41 = vadd.f32 %v823_v40, %v621_v23  ;;  %v6452_v23 = vld [vmem:[%s8945_s2 + $0x38] sm:$0xff] }
 0x114   : > { %3111 = vmatpush.bf16.msra.mxu1 %v6452_v23 }
 0x116   : > { %v661_v22 = vpop.f32.mrf.mxu2 }
 0x117   : > { %v863_v44 = vpop.f32.mrf.mxu3 }
 0x118   : > { %v7401_v10 = vadd.f32 %v863_v44, %v661_v22  ;;  %v624_v43 = vpop.f32.mrf.mxu0  ;;  %v451_v22 = vrot.slane %v6804_v38, 1  ;;  %v452_v44 = vrot.slane %v420_v15, 1  ;;  %v422_v15 = vsel %vm396_vm5, 0.0, %v6932_v31 }
 0x119   : > { %v454_v38 = vrot.slane %v422_v15, 1 }
 0x11a   : > { %9116 = vst [vmem:[#allocation53_spill] sm:$0xff] %v7401_v10  ;;  %v826_v18 = vpop.f32.mrf.mxu1  ;;  %v482_v23 = vsel %vm466_vm6, %v450_v6, %v451_v22  ;;  %v6423_v6 = vld [vmem:[%s8944_s1 + $0x190] sm:$0xff] }
 0x11b   : > { %v7408_v40 = vadd.f32 %v826_v18, %v624_v43  ;;  %1091 = vmatmul.bf16.gmra.mxu2 %v7372_v17  ;;  %1593 = vmatmul.bf16.gmra.mxu0 %v6727_v11  ;;  %v481_v11 = vsel %vm466_vm6, %v451_v22, %v452_v44 }
 0x11c   : > { %1342 = vmatmul.bf16.gmra.mxu3 %v6795_v35  ;;  %2057 = vmatpush.bf16.msra.mxu2 %v6423_v6 }
 0x11d   : > { %1844 = vmatmul.bf16.gmra.mxu1 %v7403_v16 }
 0x11e   : > { %v664_v30 = vpop.f32.mrf.mxu2 }
 0x11f   : > { %v866_v50 = vpop.f32.mrf.mxu3 }
 0x120   : > { %v7417_v28 = vadd.f32 %v866_v50, %v664_v30  ;;  %v626_v53 = vpop.f32.mrf.mxu0  ;;  %v7428_v30 = vpack.c.bf16 %v481_v11, %v482_v23  ;;  %v453_v23 = vrot.slane %v6869_v63, 1 }
 0x122   : > { %9117 = vst [vmem:[#allocation54_spill] sm:$0xff] %v7417_v28  ;;  %v828_v43 = vpop.f32.mrf.mxu1  ;;  %v480_v31 = vsel %vm466_vm6, %v452_v44, %v453_v23 }
 0x123   : > { %v7420_v18 = vadd.f32 %v828_v43, %v626_v53 }
 0x126   : > { %v666_v10 = vpop.f32.mrf.mxu2 }
 0x127   : > { %v868_v42 = vpop.f32.mrf.mxu3 }
 0x128   : > { %v7426_v35 = vadd.f32 %v868_v42, %v666_v10  ;;  %v1559_v1 = vpop.f32.mrf.mxu0  ;;  %v6431_v42 = vld [vmem:[%s8944_s1 + $0x1d0] sm:$0xff] }
 0x129   : > { %2307 = vmatpush.bf16.msra.mxu3 %v6431_v42 }
 0x12a   : > { %9118 = vst [vmem:[#allocation55_spill] sm:$0xff] %v7426_v35  ;;  %v1810_v50 = vpop.f32.mrf.mxu1 }
 0x12b   : > { %1096 = vmatmul.bf16.gmra.mxu2 %v7403_v16  ;;  %1598 = vmatmul.bf16.gmra.mxu0 %v6793_v34 }
 0x12c   : > { %1347 = vmatmul.bf16.gmra.mxu3 %v6858_v60  ;;  %v479_v60 = vsel %vm466_vm6, %v453_v23, %v454_v38 }
 0x12d   : > { %1849 = vmatmul.bf16.gmra.mxu1 %v7428_v30  ;;  %v7455_v15 = vpack.c.bf16 %v479_v60, %v480_v31  ;;  %v424_v31 = vsel %vm396_vm5, 0.0, %v6983_v5 }
 0x12e   : > { %v1057_v10 = vpop.f32.mrf.mxu2 }
 0x12f   : > { %v1169_v34 = vadd.f32 %v1057_v10, %v7214_v12  ;;  %v1308_v53 = vpop.f32.mrf.mxu3  ;;  %v6439_v12 = vld [vmem:[%s8944_s1 + $0x210] sm:$0xff] }
 0x130   : > { %v1561_v43 = vpop.f32.mrf.mxu0  ;;  %2558 = vmatpush.bf16.msra.mxu0 %v6439_v12 }
 0x131   : > { %v1420_v22 = vadd.f32 %v1308_v53, %v1169_v34 }
 0x132   : > { %v1812_v11 = vpop.f32.mrf.mxu1 }
 0x133   : > { %v1671_v35 = vadd.f32 %v1559_v1, %v1420_v22 }
 0x135   : > { %v7445_v28 = vadd.f32 %v1810_v50, %v1671_v35  ;;  %v6451_v50 = vld [vmem:[%s8945_s2 + $0x30] sm:$0xff] }
 0x136   : > { %v1059_v6 = vpop.f32.mrf.mxu2  ;;  %3112 = vmatpush.bf16.msra.mxu1 %v6451_v50 }
 0x137   : > { %v1170_v42 = vadd.f32 %v1059_v6, %v7234_v52  ;;  %v1310_v10 = vpop.f32.mrf.mxu3 }
 0x138   : > { %v1564_v34 = vpop.f32.mrf.mxu0 }
 0x139   : > { %v1421_v35 = vadd.f32 %v1310_v10, %v1170_v42 }
 0x13a   : > { %v1815_v1 = vpop.f32.mrf.mxu1 }
 0x13b   : > { %1101 = vmatmul.bf16.gmra.mxu2 %v7428_v30  ;;  %1603 = vmatmul.bf16.gmra.mxu0 %v6854_v58  ;;  %v1672_v44 = vadd.f32 %v1561_v43, %v1421_v35  ;;  %v455_v58 = vrot.slane %v6922_v29, 1  ;;  %v456_v43 = vrot.slane %v424_v31, 1 }
 0x13c   : > { %1352 = vmatmul.bf16.gmra.mxu3 %v6916_v27 }
 0x13d   : > { %1854 = vmatmul.bf16.gmra.mxu1 %v7455_v15  ;;  %v7464_v52 = vadd.f32 %v1812_v11, %v1672_v44  ;;  %v477_v11 = vsel %vm466_vm6, %v455_v58, %v456_v43  ;;  %v478_v35 = vsel %vm466_vm6, %v454_v38, %v455_v58  ;;  %v6422_v38 = vld [vmem:[%s8944_s1 + $0x188] sm:$0xff] }
 0x13e   : > { %v1062_v60 = vpop.f32.mrf.mxu2  ;;  %v7478_v5 = vpack.c.bf16 %v477_v11, %v478_v35  ;;  %2058 = vmatpush.bf16.msra.mxu2 %v6422_v38  ;;  %v9119_v35 = vld [vmem:[#allocation24_spill] sm:$0xff] }
 0x13f   : > { %v1171_v53 = vadd.f32 %v1062_v60, %v7247_v59  ;;  %v1313_v22 = vpop.f32.mrf.mxu3 }
 0x140   : > { %v1566_v23 = vpop.f32.mrf.mxu0 }
 0x141   : > { %v1422_v12 = vadd.f32 %v1313_v22, %v1171_v53 }
 0x142   : > { %v1817_v6 = vpop.f32.mrf.mxu1 }
 0x143   : > { %v1673_v42 = vadd.f32 %v1564_v34, %v1422_v12 }
 0x145   : > { %v7471_v10 = vadd.f32 %v1815_v1, %v1673_v42  ;;  %v6430_v1 = vld [vmem:[%s8944_s1 + $0x1c8] sm:$0xff] }
 0x146   : > { %v1064_v50 = vpop.f32.mrf.mxu2  ;;  %2308 = vmatpush.bf16.msra.mxu3 %v6430_v1 }
 0x147   : > { %v1172_v44 = vadd.f32 %v1064_v50, %v7258_v19  ;;  %v1315_v59 = vpop.f32.mrf.mxu3 }
 0x148   : > { %v1569_v60 = vpop.f32.mrf.mxu0 }
 0x149   : > { %v1423_v53 = vadd.f32 %v1315_v59, %v1172_v44 }
 0x14a   : > { %v1820_v22 = vpop.f32.mrf.mxu1 }
 0x14b   : > { %1106 = vmatmul.bf16.gmra.mxu2 %v7455_v15  ;;  %1608 = vmatmul.bf16.gmra.mxu0 %v6912_v25  ;;  %v1674_v34 = vadd.f32 %v1566_v23, %v1423_v53  ;;  %v426_v25 = vsel %vm396_vm5, 0.0, %v7034_v48 }
 0x14c   : > { %1357 = vmatmul.bf16.gmra.mxu3 %v6967_v56  ;;  %v458_v50 = vrot.slane %v426_v25, 1 }
 0x14d   : > { %1859 = vmatmul.bf16.gmra.mxu1 %v7478_v5  ;;  %v7487_v19 = vadd.f32 %v1817_v6, %v1674_v34  ;;  %v457_v6 = vrot.slane %v9119_v35, 1 }
 0x14e   : > { %v1067_v31 = vpop.f32.mrf.mxu2 }
 0x14f   : > { %v1173_v23 = vadd.f32 %v1067_v31, %v7268_v61  ;;  %v1318_v12 = vpop.f32.mrf.mxu3  ;;  %v475_v53 = vsel %vm466_vm6, %v457_v6, %v458_v50  ;;  %v476_v34 = vsel %vm466_vm6, %v456_v43, %v457_v6  ;;  %v6438_v61 = vld [vmem:[%s8944_s1 + $0x208] sm:$0xff]  ;;  %v9120_v43 = vld [vmem:[#allocation22_spill] sm:$0xff]  ;;  %v9121_v6 = vld [vmem:[#allocation29_spill] sm:$0xff] }
 0x150   : > { %v1571_v58 = vpop.f32.mrf.mxu0  ;;  %2559 = vmatpush.bf16.msra.mxu0 %v6438_v61  ;;  %v7507_v25 = vpack.c.bf16 %v475_v53, %v476_v34  ;;  %v9122_v53 = vld [vmem:[#allocation39_spill] sm:$0xff] }
 0x151   : > { %v1424_v42 = vadd.f32 %v1318_v12, %v1173_v23  ;;  %v6450_v12 = vld [vmem:[%s8945_s2 + $0x28] sm:$0xff]  ;;  %v428_v34 = vsel %vm396_vm5, 0.0, %v9122_v53 }
 0x152   : > { %v1822_v11 = vpop.f32.mrf.mxu1  ;;  %3113 = vmatpush.bf16.msra.mxu1 %v6450_v12 }
 0x153   : > { %v1675_v44 = vadd.f32 %v1569_v60, %v1424_v42 }
 0x155   : > { %v7497_v59 = vadd.f32 %v1820_v22, %v1675_v44 }
 0x156   : > { %v1069_v38 = vpop.f32.mrf.mxu2 }
 0x157   : > { %v1174_v1 = vadd.f32 %v1069_v38, %v7286_v14  ;;  %v1320_v31 = vpop.f32.mrf.mxu3 }
 0x158   : > { %v1574_v23 = vpop.f32.mrf.mxu0 }
 0x159   : > { %v1425_v60 = vadd.f32 %v1320_v31, %v1174_v1 }
 0x15a   : > { %v1825_v22 = vpop.f32.mrf.mxu1 }
 0x15b   : > { %1111 = vmatmul.bf16.gmra.mxu2 %v7478_v5  ;;  %1613 = vmatmul.bf16.gmra.mxu0 %v9120_v43  ;;  %v1676_v42 = vadd.f32 %v1571_v58, %v1425_v60  ;;  %v9123_v43 = vld [vmem:[#allocation31_spill] sm:$0xff]  ;;  %v460_v60 = vrot.slane %v428_v34, 1 }
 0x15c   : > { %1362 = vmatmul.bf16.gmra.mxu3 %v9121_v6  ;;  %v459_v58 = vrot.slane %v9123_v43, 1 }
 0x15d   : > { %1864 = vmatmul.bf16.gmra.mxu1 %v7507_v25  ;;  %v7516_v14 = vadd.f32 %v1822_v11, %v1676_v42 }
 0x15e   : > { %v1072_v44 = vpop.f32.mrf.mxu2  ;;  %v473_v11 = vsel %vm466_vm6, %v459_v58, %v460_v60  ;;  %v474_v12 = vsel %vm466_vm6, %v458_v50, %v459_v58  ;;  %v6421_v50 = vld [vmem:[%s8944_s1 + $0x180] sm:$0xff] }
 0x15f   : > { %v1175_v61 = vadd.f32 %v1072_v44, %v7299_v54  ;;  %v1323_v38 = vpop.f32.mrf.mxu3  ;;  %v7530_v63 = vpack.c.bf16 %v473_v11, %v474_v12  ;;  %2059 = vmatpush.bf16.msra.mxu2 %v6421_v50 }
 0x160   : > { %v1576_v1 = vpop.f32.mrf.mxu0 }
 0x161   : > { %v1426_v31 = vadd.f32 %v1323_v38, %v1175_v61 }
 0x162   : > { %v1827_v48 = vpop.f32.mrf.mxu1 }
 0x163   : > { %v1677_v35 = vadd.f32 %v1574_v23, %v1426_v31  ;;  %v9125_v23 = vld [vmem:[#allocation27_spill] sm:$0xff]  ;;  %v9128_v31 = vld [vmem:[#allocation44_spill] sm:$0xff] }
 0x164   : > { %v430_v58 = vsel %vm396_vm5, 0.0, %v9128_v31 }
 0x165   : > { %v7523_v29 = vadd.f32 %v1825_v22, %v1677_v35  ;;  %v9126_v22 = vld [vmem:[#allocation35_spill] sm:$0xff] }
 0x166   : > { %v1074_v42 = vpop.f32.mrf.mxu2 }
 0x167   : > { %9124 = vst [vmem:[#allocation22_spill] sm:$0xff] %v7523_v29  ;;  %v1176_v53 = vadd.f32 %v1074_v42, %v7311_v51  ;;  %v1325_v54 = vpop.f32.mrf.mxu3 }
 0x168   : > { %v1579_v44 = vpop.f32.mrf.mxu0 }
 0x169   : > { %v1427_v61 = vadd.f32 %v1325_v54, %v1176_v53  ;;  %v6429_v53 = vld [vmem:[%s8944_s1 + $0x1c0] sm:$0xff] }
 0x16a   : > { %v1830_v38 = vpop.f32.mrf.mxu1  ;;  %2309 = vmatpush.bf16.msra.mxu3 %v6429_v53 }
 0x16b   : > { %1116 = vmatmul.bf16.gmra.mxu2 %v7507_v25  ;;  %1618 = vmatmul.bf16.gmra.mxu0 %v9125_v23  ;;  %v1678_v35 = vadd.f32 %v1576_v1, %v1427_v61  ;;  %v462_v23 = vrot.slane %v430_v58, 1 }
 0x16c   : > { %1367 = vmatmul.bf16.gmra.mxu3 %v9126_v22 }
 0x16d   : > { %1869 = vmatmul.bf16.gmra.mxu1 %v7530_v63  ;;  %v7539_v51 = vadd.f32 %v1827_v48, %v1678_v35  ;;  %v9130_v48 = vld [vmem:[#allocation37_spill] sm:$0xff] }
 0x16e   : > { %v1077_v34 = vpop.f32.mrf.mxu2  ;;  %v461_v61 = vrot.slane %v9130_v48, 1 }
 0x16f   : > { %9127 = vst [vmem:[#allocation29_spill] sm:$0xff] %v7539_v51  ;;  %v1177_v1 = vadd.f32 %v1077_v34, %v7321_v49  ;;  %v1328_v11 = vpop.f32.mrf.mxu3  ;;  %v6437_v49 = vld [vmem:[%s8944_s1 + $0x200] sm:$0xff] }
 0x170   : > { %v1581_v12 = vpop.f32.mrf.mxu0  ;;  %v471_v51 = vsel %vm466_vm6, %v461_v61, %v462_v23  ;;  %v472_v50 = vsel %vm466_vm6, %v460_v60, %v461_v61  ;;  %2560 = vmatpush.bf16.msra.mxu0 %v6437_v49  ;;  %v6449_v60 = vld [vmem:[%s8945_s2 + $0x20] sm:$0xff]  ;;  %v9135_v49 = vld [vmem:[#allocation41_spill] sm:$0xff] }
 0x171   : > { %v1428_v42 = vadd.f32 %v1328_v11, %v1177_v1  ;;  %v7562_v11 = vld [vmem:[%s6715_s10 + $0x78] sm:$0xff]   ;;  %3114 = vmatpush.bf16.msra.mxu1 %v6449_v60 }
 0x172   : > { %v7548_v54 = vpop.f32.mrf.mxu1  ;;  %v7570_v61 = vunpack.c.l.bf16 %v7562_v11 }
 0x173   : > { %9129 = vst [vmem:[#allocation27_spill] sm:$0xff] %v7548_v54  ;;  %v1679_v35 = vadd.f32 %v1579_v44, %v1428_v42 }
 0x174   : > { %9132 = vst [vmem:[#allocation56_spill] sm:$0xff] %v7570_v61 }
 0x175   : > { %v7551_v43 = vadd.f32 %v1830_v38, %v1679_v35  ;;  %v7564_v38 = vpack.c.bf16 %v471_v51, %v472_v50  ;;  %v9133_v35 = vld [vmem:[#allocation34_spill] sm:$0xff]  ;;  %v432_v50 = vsel %vm396_vm5, 0.0, %v7570_v61 }
 0x176   : > { %v1079_v53 = vpop.f32.mrf.mxu2 }
 0x177   : > { %9131 = vst [vmem:[#allocation35_spill] sm:$0xff] %v7551_v43  ;;  %v1178_v34 = vadd.f32 %v1079_v53, %v7339_v4  ;;  %v1330_v1 = vpop.f32.mrf.mxu3 }
 0x178   : > { %v1584_v44 = vpop.f32.mrf.mxu0 }
 0x179   : > { %v1429_v58 = vadd.f32 %v1330_v1, %v1178_v34 }
 0x17a   : > { %v1835_v42 = vpop.f32.mrf.mxu1 }
 0x17b   : > { %1121 = vmatmul.bf16.gmra.mxu2 %v7530_v63  ;;  %1623 = vmatmul.bf16.gmra.mxu0 %v9133_v35  ;;  %v7574_v4 = vadd.f32 %v1581_v12, %v1429_v58  ;;  %v9137_v35 = vld [vmem:[#allocation42_spill] sm:$0xff]  ;;  %v464_v58 = vrot.slane %v432_v50, 1  ;;  %v7595_v50 = vunpack.c.h.bf16 %v7562_v11 }
 0x17c   : > { %1372 = vmatmul.bf16.gmra.mxu3 %v9135_v49  ;;  %v463_v12 = vrot.slane %v9137_v35, 1 }
 0x17d   : > { %9134 = vst [vmem:[#allocation34_spill] sm:$0xff] %v7574_v4  ;;  %1874 = vmatmul.bf16.gmra.mxu1 %v7564_v38 }
 0x17e   : > { %v1082_v51 = vpop.f32.mrf.mxu2  ;;  %v469_v60 = vsel %vm466_vm6, %v463_v12, %v464_v58  ;;  %v470_v43 = vsel %vm466_vm6, %v462_v23, %v463_v12  ;;  %9138 = vst [vmem:[#allocation58_spill] sm:$0xff] %v7595_v50  ;;  %v360_v12 = vrot.slane %v7570_v61, 7 }
 0x17f   : > { %v1179_v53 = vadd.f32 %v1082_v51, %v7352_v46  ;;  %v1333_v34 = vpop.f32.mrf.mxu3 }
 0x180   : > { %v1586_v1 = vpop.f32.mrf.mxu0 }
 0x181   : > { %v1430_v31 = vadd.f32 %v1333_v34, %v1179_v53  ;;  %v7592_v53 = vpack.c.bf16 %v469_v60, %v470_v43  ;;  %v7606_v43 = vsel %vm293_vm0, 0.0, %v7595_v50  ;;  %v465_v60 = vrot.slane %v7595_v50, 1 }
 0x182   : > { %v7582_v48 = vpop.f32.mrf.mxu1  ;;  %9140 = vst [vmem:[#allocation3_spill] sm:$0xff] %v7606_v43 }
 0x183   : > { %9136 = vst [vmem:[#allocation57_spill] sm:$0xff] %v7582_v48  ;;  %v1681_v54 = vadd.f32 %v1584_v44, %v1430_v31 }
 0x185   : > { %v7585_v4 = vadd.f32 %v1835_v42, %v1681_v54 }
 0x186   : > { %v1084_v49 = vpop.f32.mrf.mxu2 }
 0x187   : > { %v1180_v46 = vadd.f32 %v1084_v49, %v7364_v24  ;;  %v1335_v51 = vpop.f32.mrf.mxu3 }
 0x188   : > { %v1589_v29 = vpop.f32.mrf.mxu0 }
 0x189   : > { %v1431_v34 = vadd.f32 %v1335_v51, %v1180_v46 }
 0x18a   : > { %v1840_v48 = vpop.f32.mrf.mxu1 }
 0x18b   : > { %1126 = vmatmul.bf16.gmra.mxu2 %v7564_v38  ;;  %1628 = vmatmul.bf16.gmra.mxu0 %v7125_v32  ;;  %v7599_v31 = vadd.f32 %v1586_v1, %v1431_v34  ;;  %v9010_v32 = vrot.slane %v7606_v43, 7 }
 0x18c   : > { %1377 = vmatmul.bf16.gmra.mxu3 %v7187_v3 }
 0x18d   : > { %1879 = vmatmul.bf16.gmra.mxu1 %v7592_v53  ;;  %v364_v34 = vsel %vm362_vm1, %v360_v12, %v9010_v32 }
 0x18e   : > { %v1087_v24 = vpop.f32.mrf.mxu2 }
 0x18f   : > { %v1181_v23 = vadd.f32 %v1087_v24, %v7374_v57  ;;  %v1338_v44 = vpop.f32.mrf.mxu3  ;;  %v9142_v57 = vrot.slane %v7159_v36, 7  ;;  %v9143_v36 = vmov 0 }
 0x190   : > { %v1591_v42 = vpop.f32.mrf.mxu0  ;;  %v9144_v36 = vsel %vm7634_vm9, 4294967295, %v9143_v36 }
 0x191   : > { %v1432_v49 = vadd.f32 %v1338_v44, %v1181_v23  ;;  %v365_v24 = vsel %vm362_vm1, %v9142_v57, %v360_v12  ;;  %v468_v23 = vsel %vm466_vm6, %v464_v58, %v465_v60  ;;  %9145 = vst [vmem:[#allocation60_spill] sm:$0xff] %v9144_v36  ;;  %v6448_v58 = vld [vmem:[%s8945_s2 + $0x18] sm:$0xff] }
 0x192   : > { %v7611_v1 = vpop.f32.mrf.mxu1  ;;  %3115 = vmatpush.bf16.msra.mxu1 %v6448_v58  ;;  %v6625_v58 = vld [vmem:[%s6715_s10 + $0x8] sm:$0xff]  }
 0x193   : > { %9141 = vst [vmem:[#allocation59_spill] sm:$0xff] %v7611_v1  ;;  %v1683_v46 = vadd.f32 %v1589_v29, %v1432_v49  ;;  %v7629_v49 = vpack.c.bf16 %v465_v60, %v468_v23 }
 0x195   : > { %v7614_v51 = vadd.f32 %v1840_v48, %v1683_v46  ;;  %v7627_v48 = vpack.c.bf16 %v364_v34, %v365_v24 }
 0x196   : > { %v1089_v44 = vpop.f32.mrf.mxu2 }
 0x197   : > { %v1182_v61 = vadd.f32 %v1089_v44, %v7392_v41  ;;  %v1340_v50 = vpop.f32.mrf.mxu3 }
 0x198   : > { %v1594_v29 = vpop.f32.mrf.mxu0 }
 0x199   : > { %v1433_v46 = vadd.f32 %v1340_v50, %v1182_v61 }
 0x19a   : > { %v1845_v35 = vpop.f32.mrf.mxu1 }
 0x19b   : > { %1131 = vmatmul.bf16.gmra.mxu2 %v7592_v53  ;;  %1633 = vmatmul.bf16.gmra.mxu0 %v7562_v11  ;;  %v7643_v41 = vadd.f32 %v1591_v42, %v1433_v46 }
 0x19c   : > { %1382 = vmatmul.bf16.gmra.mxu3 %v7627_v48 }
 0x19d   : > { %5781 = vmatmul.msk.bf16.gmra.mxu1 %vm7634_vm9, %v7629_v49 }
 0x19e   : > { %v1092_v61 = vpop.f32.mrf.mxu2 }
 0x19f   : > { %v1183_v50 = vadd.f32 %v1092_v61, %v7408_v40  ;;  %v1343_v12 = vpop.f32.mrf.mxu3 }
 0x1a0   : > { %v1596_v60 = vpop.f32.mrf.mxu0 }
 0x1a1   : > { %v1434_v34 = vadd.f32 %v1343_v12, %v1183_v50 }
 0x1a2   : > { %v7650_v57 = vpop.f32.mrf.mxu1 }
 0x1a3   : > { %v1685_v24 = vadd.f32 %v1594_v29, %v1434_v34 }
 0x1a5   : > { %v7652_v23 = vadd.f32 %v1845_v35, %v1685_v24 }
 0x1a6   : > { %v1094_v42 = vpop.f32.mrf.mxu2 }
 0x1a7   : > { %v1184_v44 = vadd.f32 %v1094_v42, %v7420_v18  ;;  %v1345_v46 = vpop.f32.mrf.mxu3 }
 0x1a8   : > { %v1599_v32 = vpop.f32.mrf.mxu0 }
 0x1a9   : > { %v1435_v43 = vadd.f32 %v1345_v46, %v1184_v44 }
 0x1aa   : > { %v1850_v1 = vpop.f32.mrf.mxu1 }
 0x1ab   : > { %2060 = vmatmul.bf16.vlgmr.msra.gmra.mxu2 %v6914_v26  ;;  %2561 = vmatmul.bf16.vlgmr.msra.gmra.mxu0 %v7245_v62  ;;  %v7657_v40 = vadd.f32 %v1596_v60, %v1435_v43 }
 0x1ac   : > { %2310 = vmatmul.bf16.vlgmr.msra.gmra.mxu3 %v6625_v58 }
 0x1ae   : > { %v1097_v61 = vpop.f32.mrf.mxu2 }
 0x1af   : > { %v1185_v29 = vadd.f32 %v1097_v61, %v7231_v45  ;;  %v1348_v35 = vpop.f32.mrf.mxu3  ;;  %v6447_v45 = vld [vmem:[%s8945_s2 + $0x10] sm:$0xff] }
 0x1b0   : > { %v1601_v50 = vpop.f32.mrf.mxu0  ;;  %3116 = vmatpush.bf16.msra.mxu1 %v6447_v45  ;;  %v6627_v45 = vld [vmem:[%s6715_s10 + $0x18] sm:$0xff]  }
 0x1b1   : > { %v1436_v12 = vadd.f32 %v1348_v35, %v1185_v29 }
 0x1b2   : > { %v7661_v18 = vpop.f32.mrf.mxu1 }
 0x1b3   : > { %v1687_v34 = vadd.f32 %v1599_v32, %v1436_v12  ;;  %v6626_v32 = vld [vmem:[%s6715_s10 + $0x10] sm:$0xff]  }
 0x1b5   : > { %v7663_v24 = vadd.f32 %v1850_v1, %v1687_v34 }
 0x1b6   : > { %v1099_v42 = vpop.f32.mrf.mxu2 }
 0x1b7   : > { %v1186_v26 = vadd.f32 %v1099_v42, %v7243_v33  ;;  %v1350_v62 = vpop.f32.mrf.mxu3 }
 0x1b8   : > { %v1604_v43 = vpop.f32.mrf.mxu0 }
 0x1b9   : > { %v1437_v60 = vadd.f32 %v1350_v62, %v1186_v26 }
 0x1ba   : > { %v1855_v44 = vpop.f32.mrf.mxu1 }
 0x1bb   : > { %2065 = vmatmul.bf16.gmra.mxu2 %v6965_v55  ;;  %2566 = vmatmul.bf16.gmra.mxu0 %v7266_v0  ;;  %v7671_v46 = vadd.f32 %v1601_v50, %v1437_v60  ;;  %v9146_v60 = vld [vmem:[#allocation28_spill] sm:$0xff] }
 0x1bc   : > { %2315 = vmatmul.bf16.gmra.mxu3 %v6626_v32 }
 0x1be   : > { %v1102_v1 = vpop.f32.mrf.mxu2 }
 0x1bf   : > { %v1187_v33 = vadd.f32 %v1102_v1, %v7255_v20  ;;  %v1353_v58 = vpop.f32.mrf.mxu3  ;;  %v9147_v1 = vld [vmem:[#allocation46_spill] sm:$0xff] }
 0x1c0   : > { %v1606_v61 = vpop.f32.mrf.mxu0 }
 0x1c1   : > { %v1438_v29 = vadd.f32 %v1353_v58, %v1187_v33 }
 0x1c2   : > { %v7675_v35 = vpop.f32.mrf.mxu1 }
 0x1c3   : > { %v1689_v12 = vadd.f32 %v1604_v43, %v1438_v29 }
 0x1c5   : > { %v7677_v34 = vadd.f32 %v1855_v44, %v1689_v12 }
 0x1c6   : > { %v1104_v55 = vpop.f32.mrf.mxu2 }
 0x1c7   : > { %v1188_v0 = vadd.f32 %v1104_v55, %v7264_v21  ;;  %v1355_v50 = vpop.f32.mrf.mxu3 }
 0x1c8   : > { %v1609_v42 = vpop.f32.mrf.mxu0 }
 0x1c9   : > { %v1439_v26 = vadd.f32 %v1355_v50, %v1188_v0  ;;  %v9148_v0 = vld [vmem:[#allocation47_spill] sm:$0xff] }
 0x1ca   : > { %v1860_v62 = vpop.f32.mrf.mxu1 }
 0x1cb   : > { %2070 = vmatmul.bf16.gmra.mxu2 %v9146_v60  ;;  %2571 = vmatmul.bf16.gmra.mxu0 %v7297_v2  ;;  %v7682_v20 = vadd.f32 %v1606_v61, %v1439_v26 }
 0x1cc   : > { %2320 = vmatmul.bf16.gmra.mxu3 %v6627_v45  ;;  %v6446_v45 = vld [vmem:[%s8945_s2 + $0x8] sm:$0xff] }
 0x1cd   : > { %3117 = vmatpush.bf16.msra.mxu1 %v6446_v45  ;;  %v9151_v45 = vld [vmem:[#allocation40_spill] sm:$0xff] }
 0x1ce   : > { %v1107_v32 = vpop.f32.mrf.mxu2 }
 0x1cf   : > { %v1189_v43 = vadd.f32 %v1107_v32, %v9147_v1  ;;  %v1358_v44 = vpop.f32.mrf.mxu3  ;;  %v9149_v1 = vld [vmem:[#allocation48_spill] sm:$0xff] }
 0x1d0   : > { %v1611_v33 = vpop.f32.mrf.mxu0 }
 0x1d1   : > { %v1440_v58 = vadd.f32 %v1358_v44, %v1189_v43 }
 0x1d2   : > { %v7686_v21 = vpop.f32.mrf.mxu1 }
 0x1d3   : > { %v1691_v29 = vadd.f32 %v1609_v42, %v1440_v58  ;;  %v6628_v42 = vld [vmem:[%s6715_s10 + $0x20] sm:$0xff]  }
 0x1d5   : > { %v7688_v12 = vadd.f32 %v1860_v62, %v1691_v29 }
 0x1d6   : > { %v1109_v55 = vpop.f32.mrf.mxu2 }
 0x1d7   : > { %v1190_v50 = vadd.f32 %v1109_v55, %v9148_v0  ;;  %v1360_v2 = vpop.f32.mrf.mxu3 }
 0x1d8   : > { %v1614_v61 = vpop.f32.mrf.mxu0 }
 0x1d9   : > { %v1441_v26 = vadd.f32 %v1360_v2, %v1190_v50 }
 0x1da   : > { %v1865_v60 = vpop.f32.mrf.mxu1 }
 0x1db   : > { %2075 = vmatmul.bf16.gmra.mxu2 %v7070_v9  ;;  %2576 = vmatmul.bf16.gmra.mxu0 %v7319_v37  ;;  %v7696_v32 = vadd.f32 %v1611_v33, %v1441_v26 }
 0x1dc   : > { %2325 = vmatmul.bf16.gmra.mxu3 %v6628_v42 }
 0x1de   : > { %v1112_v62 = vpop.f32.mrf.mxu2 }
 0x1df   : > { %v1191_v43 = vadd.f32 %v1112_v62, %v9149_v1  ;;  %v1363_v44 = vpop.f32.mrf.mxu3  ;;  %v6629_v1 = vld [vmem:[%s6715_s10 + $0x28] sm:$0xff]  }
 0x1e0   : > { %v1616_v58 = vpop.f32.mrf.mxu0 }
 0x1e1   : > { %v1442_v29 = vadd.f32 %v1363_v44, %v1191_v43  ;;  %v9152_v44 = vld [vmem:[#allocation49_spill] sm:$0xff] }
 0x1e2   : > { %v7700_v55 = vpop.f32.mrf.mxu1 }
 0x1e3   : > { %9150 = vst [vmem:[#allocation28_spill] sm:$0xff] %v7700_v55  ;;  %v1693_v0 = vadd.f32 %v1614_v61, %v1442_v29 }
 0x1e5   : > { %v7702_v50 = vadd.f32 %v1865_v60, %v1693_v0 }
 0x1e6   : > { %v1114_v9 = vpop.f32.mrf.mxu2 }
 0x1e7   : > { %v1192_v37 = vadd.f32 %v1114_v9, %v7317_v47  ;;  %v1365_v33 = vpop.f32.mrf.mxu3 }
 0x1e8   : > { %v1619_v2 = vpop.f32.mrf.mxu0 }
 0x1e9   : > { %v1443_v26 = vadd.f32 %v1365_v33, %v1192_v37 }
 0x1ea   : > { %v1870_v42 = vpop.f32.mrf.mxu1 }
 0x1eb   : > { %2080 = vmatmul.bf16.gmra.mxu2 %v9151_v45  ;;  %2581 = vmatmul.bf16.gmra.mxu0 %v7350_v13  ;;  %v7707_v62 = vadd.f32 %v1616_v58, %v1443_v26  ;;  %v9154_v45 = vld [vmem:[#allocation50_spill] sm:$0xff] }
 0x1ec   : > { %2330 = vmatmul.bf16.gmra.mxu3 %v6629_v1  ;;  %v6445_v1 = vld [vmem:[%s8945_s2] sm:$0xff] }
 0x1ed   : > { %3118 = vmatpush.bf16.msra.mxu1 %v6445_v1 }
 0x1ee   : > { %v1117_v43 = vpop.f32.mrf.mxu2 }
 0x1ef   : > { %v1193_v61 = vadd.f32 %v1117_v43, %v9152_v44  ;;  %v1368_v60 = vpop.f32.mrf.mxu3 }
 0x1f0   : > { %v1621_v29 = vpop.f32.mrf.mxu0 }
 0x1f1   : > { %v1444_v0 = vadd.f32 %v1368_v60, %v1193_v61  ;;  %v9156_v61 = vld [vmem:[#allocation51_spill] sm:$0xff] }
 0x1f2   : > { %v7711_v47 = vpop.f32.mrf.mxu1 }
 0x1f3   : > { %9153 = vst [vmem:[#allocation46_spill] sm:$0xff] %v7711_v47  ;;  %v1695_v9 = vadd.f32 %v1619_v2, %v1444_v0  ;;  %v6630_v2 = vld [vmem:[%s6715_s10 + $0x30] sm:$0xff]   ;;  %v9160_v47 = vld [vmem:[#allocation7_spill] sm:$0xff] }
 0x1f5   : > { %v7713_v37 = vadd.f32 %v1870_v42, %v1695_v9 }
 0x1f6   : > { %v1119_v33 = vpop.f32.mrf.mxu2 }
 0x1f7   : > { %v1194_v55 = vadd.f32 %v1119_v33, %v9154_v45  ;;  %v1370_v13 = vpop.f32.mrf.mxu3 }
 0x1f8   : > { %v1624_v58 = vpop.f32.mrf.mxu0 }
 0x1f9   : > { %v1445_v26 = vadd.f32 %v1370_v13, %v1194_v55  ;;  %v9157_v55 = vmov 0.0|0.0  }
 0x1fa   : > { %v1875_v43 = vpop.f32.mrf.mxu1  ;;  %3119 = vmatmul.bf16.vlgmr.msra.gmra.mxu1 %v9157_v55 }
 0x1fb   : > { %2085 = vmatmul.bf16.gmra.mxu2 %v7185_v8  ;;  %2586 = vmatmul.bf16.gmra.mxu0 %v7372_v17  ;;  %v7721_v44 = vadd.f32 %v1621_v29, %v1445_v26 }
 0x1fc   : > { %2335 = vmatmul.bf16.gmra.mxu3 %v6630_v2 }
 0x1fd   : > { %9155 = vst [vmem:[#allocation47_spill] sm:$0xff] %v7721_v44  ;;  %v9165_v44 = vld [vmem:[#allocation12_spill] sm:$0xff] }
 0x1fe   : > { %v1122_v42 = vpop.f32.mrf.mxu2 }
 0x1ff   : > { %v1195_v60 = vadd.f32 %v1122_v42, %v9156_v61  ;;  %v1373_v0 = vpop.f32.mrf.mxu3  ;;  %v6631_v61 = vld [vmem:[%s6715_s10 + $0x38] sm:$0xff]  }
 0x200   : > { %v1626_v9 = vpop.f32.mrf.mxu0 }
 0x201   : > { %v1446_v33 = vadd.f32 %v1373_v0, %v1195_v60  ;;  %v9162_v0 = vld [vmem:[#allocation52_spill] sm:$0xff] }
 0x202   : > { %v7726_v13 = vpop.f32.mrf.mxu1 }
 0x203   : > { %v1697_v45 = vadd.f32 %v1624_v58, %v1446_v33  ;;  %9158 = vst [vmem:[#allocation48_spill] sm:$0xff] %v7726_v13  ;;  %v6460_v58 = vld [vmem:[%s8945_s2 + $0x78] sm:$0xff] }
 0x204   : > { %3312 = vmatpush.bf16.msrb.mxu2 %v6460_v58 }
 0x205   : > { %v7728_v8 = vadd.f32 %v1875_v43, %v1697_v45  ;;  %v6468_v43 = vld [vmem:[%s8945_s2 + $0xb8] sm:$0xff] }
 0x206   : > { %v1124_v17 = vpop.f32.mrf.mxu2  ;;  %3578 = vmatpush.bf16.msrb.mxu3 %v6468_v43  ;;  %v6632_v43 = vld [vmem:[%s6715_s10 + $0x40] sm:$0xff]  }
 0x207   : > { %9159 = vst [vmem:[#allocation40_spill] sm:$0xff] %v7728_v8  ;;  %v1196_v29 = vadd.f32 %v1124_v17, %v7370_v39  ;;  %v1375_v26 = vpop.f32.mrf.mxu3 }
 0x208   : > { %v1629_v2 = vpop.f32.mrf.mxu0 }
 0x209   : > { %v1447_v1 = vadd.f32 %v1375_v26, %v1196_v29  ;;  %v9163_v26 = vld [vmem:[#allocation53_spill] sm:$0xff] }
 0x20a   : > { %v1880_v60 = vpop.f32.mrf.mxu1 }
 0x20b   : > { %2090 = vmatmul.bf16.gmra.mxu2 %v9160_v47  ;;  %2591 = vmatmul.bf16.gmra.mxu0 %v7403_v16  ;;  %v7733_v42 = vadd.f32 %v1626_v9, %v1447_v1 }
 0x20c   : > { %2340 = vmatmul.bf16.gmra.mxu3 %v6631_v61 }
 0x20d   : > { %9161 = vst [vmem:[#allocation49_spill] sm:$0xff] %v7733_v42 }
 0x20e   : > { %v1127_v39 = vpop.f32.mrf.mxu2 }
 0x20f   : > { %v1197_v33 = vadd.f32 %v1127_v39, %v9162_v0  ;;  %v1378_v47 = vpop.f32.mrf.mxu3 }
 0x210   : > { %v1631_v16 = vpop.f32.mrf.mxu0 }
 0x211   : > { %v1448_v9 = vadd.f32 %v1378_v47, %v1197_v33 }
 0x212   : > { %v7746_v42 = vpop.f32.mrf.mxu1 }
 0x213   : > { %v1699_v45 = vadd.f32 %v1629_v2, %v1448_v9  ;;  %9164 = vst [vmem:[#allocation50_spill] sm:$0xff] %v7746_v42  ;;  %v6476_v2 = vld [vmem:[%s8945_s2 + $0xf8] sm:$0xff] }
 0x214   : > { %3829 = vmatpush.bf16.msrb.mxu0 %v6476_v2 }
 0x215   : > { %v7743_v17 = vadd.f32 %v1880_v60, %v1699_v45  ;;  %v9166_v60 = vld [vmem:[#allocation54_spill] sm:$0xff] }
 0x216   : > { %v1129_v29 = vpop.f32.mrf.mxu2 }
 0x217   : > { %v1198_v1 = vadd.f32 %v1129_v29, %v9163_v26  ;;  %v1380_v61 = vpop.f32.mrf.mxu3  ;;  %v9168_v29 = vld [vmem:[#allocation55_spill] sm:$0xff] }
 0x218   : > { %v1634_v13 = vpop.f32.mrf.mxu0 }
 0x219   : > { %v1449_v8 = vadd.f32 %v1380_v61, %v1198_v1 }
 0x21a   : > { %v1885_v45 = vpop.f32.mrf.mxu1 }
 0x21b   : > { %2095 = vmatmul.bf16.gmra.mxu2 %v9165_v44  ;;  %2596 = vmatmul.bf16.gmra.mxu0 %v7428_v30  ;;  %v7750_v58 = vadd.f32 %v1631_v16, %v1449_v8  ;;  %v6484_v30 = vld [vmem:[%s8945_s2 + $0x138] sm:$0xff] }
 0x21c   : > { %2345 = vmatmul.bf16.gmra.mxu3 %v6632_v43  ;;  %4080 = vmatpush.bf16.msrb.mxu1 %v6484_v30 }
 0x21e   : > { %v1132_v39 = vpop.f32.mrf.mxu2 }
 0x21f   : > { %v1199_v0 = vadd.f32 %v1132_v39, %v9166_v60  ;;  %v1383_v33 = vpop.f32.mrf.mxu3  ;;  %v6633_v39 = vld [vmem:[%s6715_s10 + $0x48] sm:$0xff]  }
 0x220   : > { %v1636_v47 = vpop.f32.mrf.mxu0 }
 0x221   : > { %v1450_v9 = vadd.f32 %v1383_v33, %v1199_v0  ;;  %v6459_v33 = vld [vmem:[%s8945_s2 + $0x70] sm:$0xff] }
 0x222   : > { %3313 = vmatpush.bf16.msrb.mxu2 %v6459_v33 }
 0x223   : > { %v1701_v44 = vadd.f32 %v1634_v13, %v1450_v9  ;;  %v6467_v9 = vld [vmem:[%s8945_s2 + $0xb0] sm:$0xff] }
 0x224   : > { %3579 = vmatpush.bf16.msrb.mxu3 %v6467_v9 }
 0x225   : > { %v7760_v8 = vadd.f32 %v1885_v45, %v1701_v44 }
 0x226   : > { %v1134_v16 = vpop.f32.mrf.mxu2 }
 0x227   : > { %9167 = vst [vmem:[#allocation51_spill] sm:$0xff] %v7760_v8  ;;  %v1200_v26 = vadd.f32 %v1134_v16, %v9168_v29  ;;  %v1385_v1 = vpop.f32.mrf.mxu3  ;;  %v9181_v8 = vld [vmem:[#allocation27_spill] sm:$0xff] }
 0x228   : > { %v2562_v61 = vpop.f32.mrf.mxu0 }
 0x229   : > { %v1451_v43 = vadd.f32 %v1385_v1, %v1200_v26 }
 0x22b   : > { %2100 = vmatmul.bf16.gmra.mxu2 %v6916_v27  ;;  %2601 = vmatmul.bf16.gmra.mxu0 %v7455_v15  ;;  %v7765_v2 = vadd.f32 %v1636_v47, %v1451_v43  ;;  %v7778_v15 = vld [vmem:[%s8946_s3] ss:$0 sm:$0xff]  ;;  %v6475_v43 = vld [vmem:[%s8945_s2 + $0xf0] sm:$0xff] }
 0x22c   : > { %2350 = vmatmul.bf16.gmra.mxu3 %v6633_v39  ;;  %3830 = vmatpush.bf16.msrb.mxu0 %v6475_v43 }
 0x22d   : > { %9169 = vst [vmem:[#allocation7_spill] sm:$0xff] %v7765_v2  ;;  %v9177_v2 = vld [vmem:[#allocation41_spill] sm:$0xff] }
 0x22e   : > { %v2061_v60 = vpop.f32.mrf.mxu2 }
 0x22f   : > { %v2173_v13 = vadd.f32 %v2061_v60, %v7445_v28  ;;  %v2311_v0 = vpop.f32.mrf.mxu3  ;;  %v6634_v60 = vld [vmem:[%s6715_s10 + $0x50] sm:$0xff]  }
 0x230   : > { %v2564_v45 = vpop.f32.mrf.mxu0 }
 0x231   : > { %v2423_v27 = vadd.f32 %v2311_v0, %v2173_v13 }
 0x233   : > { %v2674_v28 = vadd.f32 %v2562_v61, %v2423_v27 }
 0x235   : > { %v2774_v47 = vadd.f32 %v7778_v15, %v2674_v28 }
 0x236   : > { %v2063_v30 = vpop.f32.mrf.mxu2 }
 0x237   : > { %v2174_v44 = vadd.f32 %v2063_v30, %v7464_v52  ;;  %v2313_v16 = vpop.f32.mrf.mxu3  ;;  %v2806_v26 = vmax.f32 %v2774_v47, 0.0 }
 0x238   : > { %v2567_v29 = vpop.f32.mrf.mxu0 }
 0x239   : > { %v2424_v1 = vadd.f32 %v2313_v16, %v2174_v44  ;;  %v7790_v61 = vsel %vm396_vm5, 0.0, %v2806_v26  ;;  %v2870_v16 = vrot.slane %v2806_v26, 7 }
 0x23b   : > { %v2675_v39 = vadd.f32 %v2564_v45, %v2424_v1  ;;  %2105 = vmatmul.bf16.gmra.mxu2 %v6967_v56  ;;  %2606 = vmatmul.bf16.gmra.mxu0 %v7478_v5  ;;  %v6483_v56 = vld [vmem:[%s8945_s2 + $0x130] sm:$0xff]  ;;  %v9012_v5 = vrot.slane %v7790_v61, 1 }
 0x23c   : > { %2355 = vmatmul.bf16.gmra.mxu3 %v6634_v60  ;;  %4081 = vmatpush.bf16.msrb.mxu1 %v6483_v56 }
 0x23d   : > { %v2775_v52 = vadd.f32 %v7778_v15, %v2675_v39 }
 0x23e   : > { %v2066_v13 = vpop.f32.mrf.mxu2 }
 0x23f   : > { %v2807_v0 = vmax.f32 %v2775_v52, 0.0  ;;  %v2175_v33 = vadd.f32 %v2066_v13, %v7471_v10  ;;  %v2316_v9 = vpop.f32.mrf.mxu3 }
 0x240   : > { %v2569_v45 = vpop.f32.mrf.mxu0 }
 0x241   : > { %v2839_v27 = vsel %vm293_vm0, 0.0, %v2807_v0  ;;  %v2425_v28 = vadd.f32 %v2316_v9, %v2175_v33  ;;  %v7800_v47 = vpack.c.bf16 %v2807_v0, %v2806_v26  ;;  %v2968_v30 = vrot.slane %v2807_v0, 1 }
 0x242   : > { %v2871_v44 = vrot.slane %v2839_v27, 7 }
 0x243   : > { %v2676_v1 = vadd.f32 %v2567_v29, %v2425_v28  ;;  %v3030_v10 = vsel %vm466_vm6, %v9012_v5, %v2968_v30 }
 0x244   : > { %v2933_v43 = vsel %vm362_vm1, %v2870_v16, %v2871_v44 }
 0x245   : > { %v2776_v39 = vadd.f32 %v7778_v15, %v2676_v1  ;;  %v7809_v60 = vpack.c.bf16 %v2933_v43, %v2870_v16  ;;  %v6635_v16 = vld [vmem:[%s6715_s10 + $0x58] sm:$0xff]  }
 0x246   : > { %v2068_v52 = vpop.f32.mrf.mxu2 }
 0x247   : > { %v2808_v13 = vmax.f32 %v2776_v39, 0.0  ;;  %v2176_v0 = vadd.f32 %v2068_v52, %v7487_v19  ;;  %v2318_v33 = vpop.f32.mrf.mxu3  ;;  %5967 = vmatmul.msk.bf16.gmra.mxu1 %vm6861_vm4, %v7809_v60 }
 0x248   : > { %v2572_v26 = vpop.f32.mrf.mxu0 }
 0x249   : > { %v2937_v9 = vsel %vm396_vm5, 0.0, %v2808_v13  ;;  %v2426_v56 = vadd.f32 %v2318_v33, %v2176_v0  ;;  %v2872_v27 = vrot.slane %v2808_v13, 7 }
 0x24a   : > { %v2969_v28 = vrot.slane %v2937_v9, 1 }
 0x24b   : > { %v2677_v1 = vadd.f32 %v2569_v45, %v2426_v56  ;;  %2110 = vmatmul.bf16.gmra.mxu2 %v9121_v6  ;;  %2611 = vmatmul.bf16.gmra.mxu0 %v7507_v25  ;;  %v2932_v19 = vsel %vm362_vm1, %v2871_v44, %v2872_v27  ;;  %v6458_v25 = vld [vmem:[%s8945_s2 + $0x68] sm:$0xff] }
 0x24c   : > { %2360 = vmatmul.bf16.gmra.mxu3 %v6635_v16  ;;  %v3029_v43 = vsel %vm466_vm6, %v2968_v30, %v2969_v28  ;;  %v6466_v6 = vld [vmem:[%s8945_s2 + $0xa8] sm:$0xff]  ;;  %3314 = vmatpush.bf16.msrb.mxu2 %v6458_v25 }
 0x24d   : > { %v2777_v39 = vadd.f32 %v7778_v15, %v2677_v1  ;;  %v7825_v52 = vpack.c.bf16 %v3029_v43, %v3030_v10  ;;  %3580 = vmatpush.bf16.msrb.mxu3 %v6466_v6 }
 0x24e   : > { %v2071_v0 = vpop.f32.mrf.mxu2 }
 0x24f   : > { %9171 = vst [vmem:[#allocation52_spill] sm:$0xff] %v7825_v52  ;;  %v2809_v33 = vmax.f32 %v2777_v39, 0.0  ;;  %v2177_v45 = vadd.f32 %v2071_v0, %v7497_v59  ;;  %v2321_v9 = vpop.f32.mrf.mxu3 }
 0x250   : > { %v2574_v44 = vpop.f32.mrf.mxu0 }
 0x251   : > { %v2427_v56 = vadd.f32 %v2321_v9, %v2177_v45  ;;  %v2841_v30 = vsel %vm293_vm0, 0.0, %v2809_v33  ;;  %v7836_v10 = vpack.c.bf16 %v2809_v33, %v2808_v13  ;;  %v2970_v1 = vrot.slane %v2809_v33, 1 }
 0x252   : > { %v2873_v59 = vrot.slane %v2841_v30, 7  ;;  %v6636_v30 = vld [vmem:[%s6715_s10 + $0x60] sm:$0xff]  }
 0x253   : > { %v2678_v16 = vadd.f32 %v2572_v26, %v2427_v56  ;;  %v3028_v43 = vsel %vm466_vm6, %v2969_v28, %v2970_v1 }
 0x254   : > { %v2931_v39 = vsel %vm362_vm1, %v2872_v27, %v2873_v59  ;;  %v6474_v27 = vld [vmem:[%s8945_s2 + $0xe8] sm:$0xff] }
 0x255   : > { %v2778_v0 = vadd.f32 %v7778_v15, %v2678_v16  ;;  %v7843_v5 = vpack.c.bf16 %v2931_v39, %v2932_v19  ;;  %3831 = vmatpush.bf16.msrb.mxu0 %v6474_v27 }
 0x256   : > { %v2073_v45 = vpop.f32.mrf.mxu2 }
 0x257   : > { %9172 = vst [vmem:[#allocation53_spill] sm:$0xff] %v7843_v5  ;;  %v2810_v9 = vmax.f32 %v2778_v0, 0.0  ;;  %v2178_v25 = vadd.f32 %v2073_v45, %v7516_v14  ;;  %v2323_v13 = vpop.f32.mrf.mxu3  ;;  %3129 = vmatmul.bf16.gmra.mxu1 %v7843_v5 }
 0x258   : > { %v2577_v33 = vpop.f32.mrf.mxu0 }
 0x259   : > { %v2939_v26 = vsel %vm396_vm5, 0.0, %v2810_v9  ;;  %v2428_v28 = vadd.f32 %v2323_v13, %v2178_v25  ;;  %v2874_v6 = vrot.slane %v2810_v9, 7 }
 0x25a   : > { %v2971_v19 = vrot.slane %v2939_v26, 1 }
 0x25b   : > { %v2679_v56 = vadd.f32 %v2574_v44, %v2428_v28  ;;  %2115 = vmatmul.bf16.gmra.mxu2 %v9126_v22  ;;  %2616 = vmatmul.bf16.gmra.mxu0 %v7530_v63  ;;  %v2930_v14 = vsel %vm362_vm1, %v2873_v59, %v2874_v6  ;;  %v9174_v44 = vld [vmem:[#allocation22_spill] sm:$0xff]  ;;  %v6482_v63 = vld [vmem:[%s8945_s2 + $0x128] sm:$0xff] }
 0x25c   : > { %2365 = vmatmul.bf16.gmra.mxu3 %v6636_v30  ;;  %v3027_v16 = vsel %vm466_vm6, %v2970_v1, %v2971_v19  ;;  %4082 = vmatpush.bf16.msrb.mxu1 %v6482_v63 }
 0x25d   : > { %v2779_v39 = vadd.f32 %v7778_v15, %v2679_v56  ;;  %v7860_v0 = vpack.c.bf16 %v3027_v16, %v3028_v43 }
 0x25e   : > { %v2076_v45 = vpop.f32.mrf.mxu2 }
 0x25f   : > { %9173 = vst [vmem:[#allocation12_spill] sm:$0xff] %v7860_v0  ;;  %v2811_v25 = vmax.f32 %v2779_v39, 0.0  ;;  %v2179_v13 = vadd.f32 %v2076_v45, %v9174_v44  ;;  %v2326_v22 = vpop.f32.mrf.mxu3 }
 0x260   : > { %v2579_v59 = vpop.f32.mrf.mxu0 }
 0x261   : > { %v2429_v26 = vadd.f32 %v2326_v22, %v2179_v13  ;;  %v2843_v28 = vsel %vm293_vm0, 0.0, %v2811_v25  ;;  %v7868_v1 = vpack.c.bf16 %v2811_v25, %v2810_v9  ;;  %v2972_v27 = vrot.slane %v2811_v25, 1  ;;  %v9176_v22 = vld [vmem:[#allocation29_spill] sm:$0xff] }
 0x262   : > { %v2875_v43 = vrot.slane %v2843_v28, 7 }
 0x263   : > { %v2680_v56 = vadd.f32 %v2577_v33, %v2429_v26  ;;  %v3026_v30 = vsel %vm466_vm6, %v2971_v19, %v2972_v27 }
 0x264   : > { %v2929_v16 = vsel %vm362_vm1, %v2874_v6, %v2875_v43 }
 0x265   : > { %v2780_v39 = vadd.f32 %v7778_v15, %v2680_v56  ;;  %v7875_v45 = vpack.c.bf16 %v2929_v16, %v2930_v14  ;;  %v6637_v56 = vld [vmem:[%s6715_s10 + $0x68] sm:$0xff]  }
 0x266   : > { %v2078_v44 = vpop.f32.mrf.mxu2 }
 0x267   : > { %9175 = vst [vmem:[#allocation54_spill] sm:$0xff] %v7875_v45  ;;  %v2812_v13 = vmax.f32 %v2780_v39, 0.0  ;;  %v2180_v63 = vadd.f32 %v2078_v44, %v9176_v22  ;;  %v2328_v9 = vpop.f32.mrf.mxu3  ;;  %3134 = vmatmul.bf16.gmra.mxu1 %v7875_v45 }
 0x268   : > { %v2582_v25 = vpop.f32.mrf.mxu0 }
 0x269   : > { %v2941_v33 = vsel %vm396_vm5, 0.0, %v2812_v13  ;;  %v2430_v19 = vadd.f32 %v2328_v9, %v2180_v63  ;;  %v2876_v26 = vrot.slane %v2812_v13, 7  ;;  %v9179_v9 = vld [vmem:[#allocation35_spill] sm:$0xff] }
 0x26a   : > { %v2973_v28 = vrot.slane %v2941_v33, 1 }
 0x26b   : > { %v2681_v6 = vadd.f32 %v2579_v59, %v2430_v19  ;;  %2120 = vmatmul.bf16.gmra.mxu2 %v9177_v2  ;;  %2621 = vmatmul.bf16.gmra.mxu0 %v7564_v38  ;;  %v2928_v14 = vsel %vm362_vm1, %v2875_v43, %v2876_v26  ;;  %v6457_v38 = vld [vmem:[%s8945_s2 + $0x60] sm:$0xff] }
 0x26c   : > { %2370 = vmatmul.bf16.gmra.mxu3 %v6637_v56  ;;  %v3025_v16 = vsel %vm466_vm6, %v2972_v27, %v2973_v28  ;;  %v6465_v2 = vld [vmem:[%s8945_s2 + $0xa0] sm:$0xff]  ;;  %3315 = vmatpush.bf16.msrb.mxu2 %v6457_v38 }
 0x26d   : > { %v2781_v39 = vadd.f32 %v7778_v15, %v2681_v6  ;;  %v7889_v44 = vpack.c.bf16 %v3025_v16, %v3026_v30  ;;  %3581 = vmatpush.bf16.msrb.mxu3 %v6465_v2 }
 0x26e   : > { %v2081_v22 = vpop.f32.mrf.mxu2 }
 0x26f   : > { %9178 = vst [vmem:[#allocation55_spill] sm:$0xff] %v7889_v44  ;;  %v2813_v63 = vmax.f32 %v2781_v39, 0.0  ;;  %v2181_v59 = vadd.f32 %v2081_v22, %v9179_v9  ;;  %v2331_v33 = vpop.f32.mrf.mxu3  ;;  %v9180_v9 = vld [vmem:[#allocation34_spill] sm:$0xff] }
 0x270   : > { %v2584_v43 = vpop.f32.mrf.mxu0  ;;  %v1931_v42 = vadd.f32 %v9181_v8, %v9180_v9  ;;  %v6638_v9 = vld [vmem:[%s6715_s10 + $0x70] sm:$0xff]  }
 0x271   : > { %v2431_v19 = vadd.f32 %v2331_v33, %v2181_v59  ;;  %v2845_v27 = vsel %vm293_vm0, 0.0, %v2813_v63  ;;  %v7900_v30 = vpack.c.bf16 %v2813_v63, %v2812_v13  ;;  %v2974_v6 = vrot.slane %v2813_v63, 1 }
 0x272   : > { %v2877_v56 = vrot.slane %v2845_v27, 7 }
 0x273   : > { %v2682_v16 = vadd.f32 %v2582_v25, %v2431_v19  ;;  %v3024_v39 = vsel %vm466_vm6, %v2973_v28, %v2974_v6  ;;  %v6473_v25 = vld [vmem:[%s8945_s2 + $0xe0] sm:$0xff] }
 0x274   : > { %v2927_v22 = vsel %vm362_vm1, %v2876_v26, %v2877_v56  ;;  %3832 = vmatpush.bf16.msrb.mxu0 %v6473_v25  ;;  %v6481_v25 = vld [vmem:[%s8945_s2 + $0x120] sm:$0xff] }
 0x275   : > { %v2782_v59 = vadd.f32 %v7778_v15, %v2682_v16  ;;  %v7909_v33 = vpack.c.bf16 %v2927_v22, %v2928_v14  ;;  %v6456_v16 = vld [vmem:[%s8945_s2 + $0x58] sm:$0xff]  ;;  %4083 = vmatpush.bf16.msrb.mxu1 %v6481_v25 }
 0x276   : > { %v2083_v38 = vpop.f32.mrf.mxu2  ;;  %v6464_v22 = vld [vmem:[%s8945_s2 + $0x98] sm:$0xff]  ;;  %3316 = vmatpush.bf16.msrb.mxu2 %v6456_v16 }
 0x277   : > { %9182 = vst [vmem:[#allocation13_spill] sm:$0xff] %v7909_v33  ;;  %v2814_v2 = vmax.f32 %v2782_v59, 0.0  ;;  %v2182_v13 = vadd.f32 %v2083_v38, %v1931_v42  ;;  %v2333_v63 = vpop.f32.mrf.mxu3  ;;  %3139 = vmatmul.bf16.gmra.mxu1 %v7909_v33  ;;  %3582 = vmatpush.bf16.msrb.mxu3 %v6464_v22 }
 0x278   : > { %v2587_v28 = vpop.f32.mrf.mxu0 }
 0x279   : > { %v2943_v26 = vsel %vm396_vm5, 0.0, %v2814_v2  ;;  %v2432_v8 = vadd.f32 %v2333_v63, %v2182_v13  ;;  %v2878_v19 = vrot.slane %v2814_v2, 7 }
 0x27a   : > { %v2975_v14 = vrot.slane %v2943_v26, 1  ;;  %v6463_v26 = vld [vmem:[%s8945_s2 + $0x90] sm:$0xff] }
 0x27b   : > { %v2683_v27 = vadd.f32 %v2584_v43, %v2432_v8  ;;  %2125 = vmatmul.bf16.gmra.mxu2 %v7187_v3  ;;  %2626 = vmatmul.bf16.gmra.mxu0 %v7592_v53  ;;  %v2926_v42 = vsel %vm362_vm1, %v2877_v56, %v2878_v19  ;;  %v6472_v43 = vld [vmem:[%s8945_s2 + $0xd8] sm:$0xff]  ;;  %v6471_v8 = vld [vmem:[%s8945_s2 + $0xd0] sm:$0xff] }
 0x27c   : > { %2375 = vmatmul.bf16.gmra.mxu3 %v6638_v9  ;;  %v3023_v3 = vsel %vm466_vm6, %v2974_v6, %v2975_v14  ;;  %3833 = vmatpush.bf16.msrb.mxu0 %v6472_v43  ;;  %v6455_v6 = vld [vmem:[%s8945_s2 + $0x50] sm:$0xff] }
 0x27d   : > { %v2783_v53 = vadd.f32 %v7778_v15, %v2683_v27  ;;  %v7934_v56 = vpack.c.bf16 %v3023_v3, %v3024_v39  ;;  %3317 = vmatpush.bf16.msrb.mxu2 %v6455_v6  ;;  %3583 = vmatpush.bf16.msrb.mxu3 %v6463_v26  ;;  %v6454_v3 = vld [vmem:[%s8945_s2 + $0x48] sm:$0xff] }
 0x27e   : > { %v2086_v59 = vpop.f32.mrf.mxu2 }
 0x27f   : > { %9183 = vst [vmem:[#allocation22_spill] sm:$0xff] %v7934_v56  ;;  %v2815_v38 = vmax.f32 %v2783_v53, 0.0  ;;  %v2183_v13 = vadd.f32 %v2086_v59, %v7585_v4  ;;  %v2336_v63 = vpop.f32.mrf.mxu3  ;;  %v6462_v53 = vld [vmem:[%s8945_s2 + $0x88] sm:$0xff] }
 0x280   : > { %v2589_v39 = vpop.f32.mrf.mxu0  ;;  %3834 = vmatpush.bf16.msrb.mxu0 %v6471_v8  ;;  %v6470_v59 = vld [vmem:[%s8945_s2 + $0xc8] sm:$0xff] }
 0x281   : > { %v2433_v27 = vadd.f32 %v2336_v63, %v2183_v13  ;;  %v2847_v4 = vsel %vm293_vm0, 0.0, %v2815_v38  ;;  %v7951_v16 = vpack.c.bf16 %v2815_v38, %v2814_v2  ;;  %v2976_v22 = vrot.slane %v2815_v38, 1  ;;  %3318 = vmatpush.bf16.msrb.mxu2 %v6454_v3  ;;  %3584 = vmatpush.bf16.msrb.mxu3 %v6462_v53 }
 0x282   : > { %v2879_v9 = vrot.slane %v2847_v4, 7 }
 0x283   : > { %v2684_v43 = vadd.f32 %v2587_v28, %v2433_v27  ;;  %v3022_v2 = vsel %vm466_vm6, %v2975_v14, %v2976_v22  ;;  %v9184_v28 = vld [vmem:[#allocation57_spill] sm:$0xff]  ;;  %v6469_v14 = vld [vmem:[%s8945_s2 + $0xc0] sm:$0xff] }
 0x284   : > { %v2925_v38 = vsel %vm362_vm1, %v2878_v19, %v2879_v9  ;;  %v1933_v13 = vadd.f32 %v9184_v28, %v7599_v31  ;;  %3835 = vmatpush.bf16.msrb.mxu0 %v6470_v59  ;;  %v6453_v19 = vld [vmem:[%s8945_s2 + $0x40] sm:$0xff] }
 0x285   : > { %v2784_v63 = vadd.f32 %v7778_v15, %v2684_v43  ;;  %v7969_v25 = vpack.c.bf16 %v2925_v38, %v2926_v42  ;;  %v6461_v31 = vld [vmem:[%s8945_s2 + $0x80] sm:$0xff]  ;;  %3319 = vmatpush.bf16.msrb.mxu2 %v6453_v19 }
 0x286   : > { %v2088_v6 = vpop.f32.mrf.mxu2  ;;  %3585 = vmatpush.bf16.msrb.mxu3 %v6461_v31 }
 0x287   : > { %9185 = vst [vmem:[#allocation29_spill] sm:$0xff] %v7969_v25  ;;  %v2816_v26 = vmax.f32 %v2784_v63, 0.0  ;;  %v2184_v8 = vadd.f32 %v2088_v6, %v1933_v13  ;;  %v2338_v27 = vpop.f32.mrf.mxu3  ;;  %3144 = vmatmul.bf16.gmra.mxu1 %v7969_v25 }
 0x288   : > { %v2592_v42 = vpop.f32.mrf.mxu0  ;;  %3836 = vmatpush.bf16.msrb.mxu0 %v6469_v14 }
 0x289   : > { %v2945_v4 = vsel %vm396_vm5, 0.0, %v2816_v26  ;;  %v2434_v43 = vadd.f32 %v2338_v27, %v2184_v8  ;;  %v2880_v3 = vrot.slane %v2816_v26, 7 }
 0x28a   : > { %v2977_v53 = vrot.slane %v2945_v4, 1  ;;  %v9187_v4 = vld [vmem:[#allocation59_spill] sm:$0xff] }
 0x28b   : > { %v2685_v59 = vadd.f32 %v2589_v39, %v2434_v43  ;;  %2130 = vmatmul.bf16.gmra.mxu2 %v7627_v48  ;;  %5931 = vmatmul.msk.bf16.gmra.mxu0 %vm7634_vm9, %v7629_v49  ;;  %v2924_v38 = vsel %vm362_vm1, %v2879_v9, %v2880_v3 }
 0x28c   : > { %2380 = vmatmul.bf16.gmra.mxu3 %v7562_v11  ;;  %v3021_v28 = vsel %vm466_vm6, %v2976_v22, %v2977_v53 }
 0x28d   : > { %v2785_v13 = vadd.f32 %v7778_v15, %v2685_v59  ;;  %v7993_v63 = vpack.c.bf16 %v3021_v28, %v3022_v2 }
 0x28e   : > { %v2091_v6 = vpop.f32.mrf.mxu2 }
 0x28f   : > { %9186 = vst [vmem:[#allocation41_spill] sm:$0xff] %v7993_v63  ;;  %v2817_v39 = vmax.f32 %v2785_v13, 0.0  ;;  %v2185_v48 = vadd.f32 %v2091_v6, %v7614_v51  ;;  %v2341_v8 = vpop.f32.mrf.mxu3  ;;  %v1935_v51 = vadd.f32 %v9187_v4, %v7643_v41 }
 0x290   : > { %v2594_v27 = vpop.f32.mrf.mxu0 }
 0x291   : > { %v2435_v19 = vadd.f32 %v2341_v8, %v2185_v48  ;;  %v2849_v49 = vsel %vm293_vm0, 0.0, %v2817_v39  ;;  %v7998_v9 = vpack.c.bf16 %v2817_v39, %v2816_v26  ;;  %v2978_v11 = vrot.slane %v2817_v39, 1 }
 0x292   : > { %v2881_v31 = vrot.slane %v2849_v49, 7 }
 0x293   : > { %v2686_v14 = vadd.f32 %v2592_v42, %v2435_v19  ;;  %v3020_v22 = vsel %vm466_vm6, %v2977_v53, %v2978_v11  ;;  %v9189_v42 = vld [vmem:[#allocation3_spill] sm:$0xff] }
 0x294   : > { %v2923_v2 = vsel %vm362_vm1, %v2880_v3, %v2881_v31  ;;  %v9190_v39 = vrot.slane %v9189_v42, 7  ;;  %v9191_v3 = vmov 0 }
 0x295   : > { %v2786_v43 = vadd.f32 %v7778_v15, %v2686_v14  ;;  %v8007_v59 = vpack.c.bf16 %v2923_v2, %v2924_v38  ;;  %v9192_v3 = vsel %vm8015_vm10, 4294967295, %v9191_v3 }
 0x296   : > { %v2093_v28 = vpop.f32.mrf.mxu2  ;;  %v5831_v48 = vpack.c.bf16 0.0, %v9190_v39  ;;  %9193 = vst [vmem:[#allocation34_spill] sm:$0xff] %v9192_v3 }
 0x297   : > { %9188 = vst [vmem:[#allocation35_spill] sm:$0xff] %v8007_v59  ;;  %v2818_v13 = vmax.f32 %v2786_v43, 0.0  ;;  %v2186_v26 = vadd.f32 %v2093_v28, %v1935_v51  ;;  %v2343_v6 = vpop.f32.mrf.mxu3  ;;  %3149 = vmatmul.bf16.gmra.mxu1 %v8007_v59 }
 0x298   : > { %v2597_v53 = vpop.f32.mrf.mxu0 }
 0x299   : > { %v2947_v41 = vsel %vm396_vm5, 0.0, %v2818_v13  ;;  %v2436_v38 = vadd.f32 %v2343_v6, %v2186_v26  ;;  %v2882_v8 = vrot.slane %v2818_v13, 7  ;;  %v6480_v6 = vld [vmem:[%s8945_s2 + $0x118] sm:$0xff] }
 0x29a   : > { %v2979_v19 = vrot.slane %v2947_v41, 1  ;;  %4084 = vmatpush.bf16.msrb.mxu1 %v6480_v6 }
 0x29b   : > { %v2687_v49 = vadd.f32 %v2594_v27, %v2436_v38  ;;  %5832 = vmatmul.msk.bf16.gmra.mxu2 %vm8015_vm10, %v5831_v48  ;;  %2636 = vmatmul.bf16.gmra.mxu0 %v9157_v55  ;;  %v2922_v14 = vsel %vm362_vm1, %v2881_v31, %v2882_v8 }
 0x29c   : > { %2385 = vmatmul.bf16.gmra.mxu3 %v9157_v55  ;;  %v3019_v2 = vsel %vm466_vm6, %v2978_v11, %v2979_v19 }
 0x29d   : > { %v2787_v4 = vadd.f32 %v7778_v15, %v2687_v49  ;;  %v8030_v51 = vpack.c.bf16 %v3019_v2, %v3020_v22  ;;  %v1937_v49 = vadd.f32 %v7650_v57, %v7657_v40  ;;  %v9198_v57 = vrot.slane %v7790_v61, 1 }
 0x29e   : > { %v2096_v43 = vpop.f32.mrf.mxu2 }
 0x29f   : > { %9194 = vst [vmem:[#allocation27_spill] sm:$0xff] %v8030_v51  ;;  %v2819_v28 = vmax.f32 %v2787_v4, 0.0  ;;  %v2187_v27 = vadd.f32 %v2096_v43, %v7652_v23  ;;  %v2346_v26 = vpop.f32.mrf.mxu3 }
 0x2a0   : > { %v2599_v42 = vpop.f32.mrf.mxu0 }
 0x2a1   : > { %v2437_v31 = vadd.f32 %v2346_v26, %v2187_v27  ;;  %v2851_v39 = vsel %vm293_vm0, 0.0, %v2819_v28  ;;  %v8038_v11 = vpack.c.bf16 %v2819_v28, %v2818_v13  ;;  %v2980_v48 = vrot.slane %v2819_v28, 1 }
 0x2a2   : > { %v2883_v22 = vrot.slane %v2851_v39, 7 }
 0x2a3   : > { %9195 = vst [vmem:[#allocation57_spill] sm:$0xff] %v8038_v11  ;;  %v2688_v41 = vadd.f32 %v2597_v53, %v2437_v31  ;;  %v3018_v38 = vsel %vm466_vm6, %v2979_v19, %v2980_v48  ;;  %v9197_v31 = vmov 0.0  }
 0x2a4   : > { %v2921_v23 = vsel %vm362_vm1, %v2882_v8, %v2883_v22  ;;  %v8052_v8 = vpop.f32.mrf.mxu1  ;;  %v6066_v40 = vpack.c.bf16 %v9198_v57, %v9197_v31 }
 0x2a5   : > { %v2788_v2 = vadd.f32 %v7778_v15, %v2688_v41  ;;  %v8047_v4 = vpack.c.bf16 %v2921_v23, %v2922_v14 }
 0x2a6   : > { %v2098_v43 = vpop.f32.mrf.mxu2 }
 0x2a7   : > { %9196 = vst [vmem:[#allocation59_spill] sm:$0xff] %v8047_v4  ;;  %v2820_v27 = vmax.f32 %v2788_v2, 0.0  ;;  %v2188_v13 = vadd.f32 %v2098_v43, %v1937_v49  ;;  %v2348_v26 = vpop.f32.mrf.mxu3  ;;  %3154 = vmatmul.bf16.gmra.mxu1 %v8047_v4 }
 0x2a8   : > { %v2602_v53 = vpop.f32.mrf.mxu0 }
 0x2a9   : > { %v2949_v19 = vsel %vm396_vm5, 0.0, %v2820_v27  ;;  %v2438_v28 = vadd.f32 %v2348_v26, %v2188_v13  ;;  %v2884_v6 = vrot.slane %v2820_v27, 7 }
 0x2aa   : > { %v2981_v14 = vrot.slane %v2949_v19, 1 }
 0x2ab   : > { %v2689_v39 = vadd.f32 %v2599_v42, %v2438_v28  ;;  %3320 = vmatmul.bf16.vlgmr.msrb.gmra.mxu2 %v9157_v55  ;;  %6119 = vmatmul.msk.bf16.vlgmr.msrb.gmra.mxu0 %vm6861_vm4, %v7809_v60  ;;  %v2920_v41 = vsel %vm362_vm1, %v2883_v22, %v2884_v6 }
 0x2ac   : > { %6067 = vmatmul.msk.bf16.vlgmr.msrb.gmra.mxu3 %vm7210_vm8, %v6066_v40  ;;  %v3017_v49 = vsel %vm466_vm6, %v2980_v48, %v2981_v14  ;;  %v8075_v31 = vpop.f32.mrf.mxu1 }
 0x2ad   : > { %v2789_v61 = vadd.f32 %v7778_v15, %v2689_v39  ;;  %v8068_v2 = vpack.c.bf16 %v3017_v49, %v3018_v38 }
 0x2ae   : > { %v2101_v42 = vpop.f32.mrf.mxu2 }
 0x2af   : > { %9200 = vst [vmem:[#allocation3_spill] sm:$0xff] %v8068_v2  ;;  %v2821_v43 = vmax.f32 %v2789_v61, 0.0  ;;  %v2189_v13 = vadd.f32 %v2101_v42, %v7663_v24  ;;  %v2351_v26 = vpop.f32.mrf.mxu3  ;;  %v1939_v24 = vadd.f32 %v7661_v18, %v7671_v46 }
 0x2b0   : > { %v2604_v29 = vpop.f32.mrf.mxu0 }
 0x2b1   : > { %v2439_v60 = vadd.f32 %v2351_v26, %v2189_v13  ;;  %v2853_v22 = vsel %vm293_vm0, 0.0, %v2821_v43  ;;  %v8073_v19 = vpack.c.bf16 %v2821_v43, %v2820_v27  ;;  %v2982_v28 = vrot.slane %v2821_v43, 1 }
 0x2b2   : > { %v2885_v48 = vrot.slane %v2853_v22, 7 }
 0x2b3   : > { %v2690_v57 = vadd.f32 %v2602_v53, %v2439_v60  ;;  %v3016_v38 = vsel %vm466_vm6, %v2981_v14, %v2982_v28 }
 0x2b4   : > { %v2919_v40 = vsel %vm362_vm1, %v2884_v6, %v2885_v48  ;;  %v8093_v46 = vpop.f32.mrf.mxu1 }
 0x2b5   : > { %v2790_v39 = vadd.f32 %v7778_v15, %v2690_v57  ;;  %v8084_v23 = vpack.c.bf16 %v2919_v40, %v2920_v41 }
 0x2b6   : > { %v2103_v27 = vpop.f32.mrf.mxu2 }
 0x2b7   : > { %9201 = vst [vmem:[#allocation45_spill] sm:$0xff] %v8084_v23  ;;  %v2822_v49 = vmax.f32 %v2790_v39, 0.0  ;;  %v2190_v61 = vadd.f32 %v2103_v27, %v1939_v24  ;;  %v2353_v42 = vpop.f32.mrf.mxu3  ;;  %3159 = vmatmul.bf16.gmra.mxu1 %v8084_v23 }
 0x2b8   : > { %v2607_v53 = vpop.f32.mrf.mxu0 }
 0x2b9   : > { %v2951_v14 = vsel %vm396_vm5, 0.0, %v2822_v49  ;;  %v2440_v43 = vadd.f32 %v2353_v42, %v2190_v61  ;;  %v2886_v13 = vrot.slane %v2822_v49, 7 }
 0x2ba   : > { %v2983_v6 = vrot.slane %v2951_v14, 1 }
 0x2bb   : > { %v2691_v26 = vadd.f32 %v2604_v29, %v2440_v43  ;;  %3325 = vmatmul.bf16.gmra.mxu2 %v7800_v47  ;;  %3842 = vmatmul.bf16.gmra.mxu0 %v7843_v5  ;;  %v2918_v18 = vsel %vm362_vm1, %v2885_v48, %v2886_v13  ;;  %v6479_v48 = vld [vmem:[%s8945_s2 + $0x110] sm:$0xff] }
 0x2bc   : > { %3591 = vmatmul.bf16.gmra.mxu3 %v7825_v52  ;;  %v3015_v41 = vsel %vm466_vm6, %v2982_v28, %v2983_v6  ;;  %4085 = vmatpush.bf16.msrb.mxu1 %v6479_v48 }
 0x2bd   : > { %v2791_v60 = vadd.f32 %v7778_v15, %v2691_v26  ;;  %v8099_v22 = vpack.c.bf16 %v3015_v41, %v3016_v38  ;;  %v1941_v41 = vadd.f32 %v7675_v35, %v7682_v20 }
 0x2be   : > { %v2106_v57 = vpop.f32.mrf.mxu2 }
 0x2bf   : > { %v2823_v29 = vmax.f32 %v2791_v60, 0.0  ;;  %v2191_v40 = vadd.f32 %v2106_v57, %v7677_v34  ;;  %v2356_v24 = vpop.f32.mrf.mxu3 }
 0x2c0   : > { %v2609_v39 = vpop.f32.mrf.mxu0 }
 0x2c1   : > { %v2441_v27 = vadd.f32 %v2356_v24, %v2191_v40  ;;  %v2855_v61 = vsel %vm293_vm0, 0.0, %v2823_v29  ;;  %v8107_v28 = vpack.c.bf16 %v2823_v29, %v2822_v49  ;;  %v2984_v42 = vrot.slane %v2823_v29, 1 }
 0x2c2   : > { %v2887_v38 = vrot.slane %v2855_v61, 7 }
 0x2c3   : > { %v2692_v14 = vadd.f32 %v2607_v53, %v2441_v27  ;;  %v3014_v43 = vsel %vm466_vm6, %v2983_v6, %v2984_v42 }
 0x2c4   : > { %v8111_v34 = vpop.f32.mrf.mxu1  ;;  %v2917_v26 = vsel %vm362_vm1, %v2886_v13, %v2887_v38 }
 0x2c5   : > { %v2792_v60 = vadd.f32 %v7778_v15, %v2692_v14  ;;  %v8118_v57 = vpack.c.bf16 %v2917_v26, %v2918_v18 }
 0x2c6   : > { %v2108_v49 = vpop.f32.mrf.mxu2 }
 0x2c7   : > { %9202 = vst [vmem:[#allocation61_spill] sm:$0xff] %v8118_v57  ;;  %v2824_v40 = vmax.f32 %v2792_v60, 0.0  ;;  %v2192_v29 = vadd.f32 %v2108_v49, %v1941_v41  ;;  %v2358_v24 = vpop.f32.mrf.mxu3  ;;  %3164 = vmatmul.bf16.gmra.mxu1 %v8118_v57 }
 0x2c8   : > { %v2612_v53 = vpop.f32.mrf.mxu0 }
 0x2c9   : > { %v2953_v6 = vsel %vm396_vm5, 0.0, %v2824_v40  ;;  %v2442_v48 = vadd.f32 %v2358_v24, %v2192_v29  ;;  %v2888_v27 = vrot.slane %v2824_v40, 7 }
 0x2ca   : > { %v2985_v13 = vrot.slane %v2953_v6, 1 }
 0x2cb   : > { %v2693_v61 = vadd.f32 %v2609_v39, %v2442_v48  ;;  %3330 = vmatmul.bf16.gmra.mxu2 %v7836_v10  ;;  %3847 = vmatmul.bf16.gmra.mxu0 %v7875_v45  ;;  %v2916_v35 = vsel %vm362_vm1, %v2887_v38, %v2888_v27 }
 0x2cc   : > { %3596 = vmatmul.bf16.gmra.mxu3 %v7860_v0  ;;  %v8128_v20 = vpop.f32.mrf.mxu1  ;;  %v3013_v18 = vsel %vm466_vm6, %v2984_v42, %v2985_v13 }
 0x2cd   : > { %v2793_v14 = vadd.f32 %v7778_v15, %v2693_v61  ;;  %v8133_v26 = vpack.c.bf16 %v3013_v18, %v3014_v43 }
 0x2ce   : > { %v2111_v41 = vpop.f32.mrf.mxu2 }
 0x2cf   : > { %v2825_v39 = vmax.f32 %v2793_v14, 0.0  ;;  %v2193_v60 = vadd.f32 %v2111_v41, %v7688_v12  ;;  %v2361_v49 = vpop.f32.mrf.mxu3  ;;  %v1943_v12 = vadd.f32 %v7686_v21, %v7696_v32 }
 0x2d0   : > { %v2614_v29 = vpop.f32.mrf.mxu0 }
 0x2d1   : > { %v2443_v24 = vadd.f32 %v2361_v49, %v2193_v60  ;;  %v2857_v38 = vsel %vm293_vm0, 0.0, %v2825_v39  ;;  %v8138_v6 = vpack.c.bf16 %v2825_v39, %v2824_v40  ;;  %v2986_v48 = vrot.slane %v2825_v39, 1 }
 0x2d2   : > { %v2889_v3 = vrot.slane %v2857_v38, 7 }
 0x2d3   : > { %v2694_v55 = vadd.f32 %v2612_v53, %v2443_v24  ;;  %v3012_v42 = vsel %vm466_vm6, %v2985_v13, %v2986_v48 }
 0x2d4   : > { %v8142_v43 = vpop.f32.mrf.mxu1  ;;  %v2915_v61 = vsel %vm362_vm1, %v2888_v27, %v2889_v3 }
 0x2d5   : > { %v2794_v18 = vadd.f32 %v7778_v15, %v2694_v55  ;;  %v8149_v14 = vpack.c.bf16 %v2915_v61, %v2916_v35 }
 0x2d6   : > { %v2113_v40 = vpop.f32.mrf.mxu2 }
 0x2d7   : > { %v2826_v41 = vmax.f32 %v2794_v18, 0.0  ;;  %v2194_v39 = vadd.f32 %v2113_v40, %v1943_v12  ;;  %v2363_v60 = vpop.f32.mrf.mxu3  ;;  %3169 = vmatmul.bf16.gmra.mxu1 %v8149_v14 }
 0x2d8   : > { %v2617_v53 = vpop.f32.mrf.mxu0 }
 0x2d9   : > { %v2955_v13 = vsel %vm396_vm5, 0.0, %v2826_v41  ;;  %v2444_v49 = vadd.f32 %v2363_v60, %v2194_v39  ;;  %v2890_v24 = vrot.slane %v2826_v41, 7 }
 0x2da   : > { %v2987_v27 = vrot.slane %v2955_v13, 1 }
 0x2db   : > { %v2695_v38 = vadd.f32 %v2614_v29, %v2444_v49  ;;  %3335 = vmatmul.bf16.gmra.mxu2 %v7868_v1  ;;  %3852 = vmatmul.bf16.gmra.mxu0 %v7909_v33  ;;  %v2914_v21 = vsel %vm362_vm1, %v2889_v3, %v2890_v24  ;;  %v6478_v3 = vld [vmem:[%s8945_s2 + $0x108] sm:$0xff] }
 0x2dc   : > { %3601 = vmatmul.bf16.gmra.mxu3 %v7889_v44  ;;  %v8159_v32 = vpop.f32.mrf.mxu1  ;;  %v3011_v55 = vsel %vm466_vm6, %v2986_v48, %v2987_v27  ;;  %4086 = vmatpush.bf16.msrb.mxu1 %v6478_v3 }
 0x2dd   : > { %v2795_v35 = vadd.f32 %v7778_v15, %v2695_v38  ;;  %v8164_v61 = vpack.c.bf16 %v3011_v55, %v3012_v42 }
 0x2de   : > { %v2116_v12 = vpop.f32.mrf.mxu2 }
 0x2df   : > { %9203 = vst [vmem:[#allocation62_spill] sm:$0xff] %v8164_v61  ;;  %v2827_v29 = vmax.f32 %v2795_v35, 0.0  ;;  %v2195_v18 = vadd.f32 %v2116_v12, %v7702_v50  ;;  %v2366_v40 = vpop.f32.mrf.mxu3  ;;  %v9204_v12 = vld [vmem:[#allocation28_spill] sm:$0xff] }
 0x2e0   : > { %v2619_v39 = vpop.f32.mrf.mxu0 }
 0x2e1   : > { %v2445_v60 = vadd.f32 %v2366_v40, %v2195_v18  ;;  %v2859_v13 = vsel %vm293_vm0, 0.0, %v2827_v29  ;;  %v8172_v48 = vpack.c.bf16 %v2827_v29, %v2826_v41  ;;  %v2988_v49 = vrot.slane %v2827_v29, 1 }
 0x2e2   : > { %v2891_v42 = vrot.slane %v2859_v13, 7  ;;  %v1945_v18 = vadd.f32 %v9204_v12, %v7707_v62 }
 0x2e3   : > { %v2696_v38 = vadd.f32 %v2617_v53, %v2445_v60  ;;  %v3010_v55 = vsel %vm466_vm6, %v2987_v27, %v2988_v49 }
 0x2e4   : > { %v8176_v50 = vpop.f32.mrf.mxu1  ;;  %v2913_v35 = vsel %vm362_vm1, %v2890_v24, %v2891_v42 }
 0x2e5   : > { %v2796_v40 = vadd.f32 %v7778_v15, %v2696_v38  ;;  %v8183_v36 = vpack.c.bf16 %v2913_v35, %v2914_v21 }
 0x2e6   : > { %v2118_v41 = vpop.f32.mrf.mxu2 }
 0x2e7   : > { %9205 = vst [vmem:[#allocation28_spill] sm:$0xff] %v8183_v36  ;;  %v2828_v3 = vmax.f32 %v2796_v40, 0.0  ;;  %v2196_v29 = vadd.f32 %v2118_v41, %v1945_v18  ;;  %v2368_v13 = vpop.f32.mrf.mxu3  ;;  %3174 = vmatmul.bf16.gmra.mxu1 %v8183_v36 }
 0x2e8   : > { %v2622_v53 = vpop.f32.mrf.mxu0 }
 0x2e9   : > { %v2957_v27 = vsel %vm396_vm5, 0.0, %v2828_v3  ;;  %v2446_v60 = vadd.f32 %v2368_v13, %v2196_v29  ;;  %v2892_v33 = vrot.slane %v2828_v3, 7 }
 0x2ea   : > { %v2989_v24 = vrot.slane %v2957_v27, 1 }
 0x2eb   : > { %v2697_v44 = vadd.f32 %v2619_v39, %v2446_v60  ;;  %3340 = vmatmul.bf16.gmra.mxu2 %v7900_v30  ;;  %3857 = vmatmul.bf16.gmra.mxu0 %v7969_v25  ;;  %v2912_v62 = vsel %vm362_vm1, %v2891_v42, %v2892_v33 }
 0x2ec   : > { %3606 = vmatmul.bf16.gmra.mxu3 %v7934_v56  ;;  %v8193_v21 = vpop.f32.mrf.mxu1  ;;  %v3009_v38 = vsel %vm466_vm6, %v2988_v49, %v2989_v24 }
 0x2ed   : > { %v2797_v35 = vadd.f32 %v7778_v15, %v2697_v44  ;;  %v8198_v12 = vpack.c.bf16 %v3009_v38, %v3010_v55  ;;  %v9208_v38 = vld [vmem:[#allocation46_spill] sm:$0xff] }
 0x2ee   : > { %v2121_v18 = vpop.f32.mrf.mxu2 }
 0x2ef   : > { %9206 = vst [vmem:[#allocation63_spill] sm:$0xff] %v8198_v12  ;;  %v2829_v39 = vmax.f32 %v2797_v35, 0.0  ;;  %v2197_v40 = vadd.f32 %v2121_v18, %v7713_v37  ;;  %v2371_v41 = vpop.f32.mrf.mxu3  ;;  %v9207_v37 = vld [vmem:[#allocation47_spill] sm:$0xff] }
 0x2f0   : > { %v2624_v29 = vpop.f32.mrf.mxu0  ;;  %v1947_v35 = vadd.f32 %v9208_v38, %v9207_v37 }
 0x2f1   : > { %v2447_v13 = vadd.f32 %v2371_v41, %v2197_v40  ;;  %v2861_v42 = vsel %vm293_vm0, 0.0, %v2829_v39  ;;  %v8203_v27 = vpack.c.bf16 %v2829_v39, %v2828_v3  ;;  %v2990_v60 = vrot.slane %v2829_v39, 1 }
 0x2f2   : > { %v2893_v25 = vrot.slane %v2861_v42, 7 }
 0x2f3   : > { %v2698_v56 = vadd.f32 %v2622_v53, %v2447_v13  ;;  %v3008_v44 = vsel %vm466_vm6, %v2989_v24, %v2990_v60 }
 0x2f4   : > { %v8207_v49 = vpop.f32.mrf.mxu1  ;;  %v2911_v55 = vsel %vm362_vm1, %v2892_v33, %v2893_v25 }
 0x2f5   : > { %v2798_v18 = vadd.f32 %v7778_v15, %v2698_v56  ;;  %v8214_v40 = vpack.c.bf16 %v2911_v55, %v2912_v62 }
 0x2f6   : > { %v2123_v3 = vpop.f32.mrf.mxu2 }
 0x2f7   : > { %9209 = vst [vmem:[#allocation47_spill] sm:$0xff] %v8214_v40  ;;  %v2830_v41 = vmax.f32 %v2798_v18, 0.0  ;;  %v2198_v39 = vadd.f32 %v2123_v3, %v1947_v35  ;;  %v2373_v42 = vpop.f32.mrf.mxu3  ;;  %3179 = vmatmul.bf16.gmra.mxu1 %v8214_v40  ;;  %v9211_v18 = vld [vmem:[#allocation40_spill] sm:$0xff] }
 0x2f8   : > { %v2627_v53 = vpop.f32.mrf.mxu0 }
 0x2f9   : > { %v2959_v24 = vsel %vm396_vm5, 0.0, %v2830_v41  ;;  %v2448_v13 = vadd.f32 %v2373_v42, %v2198_v39  ;;  %v2894_v45 = vrot.slane %v2830_v41, 7 }
 0x2fa   : > { %v2991_v33 = vrot.slane %v2959_v24, 1 }
 0x2fb   : > { %v2699_v0 = vadd.f32 %v2624_v29, %v2448_v13  ;;  %3345 = vmatmul.bf16.gmra.mxu2 %v7951_v16  ;;  %3862 = vmatmul.bf16.gmra.mxu0 %v8007_v59  ;;  %v2910_v56 = vsel %vm362_vm1, %v2893_v25, %v2894_v45  ;;  %v6477_v25 = vld [vmem:[%s8945_s2 + $0x100] sm:$0xff]  ;;  %v9213_v59 = vld [vmem:[#allocation49_spill] sm:$0xff] }
 0x2fc   : > { %3611 = vmatmul.bf16.gmra.mxu3 %v7993_v63  ;;  %v8224_v62 = vpop.f32.mrf.mxu1  ;;  %v3007_v55 = vsel %vm466_vm6, %v2990_v60, %v2991_v33  ;;  %4087 = vmatpush.bf16.msrb.mxu1 %v6477_v25  ;;  %v9214_v63 = vld [vmem:[#allocation48_spill] sm:$0xff] }
 0x2fd   : > { %v2799_v37 = vadd.f32 %v7778_v15, %v2699_v0  ;;  %v8229_v38 = vpack.c.bf16 %v3007_v55, %v3008_v44 }
 0x2fe   : > { %v2126_v35 = vpop.f32.mrf.mxu2 }
 0x2ff   : > { %9210 = vst [vmem:[#allocation46_spill] sm:$0xff] %v8229_v38  ;;  %v2831_v29 = vmax.f32 %v2799_v37, 0.0  ;;  %v2199_v3 = vadd.f32 %v2126_v35, %v9211_v18  ;;  %v2376_v39 = vpop.f32.mrf.mxu3 }
 0x300   : > { %v2629_v42 = vpop.f32.mrf.mxu0 }
 0x301   : > { %v2449_v24 = vadd.f32 %v2376_v39, %v2199_v3  ;;  %v2863_v13 = vsel %vm293_vm0, 0.0, %v2831_v29  ;;  %v8237_v60 = vpack.c.bf16 %v2831_v29, %v2830_v41  ;;  %v2992_v0 = vrot.slane %v2831_v29, 1 }
 0x302   : > { %v2895_v44 = vrot.slane %v2863_v13, 7  ;;  %v1949_v3 = vadd.f32 %v9214_v63, %v9213_v59 }
 0x303   : > { %v2700_v55 = vadd.f32 %v2627_v53, %v2449_v24  ;;  %v3006_v37 = vsel %vm466_vm6, %v2991_v33, %v2992_v0 }
 0x304   : > { %v8241_v35 = vpop.f32.mrf.mxu1  ;;  %v2909_v18 = vsel %vm362_vm1, %v2894_v45, %v2895_v44 }
 0x305   : > { %9212 = vst [vmem:[#allocation40_spill] sm:$0xff] %v8241_v35  ;;  %v2800_v39 = vadd.f32 %v7778_v15, %v2700_v55  ;;  %v8248_v5 = vpack.c.bf16 %v2909_v18, %v2910_v56  ;;  %v8265_v56 = vld [vmem:[%s8946_s3] ss:$0 sm:$0xff] }
 0x306   : > { %v2128_v41 = vpop.f32.mrf.mxu2 }
 0x307   : > { %9215 = vst [vmem:[#allocation49_spill] sm:$0xff] %v8248_v5  ;;  %v2832_v25 = vmax.f32 %v2800_v39, 0.0  ;;  %v2200_v29 = vadd.f32 %v2128_v41, %v1949_v3  ;;  %v2378_v13 = vpop.f32.mrf.mxu3  ;;  %3184 = vmatmul.bf16.gmra.mxu1 %v8248_v5  ;;  %v6492_v41 = vld [vmem:[%s8945_s2 + $0x178] sm:$0xff] }
 0x308   : > { %v2632_v53 = vpop.f32.mrf.mxu0  ;;  %4331 = vmatpush.bf16.msra.mxu2 %v6492_v41 }
 0x309   : > { %v2961_v33 = vsel %vm396_vm5, 0.0, %v2832_v25  ;;  %v2450_v24 = vadd.f32 %v2378_v13, %v2200_v29  ;;  %v2896_v52 = vrot.slane %v2832_v25, 7 }
 0x30a   : > { %v2993_v45 = vrot.slane %v2961_v33, 1 }
 0x30b   : > { %v2701_v35 = vadd.f32 %v2629_v42, %v2450_v24  ;;  %3350 = vmatmul.bf16.gmra.mxu2 %v7998_v9  ;;  %3867 = vmatmul.bf16.gmra.mxu0 %v8047_v4  ;;  %v2908_v15 = vsel %vm362_vm1, %v2895_v44, %v2896_v52 }
 0x30c   : > { %3616 = vmatmul.bf16.gmra.mxu3 %v8030_v51  ;;  %v8258_v63 = vpop.f32.mrf.mxu1  ;;  %v3005_v59 = vsel %vm466_vm6, %v2992_v0, %v2993_v45  ;;  %v6500_v0 = vld [vmem:[%s8945_s2 + $0x1b8] sm:$0xff] }
 0x30d   : > { %v2801_v42 = vadd.f32 %v8265_v56, %v2701_v35  ;;  %v8268_v55 = vpack.c.bf16 %v3005_v59, %v3006_v37  ;;  %4582 = vmatpush.bf16.msra.mxu3 %v6500_v0 }
 0x30e   : > { %v2131_v18 = vpop.f32.mrf.mxu2 }
 0x30f   : > { %9216 = vst [vmem:[#allocation48_spill] sm:$0xff] %v8268_v55  ;;  %v2833_v3 = vmax.f32 %v2801_v42, 0.0  ;;  %v2201_v44 = vadd.f32 %v2131_v18, %v7743_v17  ;;  %v2381_v39 = vpop.f32.mrf.mxu3 }
 0x310   : > { %v2634_v29 = vpop.f32.mrf.mxu0 }
 0x311   : > { %v2451_v13 = vadd.f32 %v2381_v39, %v2201_v44  ;;  %v2865_v35 = vsel %vm293_vm0, 0.0, %v2833_v3  ;;  %v8279_v37 = vpack.c.bf16 %v2833_v3, %v2832_v25  ;;  %v2994_v33 = vrot.slane %v2833_v3, 1  ;;  %v6508_v44 = vld [vmem:[%s8945_s2 + $0x1f8] sm:$0xff] }
 0x312   : > { %v2897_v17 = vrot.slane %v2865_v35, 7  ;;  %v9217_v39 = vld [vmem:[#allocation50_spill] sm:$0xff]  ;;  %4832 = vmatpush.bf16.msra.mxu0 %v6508_v44 }
 0x313   : > { %v2702_v24 = vadd.f32 %v2632_v53, %v2451_v13  ;;  %v3004_v59 = vsel %vm466_vm6, %v2993_v45, %v2994_v33  ;;  %v1951_v41 = vadd.f32 %v9217_v39, %v7750_v58  ;;  %v6516_v58 = vld [vmem:[%s8945_s2 + $0x238] sm:$0xff] }
 0x314   : > { %v8283_v42 = vpop.f32.mrf.mxu1  ;;  %v2907_v18 = vsel %vm362_vm1, %v2896_v52, %v2897_v17  ;;  %5082 = vmatpush.bf16.msra.mxu1 %v6516_v58 }
 0x315   : > { %v2802_v25 = vadd.f32 %v8265_v56, %v2702_v24  ;;  %v8293_v3 = vpack.c.bf16 %v2907_v18, %v2908_v15 }
 0x316   : > { %v2133_v53 = vpop.f32.mrf.mxu2 }
 0x317   : > { %9218 = vst [vmem:[#allocation50_spill] sm:$0xff] %v8293_v3  ;;  %v2834_v0 = vmax.f32 %v2802_v25, 0.0  ;;  %v2202_v45 = vadd.f32 %v2133_v53, %v1951_v41  ;;  %v2383_v13 = vpop.f32.mrf.mxu3  ;;  %3189 = vmatmul.bf16.gmra.mxu1 %v8293_v3  ;;  %v9221_v53 = vld [vmem:[#allocation51_spill] sm:$0xff] }
 0x318   : > { %v2637_v35 = vpop.f32.mrf.mxu0 }
 0x319   : > { %v2963_v52 = vsel %vm396_vm5, 0.0, %v2834_v0  ;;  %v2452_v4 = vadd.f32 %v2383_v13, %v2202_v45  ;;  %v2898_v51 = vrot.slane %v2834_v0, 7 }
 0x31a   : > { %v2995_v24 = vrot.slane %v2963_v52, 1 }
 0x31b   : > { %v2703_v15 = vadd.f32 %v2634_v29, %v2452_v4  ;;  %3355 = vmatmul.bf16.gmra.mxu2 %v8038_v11  ;;  %3872 = vmatmul.bf16.gmra.mxu0 %v8084_v23  ;;  %v2906_v18 = vsel %vm362_vm1, %v2897_v17, %v2898_v51 }
 0x31c   : > { %3621 = vmatmul.bf16.gmra.mxu3 %v8068_v2  ;;  %v8306_v44 = vpop.f32.mrf.mxu1  ;;  %v3003_v39 = vsel %vm466_vm6, %v2994_v33, %v2995_v24 }
 0x31d   : > { %9219 = vst [vmem:[#allocation64_spill] sm:$0xff] %v8306_v44  ;;  %v2803_v41 = vadd.f32 %v8265_v56, %v2703_v15  ;;  %v8311_v25 = vpack.c.bf16 %v3003_v39, %v3004_v59  ;;  %v9223_v39 = vld [vmem:[#allocation7_spill] sm:$0xff] }
 0x31e   : > { %v2136_v4 = vpop.f32.mrf.mxu2 }
 0x31f   : > { %9220 = vst [vmem:[#allocation65_spill] sm:$0xff] %v8311_v25  ;;  %v2835_v29 = vmax.f32 %v2803_v41, 0.0  ;;  %v2203_v45 = vadd.f32 %v2136_v4, %v9221_v53  ;;  %v2386_v13 = vpop.f32.mrf.mxu3  ;;  %v1953_v41 = vadd.f32 %v8052_v8, %v9223_v39 }
 0x320   : > { %v2639_v52 = vpop.f32.mrf.mxu0 }
 0x321   : > { %v2453_v23 = vadd.f32 %v2386_v13, %v2203_v45  ;;  %v2867_v17 = vsel %vm293_vm0, 0.0, %v2835_v29  ;;  %v8316_v2 = vpack.c.bf16 %v2835_v29, %v2834_v0  ;;  %v2996_v58 = vrot.slane %v2835_v29, 1 }
 0x322   : > { %v2899_v11 = vrot.slane %v2867_v17, 7 }
 0x323   : > { %v2704_v44 = vadd.f32 %v2637_v35, %v2453_v23  ;;  %v3002_v33 = vsel %vm466_vm6, %v2995_v24, %v2996_v58 }
 0x324   : > { %v8320_v59 = vpop.f32.mrf.mxu1  ;;  %v2905_v15 = vsel %vm362_vm1, %v2898_v51, %v2899_v11 }
 0x325   : > { %9222 = vst [vmem:[#allocation51_spill] sm:$0xff] %v8320_v59  ;;  %v2804_v4 = vadd.f32 %v8265_v56, %v2704_v44  ;;  %v8327_v53 = vpack.c.bf16 %v2905_v15, %v2906_v18  ;;  %v6491_v44 = vld [vmem:[%s8945_s2 + $0x170] sm:$0xff] }
 0x326   : > { %v2138_v0 = vpop.f32.mrf.mxu2  ;;  %v6499_v15 = vld [vmem:[%s8945_s2 + $0x1b0] sm:$0xff]  ;;  %4332 = vmatpush.bf16.msra.mxu2 %v6491_v44 }
 0x327   : > { %9224 = vst [vmem:[#allocation7_spill] sm:$0xff] %v8327_v53  ;;  %v2836_v45 = vmax.f32 %v2804_v4, 0.0  ;;  %v2204_v29 = vadd.f32 %v2138_v0, %v1953_v41  ;;  %v2388_v13 = vpop.f32.mrf.mxu3  ;;  %3194 = vmatmul.bf16.gmra.mxu1 %v8327_v53  ;;  %4583 = vmatpush.bf16.msra.mxu3 %v6499_v15 }
 0x328   : > { %v3838_v23 = vpop.f32.mrf.mxu0 }
 0x329   : > { %v2965_v35 = vsel %vm396_vm5, 0.0, %v2836_v45  ;;  %v2454_v24 = vadd.f32 %v2388_v13, %v2204_v29  ;;  %v2900_v17 = vrot.slane %v2836_v45, 7 }
 0x32a   : > { %v2997_v51 = vrot.slane %v2965_v35, 1 }
 0x32b   : > { %v2705_v59 = vadd.f32 %v2639_v52, %v2454_v24  ;;  %3360 = vmatmul.bf16.gmra.mxu2 %v8073_v19  ;;  %3877 = vmatmul.bf16.gmra.mxu0 %v8118_v57  ;;  %v2904_v8 = vsel %vm362_vm1, %v2899_v11, %v2900_v17 }
 0x32c   : > { %3626 = vmatmul.bf16.gmra.mxu3 %v8099_v22  ;;  %v8337_v18 = vpop.f32.mrf.mxu1  ;;  %v3001_v52 = vsel %vm466_vm6, %v2996_v58, %v2997_v51 }
 0x32d   : > { %v2805_v39 = vadd.f32 %v8265_v56, %v2705_v59  ;;  %v8348_v41 = vpack.c.bf16 %v3001_v52, %v3002_v33 }
 0x32e   : > { %v3321_v11 = vpop.f32.mrf.mxu2 }
 0x32f   : > { %9225 = vst [vmem:[#allocation66_spill] sm:$0xff] %v8348_v41  ;;  %v2837_v4 = vmax.f32 %v2805_v39, 0.0  ;;  %v3433_v0 = vadd.f32 %v3321_v11, %v8075_v31  ;;  %v3587_v29 = vpop.f32.mrf.mxu3  ;;  %v6507_v31 = vld [vmem:[%s8945_s2 + $0x1f0] sm:$0xff] }
 0x330   : > { %v3840_v13 = vpop.f32.mrf.mxu0  ;;  %4833 = vmatpush.bf16.msra.mxu0 %v6507_v31 }
 0x331   : > { %v3699_v35 = vadd.f32 %v3587_v29, %v3433_v0  ;;  %v8353_v24 = vsel %vm293_vm0, 0.0, %v2837_v4  ;;  %v8355_v57 = vpack.c.bf16 %v2837_v4, %v2836_v45  ;;  %v2998_v58 = vrot.slane %v2837_v4, 1  ;;  %v6515_v4 = vld [vmem:[%s8945_s2 + $0x230] sm:$0xff] }
 0x332   : > { %9226 = vst [vmem:[#allocation67_spill] sm:$0xff] %v8353_v24  ;;  %v9040_v56 = vrot.slane %v8353_v24, 7  ;;  %5083 = vmatpush.bf16.msra.mxu1 %v6515_v4 }
 0x333   : > { %v8358_v33 = vadd.f32 %v3838_v23, %v3699_v35  ;;  %v3000_v59 = vsel %vm466_vm6, %v2997_v51, %v2998_v58 }
 0x334   : > { %v8362_v44 = vpop.f32.mrf.mxu1  ;;  %v2903_v54 = vsel %vm362_vm1, %v2900_v17, %v9040_v56  ;;  %v8371_v45 = vpack.c.bf16 %v2998_v58, %v3000_v59 }
 0x335   : > { %v8373_v15 = vpack.c.bf16 %v2903_v54, %v2904_v8 }
 0x336   : > { %9227 = vst [vmem:[#allocation68_spill] sm:$0xff] %v8371_v45  ;;  %v3323_v23 = vpop.f32.mrf.mxu2 }
 0x337   : > { %9228 = vst [vmem:[#allocation69_spill] sm:$0xff] %v8373_v15  ;;  %v3434_v52 = vadd.f32 %v3323_v23, %v8093_v46  ;;  %v3589_v51 = vpop.f32.mrf.mxu3  ;;  %4088 = vmatmul.bf16.vlgmr.msrb.gmra.mxu1 %v7800_v47 }
 0x338   : > { %v3843_v39 = vpop.f32.mrf.mxu0 }
 0x339   : > { %v3700_v11 = vadd.f32 %v3589_v51, %v3434_v52  ;;  %v6490_v51 = vld [vmem:[%s8945_s2 + $0x168] sm:$0xff] }
 0x33a   : > { %4333 = vmatpush.bf16.msra.mxu2 %v6490_v51 }
 0x33b   : > { %3365 = vmatmul.bf16.gmra.mxu2 %v8107_v28  ;;  %3882 = vmatmul.bf16.gmra.mxu0 %v8149_v14  ;;  %v8382_v7 = vadd.f32 %v3840_v13, %v3700_v11 }
 0x33c   : > { %3631 = vmatmul.bf16.gmra.mxu3 %v8133_v26  ;;  %v8385_v17 = vpop.f32.mrf.mxu1 }
 0x33e   : > { %v3326_v46 = vpop.f32.mrf.mxu2 }
 0x33f   : > { %v3435_v47 = vadd.f32 %v3326_v46, %v8111_v34  ;;  %v3592_v8 = vpop.f32.mrf.mxu3 }
 0x340   : > { %v3845_v0 = vpop.f32.mrf.mxu0 }
 0x341   : > { %v3701_v29 = vadd.f32 %v3592_v8, %v3435_v47 }
 0x343   : > { %v8388_v35 = vadd.f32 %v3843_v39, %v3701_v29  ;;  %v6506_v29 = vld [vmem:[%s8945_s2 + $0x1e8] sm:$0xff] }
 0x344   : > { %v8390_v58 = vpop.f32.mrf.mxu1  ;;  %4834 = vmatpush.bf16.msra.mxu0 %v6506_v29 }
 0x346   : > { %v3328_v59 = vpop.f32.mrf.mxu2 }
 0x347   : > { %v3436_v31 = vadd.f32 %v3328_v59, %v8128_v20  ;;  %v3594_v13 = vpop.f32.mrf.mxu3  ;;  %4093 = vmatmul.bf16.gmra.mxu1 %v7836_v10  ;;  %v6498_v20 = vld [vmem:[%s8945_s2 + $0x1a8] sm:$0xff] }
 0x348   : > { %v3848_v54 = vpop.f32.mrf.mxu0  ;;  %4584 = vmatpush.bf16.msra.mxu3 %v6498_v20 }
 0x349   : > { %v3702_v23 = vadd.f32 %v3594_v13, %v3436_v31 }
 0x34b   : > { %3370 = vmatmul.bf16.gmra.mxu2 %v8138_v6  ;;  %3887 = vmatmul.bf16.gmra.mxu0 %v8183_v36  ;;  %v8396_v34 = vadd.f32 %v3845_v0, %v3702_v23  ;;  %v9233_v36 = vld [vmem:[#allocation52_spill] sm:$0xff] }
 0x34c   : > { %3636 = vmatmul.bf16.gmra.mxu3 %v8164_v61  ;;  %v8399_v52 = vpop.f32.mrf.mxu1 }
 0x34e   : > { %v3331_v39 = vpop.f32.mrf.mxu2 }
 0x34f   : > { %v3437_v11 = vadd.f32 %v3331_v39, %v8142_v43  ;;  %v3597_v4 = vpop.f32.mrf.mxu3 }
 0x350   : > { %v3850_v46 = vpop.f32.mrf.mxu0 }
 0x351   : > { %v3703_v47 = vadd.f32 %v3597_v4, %v3437_v11 }
 0x353   : > { %v8408_v8 = vadd.f32 %v3848_v54, %v3703_v47  ;;  %v6514_v54 = vld [vmem:[%s8945_s2 + $0x228] sm:$0xff] }
 0x354   : > { %v8410_v0 = vpop.f32.mrf.mxu1  ;;  %5084 = vmatpush.bf16.msra.mxu1 %v6514_v54  ;;  %v6489_v54 = vld [vmem:[%s8945_s2 + $0x160] sm:$0xff] }
 0x355   : > { %4334 = vmatpush.bf16.msra.mxu2 %v6489_v54 }
 0x356   : > { %v3333_v59 = vpop.f32.mrf.mxu2 }
 0x357   : > { %v3438_v31 = vadd.f32 %v3333_v59, %v8159_v32  ;;  %v3599_v13 = vpop.f32.mrf.mxu3  ;;  %4098 = vmatmul.bf16.gmra.mxu1 %v7868_v1 }
 0x358   : > { %v3853_v23 = vpop.f32.mrf.mxu0 }
 0x359   : > { %v3704_v43 = vadd.f32 %v3599_v13, %v3438_v31 }
 0x35b   : > { %3375 = vmatmul.bf16.gmra.mxu2 %v8172_v48  ;;  %3892 = vmatmul.bf16.gmra.mxu0 %v8214_v40  ;;  %v8422_v51 = vadd.f32 %v3850_v46, %v3704_v43  ;;  %v6512_v40 = vld [vmem:[%s8945_s2 + $0x218] sm:$0xff] }
 0x35c   : > { %3641 = vmatmul.bf16.gmra.mxu3 %v8198_v12  ;;  %v8425_v20 = vpop.f32.mrf.mxu1 }
 0x35e   : > { %v3336_v32 = vpop.f32.mrf.mxu2 }
 0x35f   : > { %v3439_v39 = vadd.f32 %v3336_v32, %v8176_v50  ;;  %v3602_v11 = vpop.f32.mrf.mxu3 }
 0x360   : > { %v3855_v4 = vpop.f32.mrf.mxu0 }
 0x361   : > { %v3705_v47 = vadd.f32 %v3602_v11, %v3439_v39 }
 0x363   : > { %v8428_v29 = vadd.f32 %v3853_v23, %v3705_v47 }
 0x364   : > { %v8430_v59 = vpop.f32.mrf.mxu1 }
 0x366   : > { %v3338_v31 = vpop.f32.mrf.mxu2 }
 0x367   : > { %v3440_v13 = vadd.f32 %v3338_v31, %v8193_v21  ;;  %v3604_v46 = vpop.f32.mrf.mxu3  ;;  %4103 = vmatmul.bf16.gmra.mxu1 %v7900_v30  ;;  %v6497_v21 = vld [vmem:[%s8945_s2 + $0x1a0] sm:$0xff] }
 0x368   : > { %v3858_v43 = vpop.f32.mrf.mxu0  ;;  %4585 = vmatpush.bf16.msra.mxu3 %v6497_v21  ;;  %v6488_v21 = vld [vmem:[%s8945_s2 + $0x158] sm:$0xff] }
 0x369   : > { %v3706_v56 = vadd.f32 %v3604_v46, %v3440_v13  ;;  %v6505_v13 = vld [vmem:[%s8945_s2 + $0x1e0] sm:$0xff]  ;;  %4335 = vmatpush.bf16.msra.mxu2 %v6488_v21 }
 0x36a   : > { %4835 = vmatpush.bf16.msra.mxu0 %v6505_v13 }
 0x36b   : > { %3380 = vmatmul.bf16.gmra.mxu2 %v8203_v27  ;;  %3897 = vmatmul.bf16.gmra.mxu0 %v8248_v5  ;;  %v8436_v50 = vadd.f32 %v3855_v4, %v3706_v56 }
 0x36c   : > { %3646 = vmatmul.bf16.gmra.mxu3 %v8229_v38  ;;  %v8439_v23 = vpop.f32.mrf.mxu1 }
 0x36e   : > { %v3341_v32 = vpop.f32.mrf.mxu2 }
 0x36f   : > { %v3441_v39 = vadd.f32 %v3341_v32, %v8207_v49  ;;  %v3607_v11 = vpop.f32.mrf.mxu3 }
 0x370   : > { %v3860_v56 = vpop.f32.mrf.mxu0 }
 0x371   : > { %v3707_v4 = vadd.f32 %v3607_v11, %v3441_v39  ;;  %v9229_v11 = vld [vmem:[#allocation40_spill] sm:$0xff] }
 0x373   : > { %v8448_v47 = vadd.f32 %v3858_v43, %v3707_v4  ;;  %v6513_v43 = vld [vmem:[%s8945_s2 + $0x220] sm:$0xff] }
 0x374   : > { %v8450_v31 = vpop.f32.mrf.mxu1  ;;  %5085 = vmatpush.bf16.msra.mxu1 %v6513_v43 }
 0x376   : > { %v3343_v46 = vpop.f32.mrf.mxu2 }
 0x377   : > { %v3442_v45 = vadd.f32 %v3343_v46, %v8224_v62  ;;  %v3609_v24 = vpop.f32.mrf.mxu3  ;;  %4108 = vmatmul.bf16.gmra.mxu1 %v7951_v16  ;;  %v6496_v62 = vld [vmem:[%s8945_s2 + $0x198] sm:$0xff]  ;;  %v6487_v46 = vld [vmem:[%s8945_s2 + $0x150] sm:$0xff] }
 0x378   : > { %v3863_v54 = vpop.f32.mrf.mxu0  ;;  %4586 = vmatpush.bf16.msra.mxu3 %v6496_v62  ;;  %4336 = vmatpush.bf16.msra.mxu2 %v6487_v46  ;;  %v6486_v62 = vld [vmem:[%s8945_s2 + $0x148] sm:$0xff] }
 0x379   : > { %v3708_v49 = vadd.f32 %v3609_v24, %v3442_v45  ;;  %v6504_v24 = vld [vmem:[%s8945_s2 + $0x1d8] sm:$0xff]  ;;  %5086 = vmatpush.bf16.msra.mxu1 %v6512_v40 }
 0x37a   : > { %4836 = vmatpush.bf16.msra.mxu0 %v6504_v24  ;;  %v6494_v24 = vld [vmem:[%s8945_s2 + $0x188] sm:$0xff] }
 0x37b   : > { %3385 = vmatmul.bf16.gmra.mxu2 %v8237_v60  ;;  %3902 = vmatmul.bf16.gmra.mxu0 %v8293_v3  ;;  %v8471_v45 = vadd.f32 %v3860_v56, %v3708_v49  ;;  %v6495_v56 = vld [vmem:[%s8945_s2 + $0x190] sm:$0xff] }
 0x37c   : > { %3651 = vmatmul.bf16.gmra.mxu3 %v8268_v55  ;;  %v8474_v32 = vpop.f32.mrf.mxu1  ;;  %v6503_v49 = vld [vmem:[%s8945_s2 + $0x1d0] sm:$0xff]  ;;  %4337 = vmatpush.bf16.msra.mxu2 %v6486_v62 }
 0x37d   : > { %4587 = vmatpush.bf16.msra.mxu3 %v6495_v56  ;;  %v6485_v56 = vld [vmem:[%s8945_s2 + $0x140] sm:$0xff] }
 0x37e   : > { %v3346_v39 = vpop.f32.mrf.mxu2  ;;  %4837 = vmatpush.bf16.msra.mxu0 %v6503_v49  ;;  %v6501_v49 = vld [vmem:[%s8945_s2 + $0x1c0] sm:$0xff] }
 0x37f   : > { %v3443_v4 = vadd.f32 %v3346_v39, %v9229_v11  ;;  %v3612_v13 = vpop.f32.mrf.mxu3  ;;  %v6502_v39 = vld [vmem:[%s8945_s2 + $0x1c8] sm:$0xff] }
 0x380   : > { %v3865_v43 = vpop.f32.mrf.mxu0  ;;  %4338 = vmatpush.bf16.msra.mxu2 %v6485_v56 }
 0x381   : > { %v3709_v21 = vadd.f32 %v3612_v13, %v3443_v4  ;;  %4588 = vmatpush.bf16.msra.mxu3 %v6494_v24 }
 0x382   : > { %4838 = vmatpush.bf16.msra.mxu0 %v6502_v39 }
 0x383   : > { %v8495_v11 = vadd.f32 %v3863_v54, %v3709_v21  ;;  %v6493_v54 = vld [vmem:[%s8945_s2 + $0x180] sm:$0xff] }
 0x384   : > { %v8497_v3 = vpop.f32.mrf.mxu1 }
 0x385   : > { %4589 = vmatpush.bf16.msra.mxu3 %v6493_v54  ;;  %v9230_v54 = vld [vmem:[#allocation64_spill] sm:$0xff] }
 0x386   : > { %v3348_v4 = vpop.f32.mrf.mxu2  ;;  %4839 = vmatpush.bf16.msra.mxu0 %v6501_v49 }
 0x387   : > { %v3444_v13 = vadd.f32 %v3348_v4, %v8258_v63  ;;  %v3614_v46 = vpop.f32.mrf.mxu3  ;;  %4113 = vmatmul.bf16.gmra.mxu1 %v7998_v9 }
 0x388   : > { %v3868_v21 = vpop.f32.mrf.mxu0 }
 0x389   : > { %v3710_v62 = vadd.f32 %v3614_v46, %v3444_v13 }
 0x38b   : > { %3390 = vmatmul.bf16.gmra.mxu2 %v8279_v37  ;;  %3907 = vmatmul.bf16.gmra.mxu0 %v8327_v53  ;;  %v8512_v63 = vadd.f32 %v3865_v43, %v3710_v62  ;;  %v9231_v43 = vld [vmem:[#allocation57_spill] sm:$0xff] }
 0x38c   : > { %3656 = vmatmul.bf16.gmra.mxu3 %v8311_v25  ;;  %v8515_v24 = vpop.f32.mrf.mxu1 }
 0x38e   : > { %v3351_v39 = vpop.f32.mrf.mxu2 }
 0x38f   : > { %v3445_v4 = vadd.f32 %v3351_v39, %v8283_v42  ;;  %v3617_v55 = vpop.f32.mrf.mxu3 }
 0x390   : > { %v3870_v5 = vpop.f32.mrf.mxu0 }
 0x391   : > { %v3711_v38 = vadd.f32 %v3617_v55, %v3445_v4 }
 0x393   : > { %v8518_v13 = vadd.f32 %v3868_v21, %v3711_v38  ;;  %v9232_v21 = vld [vmem:[#allocation51_spill] sm:$0xff] }
 0x394   : > { %v8520_v46 = vpop.f32.mrf.mxu1 }
 0x396   : > { %v3353_v56 = vpop.f32.mrf.mxu2 }
 0x397   : > { %v3446_v49 = vadd.f32 %v3353_v56, %v9230_v54  ;;  %v3619_v53 = vpop.f32.mrf.mxu3  ;;  %4118 = vmatmul.bf16.gmra.mxu1 %v9231_v43 }
 0x398   : > { %v3873_v62 = vpop.f32.mrf.mxu0 }
 0x399   : > { %v3712_v25 = vadd.f32 %v3619_v53, %v3446_v49 }
 0x39b   : > { %3395 = vmatmul.bf16.gmra.mxu2 %v8316_v2  ;;  %3912 = vmatmul.bf16.gmra.mxu0 %v8373_v15  ;;  %v8529_v38 = vadd.f32 %v3870_v5, %v3712_v25 }
 0x39c   : > { %3661 = vmatmul.bf16.gmra.mxu3 %v8348_v41  ;;  %v8532_v55 = vpop.f32.mrf.mxu1 }
 0x39e   : > { %v3356_v42 = vpop.f32.mrf.mxu2 }
 0x39f   : > { %v3447_v39 = vadd.f32 %v3356_v42, %v9232_v21  ;;  %v3622_v4 = vpop.f32.mrf.mxu3  ;;  %v9234_v42 = vld [vmem:[#allocation53_spill] sm:$0xff] }
 0x3a0   : > { %v3875_v53 = vpop.f32.mrf.mxu0 }
 0x3a1   : > { %v3713_v56 = vadd.f32 %v3622_v4, %v3447_v39 }
 0x3a3   : > { %v8535_v54 = vadd.f32 %v3873_v62, %v3713_v56 }
 0x3a4   : > { %v8537_v49 = vpop.f32.mrf.mxu1 }
 0x3a6   : > { %v3358_v12 = vpop.f32.mrf.mxu2 }
 0x3a7   : > { %v3448_v15 = vadd.f32 %v3358_v12, %v8337_v18  ;;  %v3624_v5 = vpop.f32.mrf.mxu3  ;;  %4123 = vmatmul.bf16.gmra.mxu1 %v8073_v19 }
 0x3a8   : > { %v3878_v25 = vpop.f32.mrf.mxu0 }
 0x3a9   : > { %v3714_v41 = vadd.f32 %v3624_v5, %v3448_v15 }
 0x3ab   : > { %4339 = vmatmul.bf16.vlgmr.msra.gmra.mxu2 %v9233_v36  ;;  %4840 = vmatmul.bf16.vlgmr.msra.gmra.mxu0 %v7836_v10  ;;  %v8543_v40 = vadd.f32 %v3875_v53, %v3714_v41 }
 0x3ac   : > { %4590 = vmatmul.bf16.vlgmr.msra.gmra.mxu3 %v9234_v42  ;;  %v8546_v62 = vpop.f32.mrf.mxu1  ;;  %v9235_v42 = vld [vmem:[#allocation12_spill] sm:$0xff] }
 0x3ae   : > { %v3361_v21 = vpop.f32.mrf.mxu2 }
 0x3af   : > { %v3449_v39 = vadd.f32 %v3361_v21, %v8362_v44  ;;  %v3627_v4 = vpop.f32.mrf.mxu3  ;;  %v6511_v44 = vld [vmem:[%s8945_s2 + $0x210] sm:$0xff] }
 0x3b0   : > { %v3880_v12 = vpop.f32.mrf.mxu0  ;;  %5087 = vmatpush.bf16.msra.mxu1 %v6511_v44 }
 0x3b1   : > { %v3715_v18 = vadd.f32 %v3627_v4, %v3449_v39 }
 0x3b3   : > { %v8549_v56 = vadd.f32 %v3878_v25, %v3715_v18 }
 0x3b4   : > { %v4089_v61 = vpop.f32.mrf.mxu1 }
 0x3b5   : > { %v8552_v15 = vadd.f32 %v4089_v61, %v8358_v33  ;;  %v9236_v61 = vld [vmem:[#allocation54_spill] sm:$0xff] }
 0x3b6   : > { %v3363_v36 = vpop.f32.mrf.mxu2 }
 0x3b7   : > { %v3450_v10 = vadd.f32 %v3363_v36, %v8385_v17  ;;  %v3629_v41 = vpop.f32.mrf.mxu3  ;;  %4128 = vmatmul.bf16.gmra.mxu1 %v8107_v28 }
 0x3b8   : > { %v3883_v53 = vpop.f32.mrf.mxu0 }
 0x3b9   : > { %v3716_v5 = vadd.f32 %v3629_v41, %v3450_v10 }
 0x3bb   : > { %4344 = vmatmul.bf16.gmra.mxu2 %v9235_v42  ;;  %4845 = vmatmul.bf16.gmra.mxu0 %v7868_v1  ;;  %v8561_v25 = vadd.f32 %v3880_v12, %v3716_v5 }
 0x3bc   : > { %4595 = vmatmul.bf16.gmra.mxu3 %v9236_v61  ;;  %v4091_v33 = vpop.f32.mrf.mxu1 }
 0x3bd   : > { %v8565_v17 = vadd.f32 %v4091_v33, %v8382_v7  ;;  %v9237_v33 = vld [vmem:[#allocation55_spill] sm:$0xff] }
 0x3be   : > { %v3366_v21 = vpop.f32.mrf.mxu2 }
 0x3bf   : > { %v3451_v39 = vadd.f32 %v3366_v21, %v8390_v58  ;;  %v3632_v4 = vpop.f32.mrf.mxu3 }
 0x3c0   : > { %v3885_v18 = vpop.f32.mrf.mxu0 }
 0x3c1   : > { %v3717_v36 = vadd.f32 %v3632_v4, %v3451_v39 }
 0x3c3   : > { %v8568_v10 = vadd.f32 %v3883_v53, %v3717_v36  ;;  %v9238_v53 = vld [vmem:[#allocation13_spill] sm:$0xff] }
 0x3c4   : > { %v4094_v41 = vpop.f32.mrf.mxu1 }
 0x3c5   : > { %v8571_v1 = vadd.f32 %v4094_v41, %v8388_v35 }
 0x3c6   : > { %v3368_v12 = vpop.f32.mrf.mxu2 }
 0x3c7   : > { %v3452_v5 = vadd.f32 %v3368_v12, %v8399_v52  ;;  %v3634_v61 = vpop.f32.mrf.mxu3  ;;  %4133 = vmatmul.bf16.gmra.mxu1 %v8138_v6 }
 0x3c8   : > { %v3888_v7 = vpop.f32.mrf.mxu0 }
 0x3c9   : > { %v3718_v44 = vadd.f32 %v3634_v61, %v3452_v5 }
 0x3cb   : > { %4349 = vmatmul.bf16.gmra.mxu2 %v9237_v33  ;;  %4850 = vmatmul.bf16.gmra.mxu0 %v7900_v30  ;;  %v8577_v58 = vadd.f32 %v3885_v18, %v3718_v44 }
 0x3cc   : > { %4600 = vmatmul.bf16.gmra.mxu3 %v9238_v53  ;;  %v4096_v21 = vpop.f32.mrf.mxu1 }
 0x3cd   : > { %v8581_v35 = vadd.f32 %v4096_v21, %v8396_v34  ;;  %v9239_v21 = vld [vmem:[#allocation22_spill] sm:$0xff] }
 0x3ce   : > { %v3371_v39 = vpop.f32.mrf.mxu2 }
 0x3cf   : > { %v3453_v52 = vadd.f32 %v3371_v39, %v8410_v0  ;;  %v3637_v4 = vpop.f32.mrf.mxu3  ;;  %v6510_v0 = vld [vmem:[%s8945_s2 + $0x208] sm:$0xff] }
 0x3d0   : > { %v3890_v36 = vpop.f32.mrf.mxu0  ;;  %5088 = vmatpush.bf16.msra.mxu1 %v6510_v0 }
 0x3d1   : > { %v3719_v41 = vadd.f32 %v3637_v4, %v3453_v52 }
 0x3d3   : > { %v8584_v12 = vadd.f32 %v3888_v7, %v3719_v41 }
 0x3d4   : > { %v4099_v5 = vpop.f32.mrf.mxu1 }
 0x3d5   : > { %v8587_v61 = vadd.f32 %v4099_v5, %v8408_v8  ;;  %v9240_v8 = vld [vmem:[#allocation29_spill] sm:$0xff] }
 0x3d6   : > { %v3373_v30 = vpop.f32.mrf.mxu2 }
 0x3d7   : > { %v3454_v18 = vadd.f32 %v3373_v30, %v8425_v20  ;;  %v3639_v44 = vpop.f32.mrf.mxu3  ;;  %4138 = vmatmul.bf16.gmra.mxu1 %v8172_v48 }
 0x3d8   : > { %v3893_v34 = vpop.f32.mrf.mxu0 }
 0x3d9   : > { %v3720_v53 = vadd.f32 %v3639_v44, %v3454_v18 }
 0x3db   : > { %4354 = vmatmul.bf16.gmra.mxu2 %v9239_v21  ;;  %4855 = vmatmul.bf16.gmra.mxu0 %v7951_v16  ;;  %v8596_v7 = vadd.f32 %v3890_v36, %v3720_v53 }
 0x3dc   : > { %4605 = vmatmul.bf16.gmra.mxu3 %v9240_v8  ;;  %v4101_v39 = vpop.f32.mrf.mxu1 }
 0x3dd   : > { %v8600_v20 = vadd.f32 %v4101_v39, %v8422_v51  ;;  %v9241_v39 = vld [vmem:[#allocation41_spill] sm:$0xff] }
 0x3de   : > { %v3376_v52 = vpop.f32.mrf.mxu2 }
 0x3df   : > { %v3455_v4 = vadd.f32 %v3376_v52, %v8430_v59  ;;  %v3642_v41 = vpop.f32.mrf.mxu3 }
 0x3e0   : > { %v3895_v5 = vpop.f32.mrf.mxu0 }
 0x3e1   : > { %v3721_v30 = vadd.f32 %v3642_v41, %v3455_v4 }
 0x3e3   : > { %v8603_v18 = vadd.f32 %v3893_v34, %v3721_v30  ;;  %v9242_v34 = vld [vmem:[#allocation35_spill] sm:$0xff] }
 0x3e4   : > { %v4104_v44 = vpop.f32.mrf.mxu1 }
 0x3e5   : > { %v8606_v16 = vadd.f32 %v4104_v44, %v8428_v29 }
 0x3e6   : > { %v3378_v36 = vpop.f32.mrf.mxu2 }
 0x3e7   : > { %v3456_v53 = vadd.f32 %v3378_v36, %v8439_v23  ;;  %v3644_v8 = vpop.f32.mrf.mxu3  ;;  %4143 = vmatmul.bf16.gmra.mxu1 %v8203_v27 }
 0x3e8   : > { %v3898_v51 = vpop.f32.mrf.mxu0 }
 0x3e9   : > { %v3722_v0 = vadd.f32 %v3644_v8, %v3456_v53 }
 0x3eb   : > { %4359 = vmatmul.bf16.gmra.mxu2 %v9241_v39  ;;  %4860 = vmatmul.bf16.gmra.mxu0 %v7998_v9  ;;  %v8612_v59 = vadd.f32 %v3895_v5, %v3722_v0 }
 0x3ec   : > { %4610 = vmatmul.bf16.gmra.mxu3 %v9242_v34  ;;  %v4106_v52 = vpop.f32.mrf.mxu1 }
 0x3ed   : > { %v8616_v29 = vadd.f32 %v4106_v52, %v8436_v50  ;;  %v9243_v52 = vld [vmem:[#allocation27_spill] sm:$0xff] }
 0x3ee   : > { %v3381_v4 = vpop.f32.mrf.mxu2 }
 0x3ef   : > { %v3457_v23 = vadd.f32 %v3381_v4, %v8450_v31  ;;  %v3647_v41 = vpop.f32.mrf.mxu3  ;;  %v6509_v31 = vld [vmem:[%s8945_s2 + $0x200] sm:$0xff] }
 0x3f0   : > { %v3900_v30 = vpop.f32.mrf.mxu0  ;;  %5089 = vmatpush.bf16.msra.mxu1 %v6509_v31 }
 0x3f1   : > { %v3723_v44 = vadd.f32 %v3647_v41, %v3457_v23 }
 0x3f3   : > { %v8619_v36 = vadd.f32 %v3898_v51, %v3723_v44 }
 0x3f4   : > { %v4109_v53 = vpop.f32.mrf.mxu1 }
 0x3f5   : > { %v8622_v8 = vadd.f32 %v4109_v53, %v8448_v47  ;;  %v9244_v47 = vld [vmem:[#allocation59_spill] sm:$0xff] }
 0x3f6   : > { %v3383_v9 = vpop.f32.mrf.mxu2 }
 0x3f7   : > { %v3458_v5 = vadd.f32 %v3383_v9, %v8474_v32  ;;  %v3649_v0 = vpop.f32.mrf.mxu3  ;;  %4148 = vmatmul.bf16.gmra.mxu1 %v8237_v60 }
 0x3f8   : > { %v3903_v50 = vpop.f32.mrf.mxu0 }
 0x3f9   : > { %v3724_v34 = vadd.f32 %v3649_v0, %v3458_v5 }
 0x3fb   : > { %4364 = vmatmul.bf16.gmra.mxu2 %v9243_v52  ;;  %4865 = vmatmul.bf16.gmra.mxu0 %v9231_v43  ;;  %v8631_v51 = vadd.f32 %v3900_v30, %v3724_v34 }
 0x3fc   : > { %4615 = vmatmul.bf16.gmra.mxu3 %v9244_v47  ;;  %v4111_v4 = vpop.f32.mrf.mxu1 }
 0x3fd   : > { %v8635_v32 = vadd.f32 %v4111_v4, %v8471_v45  ;;  %v9245_v4 = vld [vmem:[#allocation3_spill] sm:$0xff] }
 0x3fe   : > { %v3386_v23 = vpop.f32.mrf.mxu2 }
 0x3ff   : > { %v3459_v41 = vadd.f32 %v3386_v23, %v8497_v3  ;;  %v3652_v44 = vpop.f32.mrf.mxu3 }
 0x400   : > { %v3905_v53 = vpop.f32.mrf.mxu0 }
 0x401   : > { %v3725_v9 = vadd.f32 %v3652_v44, %v3459_v41 }
 0x403   : > { %v8638_v5 = vadd.f32 %v3903_v50, %v3725_v9  ;;  %v9246_v50 = vld [vmem:[#allocation45_spill] sm:$0xff] }
 0x404   : > { %v4114_v0 = vpop.f32.mrf.mxu1 }
 0x405   : > { %v8641_v43 = vadd.f32 %v4114_v0, %v8495_v11 }
 0x406   : > { %v3388_v30 = vpop.f32.mrf.mxu2 }
 0x407   : > { %v3460_v34 = vadd.f32 %v3388_v30, %v8515_v24  ;;  %v3654_v47 = vpop.f32.mrf.mxu3  ;;  %4153 = vmatmul.bf16.gmra.mxu1 %v8279_v37 }
 0x408   : > { %v3908_v45 = vpop.f32.mrf.mxu0 }
 0x409   : > { %v3726_v31 = vadd.f32 %v3654_v47, %v3460_v34 }
 0x40b   : > { %4369 = vmatmul.bf16.gmra.mxu2 %v9245_v4  ;;  %4870 = vmatmul.bf16.gmra.mxu0 %v8073_v19  ;;  %v8647_v3 = vadd.f32 %v3905_v53, %v3726_v31 }
 0x40c   : > { %4620 = vmatmul.bf16.gmra.mxu3 %v9246_v50  ;;  %v4116_v23 = vpop.f32.mrf.mxu1 }
 0x40d   : > { %v8651_v11 = vadd.f32 %v4116_v23, %v8512_v63 }
 0x40e   : > { %v3391_v41 = vpop.f32.mrf.mxu2 }
 0x40f   : > { %v3461_v24 = vadd.f32 %v3391_v41, %v8520_v46  ;;  %v3657_v44 = vpop.f32.mrf.mxu3 }
 0x410   : > { %v3910_v9 = vpop.f32.mrf.mxu0 }
 0x411   : > { %v3727_v0 = vadd.f32 %v3657_v44, %v3461_v24 }
 0x413   : > { %v8654_v30 = vadd.f32 %v3908_v45, %v3727_v0  ;;  %v9247_v45 = vld [vmem:[#allocation61_spill] sm:$0xff] }
 0x414   : > { %v4119_v34 = vpop.f32.mrf.mxu1 }
 0x415   : > { %v8657_v47 = vadd.f32 %v4119_v34, %v8518_v13 }
 0x416   : > { %v3393_v19 = vpop.f32.mrf.mxu2 }
 0x417   : > { %v3462_v53 = vadd.f32 %v3393_v19, %v8532_v55  ;;  %v3659_v31 = vpop.f32.mrf.mxu3  ;;  %4158 = vmatmul.bf16.gmra.mxu1 %v8316_v2 }
 0x418   : > { %v3913_v63 = vpop.f32.mrf.mxu0 }
 0x419   : > { %v3728_v50 = vadd.f32 %v3659_v31, %v3462_v53 }
 0x41b   : > { %4374 = vmatmul.bf16.gmra.mxu2 %v8099_v22  ;;  %4875 = vmatmul.bf16.gmra.mxu0 %v8107_v28  ;;  %v8663_v46 = vadd.f32 %v3910_v9, %v3728_v50 }
 0x41c   : > { %4625 = vmatmul.bf16.gmra.mxu3 %v9247_v45  ;;  %v4121_v23 = vpop.f32.mrf.mxu1 }
 0x41d   : > { %v8667_v13 = vadd.f32 %v4121_v23, %v8529_v38 }
 0x41e   : > { %v3396_v41 = vpop.f32.mrf.mxu2 }
 0x41f   : > { %v3463_v55 = vadd.f32 %v3396_v41, %v8537_v49  ;;  %v3662_v24 = vpop.f32.mrf.mxu3 }
 0x420   : > { %v3915_v44 = vpop.f32.mrf.mxu0 }
 0x421   : > { %v3729_v0 = vadd.f32 %v3662_v24, %v3463_v55 }
 0x423   : > { %v8670_v34 = vadd.f32 %v3913_v63, %v3729_v0 }
 0x424   : > { %v4124_v19 = vpop.f32.mrf.mxu1 }
 0x425   : > { %v8673_v53 = vadd.f32 %v4124_v19, %v8535_v54 }
 0x426   : > { %v3398_v28 = vpop.f32.mrf.mxu2 }
 0x427   : > { %v3464_v9 = vadd.f32 %v3398_v28, %v8546_v62  ;;  %v3664_v31 = vpop.f32.mrf.mxu3  ;;  %4163 = vmatmul.bf16.gmra.mxu1 %v8355_v57 }
 0x428   : > { %v4841_v38 = vpop.f32.mrf.mxu0 }
 0x429   : > { %v3730_v50 = vadd.f32 %v3664_v31, %v3464_v9  ;;  %v9248_v9 = vld [vmem:[#allocation62_spill] sm:$0xff]  ;;  %v9249_v31 = vld [vmem:[#allocation28_spill] sm:$0xff] }
 0x42b   : > { %4379 = vmatmul.bf16.gmra.mxu2 %v8133_v26  ;;  %4880 = vmatmul.bf16.gmra.mxu0 %v8138_v6  ;;  %v8679_v49 = vadd.f32 %v3915_v44, %v3730_v50 }
 0x42c   : > { %4630 = vmatmul.bf16.gmra.mxu3 %v8149_v14  ;;  %v4126_v63 = vpop.f32.mrf.mxu1 }
 0x42d   : > { %v8683_v54 = vadd.f32 %v4126_v63, %v8543_v40 }
 0x42e   : > { %v4340_v45 = vpop.f32.mrf.mxu2 }
 0x42f   : > { %v4452_v62 = vadd.f32 %v4340_v45, %v8552_v15  ;;  %v4591_v23 = vpop.f32.mrf.mxu3 }
 0x430   : > { %v4843_v41 = vpop.f32.mrf.mxu0 }
 0x431   : > { %v4703_v55 = vadd.f32 %v4591_v23, %v4452_v62 }
 0x433   : > { %v8686_v24 = vadd.f32 %v4841_v38, %v4703_v55 }
 0x434   : > { %v4129_v0 = vpop.f32.mrf.mxu1 }
 0x435   : > { %v8689_v19 = vadd.f32 %v4129_v0, %v8549_v56 }
 0x436   : > { %v4342_v6 = vpop.f32.mrf.mxu2 }
 0x437   : > { %v4453_v44 = vadd.f32 %v4342_v6, %v8565_v17  ;;  %v4593_v14 = vpop.f32.mrf.mxu3  ;;  %5090 = vmatmul.bf16.vlgmr.msra.gmra.mxu1 %v9235_v42  ;;  %v9250_v6 = vld [vmem:[#allocation63_spill] sm:$0xff] }
 0x438   : > { %v4846_v40 = vpop.f32.mrf.mxu0 }
 0x439   : > { %v4704_v28 = vadd.f32 %v4593_v14, %v4453_v44  ;;  %v9251_v14 = vld [vmem:[#allocation47_spill] sm:$0xff] }
 0x43b   : > { %4384 = vmatmul.bf16.gmra.mxu2 %v9248_v9  ;;  %4885 = vmatmul.bf16.gmra.mxu0 %v8172_v48  ;;  %v8695_v15 = vadd.f32 %v4843_v41, %v4704_v28 }
 0x43c   : > { %4635 = vmatmul.bf16.gmra.mxu3 %v9249_v31  ;;  %v4131_v38 = vpop.f32.mrf.mxu1 }
 0x43d   : > { %v8699_v56 = vadd.f32 %v4131_v38, %v8561_v25 }
 0x43e   : > { %v4345_v50 = vpop.f32.mrf.mxu2 }
 0x43f   : > { %v4454_v17 = vadd.f32 %v4345_v50, %v8571_v1  ;;  %v4596_v63 = vpop.f32.mrf.mxu3 }
 0x440   : > { %v4848_v42 = vpop.f32.mrf.mxu0 }
 0x441   : > { %v4705_v45 = vadd.f32 %v4596_v63, %v4454_v17 }
 0x443   : > { %v8702_v62 = vadd.f32 %v4846_v40, %v4705_v45 }
 0x444   : > { %v4134_v23 = vpop.f32.mrf.mxu1 }
 0x445   : > { %v8705_v55 = vadd.f32 %v4134_v23, %v8568_v10  ;;  %v9252_v23 = vld [vmem:[#allocation46_spill] sm:$0xff] }
 0x446   : > { %v4347_v48 = vpop.f32.mrf.mxu2 }
 0x447   : > { %v4455_v41 = vadd.f32 %v4347_v48, %v8581_v35  ;;  %v4598_v0 = vpop.f32.mrf.mxu3  ;;  %5095 = vmatmul.bf16.gmra.mxu1 %v9237_v33  ;;  %v9253_v48 = vld [vmem:[#allocation49_spill] sm:$0xff] }
 0x448   : > { %v4851_v44 = vpop.f32.mrf.mxu0 }
 0x449   : > { %v4706_v25 = vadd.f32 %v4598_v0, %v4455_v41 }
 0x44b   : > { %4389 = vmatmul.bf16.gmra.mxu2 %v9250_v6  ;;  %4890 = vmatmul.bf16.gmra.mxu0 %v8203_v27  ;;  %v8711_v1 = vadd.f32 %v4848_v42, %v4706_v25 }
 0x44c   : > { %4640 = vmatmul.bf16.gmra.mxu3 %v9251_v14  ;;  %v4136_v40 = vpop.f32.mrf.mxu1 }
 0x44d   : > { %v8715_v10 = vadd.f32 %v4136_v40, %v8577_v58 }
 0x44e   : > { %v4350_v28 = vpop.f32.mrf.mxu2 }
 0x44f   : > { %v4456_v35 = vadd.f32 %v4350_v28, %v8587_v61  ;;  %v4601_v31 = vpop.f32.mrf.mxu3 }
 0x450   : > { %v4853_v27 = vpop.f32.mrf.mxu0 }
 0x451   : > { %v4707_v38 = vadd.f32 %v4601_v31, %v4456_v35 }
 0x453   : > { %v8718_v33 = vadd.f32 %v4851_v44, %v4707_v38 }
 0x454   : > { %v4139_v50 = vpop.f32.mrf.mxu1 }
 0x455   : > { %v8721_v17 = vadd.f32 %v4139_v50, %v8584_v12  ;;  %v9254_v50 = vld [vmem:[#allocation48_spill] sm:$0xff] }
 0x456   : > { %v4352_v63 = vpop.f32.mrf.mxu2 }
 0x457   : > { %v4457_v45 = vadd.f32 %v4352_v63, %v8600_v20  ;;  %v4603_v42 = vpop.f32.mrf.mxu3  ;;  %5100 = vmatmul.bf16.gmra.mxu1 %v9239_v21 }
 0x458   : > { %v4856_v44 = vpop.f32.mrf.mxu0 }
 0x459   : > { %v4708_v58 = vadd.f32 %v4603_v42, %v4457_v45  ;;  %v9257_v42 = vld [vmem:[#allocation7_spill] sm:$0xff] }
 0x45b   : > { %4394 = vmatmul.bf16.gmra.mxu2 %v9252_v23  ;;  %4895 = vmatmul.bf16.gmra.mxu0 %v8237_v60  ;;  %v8727_v61 = vadd.f32 %v4853_v27, %v4708_v58  ;;  %v9255_v27 = vld [vmem:[#allocation50_spill] sm:$0xff] }
 0x45c   : > { %4645 = vmatmul.bf16.gmra.mxu3 %v9253_v48  ;;  %v4141_v41 = vpop.f32.mrf.mxu1 }
 0x45d   : > { %v8731_v12 = vadd.f32 %v4141_v41, %v8596_v7 }
 0x45e   : > { %v4355_v0 = vpop.f32.mrf.mxu2 }
 0x45f   : > { %v4458_v25 = vadd.f32 %v4355_v0, %v8606_v16  ;;  %v4606_v20 = vpop.f32.mrf.mxu3 }
 0x460   : > { %v4858_v38 = vpop.f32.mrf.mxu0 }
 0x461   : > { %v4709_v14 = vadd.f32 %v4606_v20, %v4458_v25  ;;  %v9262_v20 = vld [vmem:[#allocation68_spill] sm:$0xff] }
 0x463   : > { %v8734_v21 = vadd.f32 %v4856_v44, %v4709_v14 }
 0x464   : > { %v4144_v40 = vpop.f32.mrf.mxu1 }
 0x465   : > { %v8737_v28 = vadd.f32 %v4144_v40, %v8603_v18 }
 0x466   : > { %v4357_v60 = vpop.f32.mrf.mxu2 }
 0x467   : > { %v4459_v35 = vadd.f32 %v4357_v60, %v8616_v29  ;;  %5105 = vmatmul.bf16.gmra.mxu1 %v9241_v39  ;;  %v4608_v31 = vpop.f32.mrf.mxu3  ;;  %v9256_v39 = vld [vmem:[#allocation65_spill] sm:$0xff] }
 0x469   : > { %v4710_v7 = vadd.f32 %v4608_v31, %v4459_v35  ;;  %v8794_v31 = vld [vmem:[%s8947_s4] ss:$0 sm:$0xff] }
 0x46b   : > { %4399 = vmatmul.bf16.gmra.mxu2 %v9254_v50  ;;  %4900 = vmatmul.bf16.gmra.mxu0 %v8279_v37  ;;  %v8743_v16 = vadd.f32 %v4858_v38, %v4710_v7 }
 0x46c   : > { %4650 = vmatmul.bf16.gmra.mxu3 %v9255_v27  ;;  %v4146_v63 = vpop.f32.mrf.mxu1 }
 0x46d   : > { %v8747_v18 = vadd.f32 %v4146_v63, %v8612_v59 }
 0x474   : > { %v4149_v45 = vpop.f32.mrf.mxu1 }
 0x475   : > { %v8750_v29 = vadd.f32 %v4149_v45, %v8619_v36  ;;  %v9258_v36 = vld [vmem:[#allocation66_spill] sm:$0xff] }
 0x477   : > { %5110 = vmatmul.bf16.gmra.mxu1 %v9243_v52  ;;  %v9259_v52 = vld [vmem:[#allocation69_spill] sm:$0xff] }
 0x47b   : > { %4404 = vmatmul.bf16.gmra.mxu2 %v9256_v39  ;;  %4905 = vmatmul.bf16.gmra.mxu0 %v8316_v2 }
 0x47c   : > { %4655 = vmatmul.bf16.gmra.mxu3 %v9257_v42  ;;  %v4151_v37 = vpop.f32.mrf.mxu1  ;;  %v4611_v42 = vpop.f32.mrf.mxu3 }
 0x47d   : > { %v8757_v58 = vadd.f32 %v4151_v37, %v8631_v51 }
 0x484   : > { %v4154_v48 = vpop.f32.mrf.mxu1  ;;  %v4613_v14 = vpop.f32.mrf.mxu3 }
 0x485   : > { %v8760_v59 = vadd.f32 %v4154_v48, %v8638_v5  ;;  %v9260_v5 = vld [vmem:[#allocation67_spill] sm:$0xff]  ;;  %v4861_v48 = vpop.f32.mrf.mxu0 }
 0x486   : > { %v9261_v25 = vrot.slane %v9260_v5, 7 }
 0x487   : > { %5115 = vmatmul.bf16.gmra.mxu1 %v9245_v4 }
 0x488   : > { %v6268_v4 = vpack.c.bf16 0.0, %v9261_v25 }
 0x48b   : > { %4409 = vmatmul.bf16.gmra.mxu2 %v9258_v36  ;;  %4910 = vmatmul.bf16.gmra.mxu0 %v8355_v57  ;;  %v9264_v57 = vmov 0.0|0.0  }
 0x48c   : > { %4660 = vmatmul.bf16.gmra.mxu3 %v9259_v52  ;;  %v4156_v41 = vpop.f32.mrf.mxu1 }
 0x48d   : > { %v8767_v2 = vadd.f32 %v4156_v41, %v8647_v3 }
 0x494   : > { %v4159_v0 = vpop.f32.mrf.mxu1 }
 0x495   : > { %v8770_v51 = vadd.f32 %v4159_v0, %v8654_v30 }
 0x497   : > { %5120 = vmatmul.bf16.gmra.mxu1 %v8099_v22 }
 0x49b   : > { %6218 = vmatmul.msk.bf16.gmra.mxu2 %vm7634_vm9, %v9262_v20  ;;  %4915 = vmatmul.bf16.gmra.mxu0 %v9264_v57 }
 0x49c   : > { %6269 = vmatmul.msk.bf16.gmra.mxu3 %vm8015_vm10, %v6268_v4  ;;  %v4161_v3 = vpop.f32.mrf.mxu1  ;;  %v9268_v4 = vld [vmem:[#allocation16_spill] sm:$0xff] }
 0x49d   : > { %v8782_v40 = vadd.f32 %v4161_v3, %v8663_v46 }
 0x4a4   : > { %v4164_v30 = vpop.f32.mrf.mxu1 }
 0x4a5   : > { %v8785_v60 = vadd.f32 %v4164_v30, %v8670_v34  ;;  %v9266_v34 = vld [vmem:[#allocation10_spill] sm:$0xff] }
 0x4a7   : > { %5125 = vmatmul.bf16.gmra.mxu1 %v8133_v26  ;;  %v4360_v26 = vpop.f32.mrf.mxu2 }
 0x4ac   : > { %v4166_v22 = vpop.f32.mrf.mxu1 }
 0x4ad   : > { %v8789_v35 = vadd.f32 %v4166_v22, %v8679_v49  ;;  %v4863_v22 = vpop.f32.mrf.mxu0 }
 0x4af   : > { %v4362_v41 = vpop.f32.mrf.mxu2 }
 0x4b4   : > { %v5091_v7 = vpop.f32.mrf.mxu1 }
 0x4b5   : > { %v5203_v38 = vadd.f32 %v5091_v7, %v8686_v24 }
 0x4b7   : > { %v5303_v46 = vadd.f32 %v8794_v31, %v5203_v38  ;;  %5130 = vmatmul.bf16.gmra.mxu1 %v9248_v9  ;;  %v9267_v9 = vld [vmem:[#allocation8_spill] sm:$0xff]  ;;  %v4365_v38 = vpop.f32.mrf.mxu2 }
 0x4b9   : > { %v5335_v27 = vadd.f32 %v9266_v34, %v5303_v46  ;;  %v9269_v34 = vld [vmem:[#allocation14_spill] sm:$0xff] }
 0x4bb   : > { %v5367_v49 = vmax.f32 %v5335_v27, 0.0 }
 0x4bc   : > { %v5093_v63 = vpop.f32.mrf.mxu1 }
 0x4bd   : > { %5399 = vst [vmem:[%s8804_s29] sm:$0xff] %v5367_v49  ;;  %v5204_v24 = vadd.f32 %v5093_v63, %v8695_v15  ;;  %v4616_v49 = vpop.f32.mrf.mxu3 }
 0x4bf   : > { %v5304_v45 = vadd.f32 %v8794_v31, %v5204_v24  ;;  %v4866_v24 = vpop.f32.mrf.mxu0 }
 0x4c1   : > { %v5336_v37 = vadd.f32 %v9267_v9, %v5304_v45  ;;  %v4367_v9 = vpop.f32.mrf.mxu2 }
 0x4c3   : > { %v5368_v52 = vmax.f32 %v5336_v37, 0.0 }
 0x4c4   : > { %v5096_v0 = vpop.f32.mrf.mxu1 }
 0x4c5   : > { %5400 = vst [vmem:[%s8804_s29 + $0x8] sm:$0xff] %v5368_v52  ;;  %v5205_v5 = vadd.f32 %v5096_v0, %v8702_v62 }
 0x4c7   : > { %v5305_v25 = vadd.f32 %v8794_v31, %v5205_v5  ;;  %5135 = vmatmul.bf16.gmra.mxu1 %v9250_v6 }
 0x4c9   : > { %v5337_v15 = vadd.f32 %v9268_v4, %v5305_v25  ;;  %v4618_v25 = vpop.f32.mrf.mxu3 }
 0x4cb   : > { %v5369_v3 = vmax.f32 %v5337_v15, 0.0  ;;  %v4868_v15 = vpop.f32.mrf.mxu0 }
 0x4cc   : > { %v5098_v30 = vpop.f32.mrf.mxu1 }
 0x4cd   : > { %5401 = vst [vmem:[%s8804_s29 + $0x10] sm:$0xff] %v5369_v3  ;;  %v5206_v7 = vadd.f32 %v5098_v30, %v8711_v1  ;;  %v9270_v1 = vld [vmem:[#allocation20_spill] sm:$0xff]  ;;  %v9271_v3 = vld [vmem:[#allocation18_spill] sm:$0xff]  ;;  %v4370_v30 = vpop.f32.mrf.mxu2 }
 0x4cf   : > { %v5306_v46 = vadd.f32 %v8794_v31, %v5206_v7 }
 0x4d1   : > { %v5338_v62 = vadd.f32 %v9269_v34, %v5306_v46 }
 0x4d3   : > { %v5370_v27 = vmax.f32 %v5338_v62, 0.0  ;;  %v4621_v62 = vpop.f32.mrf.mxu3 }
 0x4d4   : > { %v5101_v63 = vpop.f32.mrf.mxu1 }
 0x4d5   : > { %5402 = vst [vmem:[%s8804_s29 + $0x18] sm:$0xff] %v5370_v27  ;;  %v5207_v6 = vadd.f32 %v5101_v63, %v8718_v33  ;;  %v9272_v27 = vld [vmem:[#allocation25_spill] sm:$0xff]  ;;  %v4460_v63 = vadd.f32 %v4360_v26, %v8622_v8 }
 0x4d7   : > { %v5307_v45 = vadd.f32 %v8794_v31, %v5207_v6  ;;  %5140 = vmatmul.bf16.gmra.mxu1 %v9252_v23  ;;  %v4871_v6 = vpop.f32.mrf.mxu0 }
 0x4d9   : > { %v5339_v37 = vadd.f32 %v9270_v1, %v5307_v45  ;;  %v4372_v1 = vpop.f32.mrf.mxu2 }
 0x4db   : > { %v5371_v52 = vmax.f32 %v5339_v37, 0.0 }
 0x4dc   : > { %v5103_v0 = vpop.f32.mrf.mxu1 }
 0x4dd   : > { %5403 = vst [vmem:[%s8804_s29 + $0x20] sm:$0xff] %v5371_v52  ;;  %v5208_v5 = vadd.f32 %v5103_v0, %v8727_v61  ;;  %v4711_v0 = vadd.f32 %v4611_v42, %v4460_v63 }
 0x4df   : > { %v5308_v4 = vadd.f32 %v8794_v31, %v5208_v5  ;;  %v9273_v5 = vld [vmem:[#allocation23_spill] sm:$0xff]  ;;  %v4873_v26 = vpop.f32.mrf.mxu0 }
 0x4e1   : > { %v5340_v33 = vadd.f32 %v9271_v3, %v5308_v4  ;;  %v4623_v3 = vpop.f32.mrf.mxu3 }
 0x4e3   : > { %v5372_v7 = vmax.f32 %v5340_v33, 0.0 }
 0x4e4   : > { %v5106_v46 = vpop.f32.mrf.mxu1 }
 0x4e5   : > { %5404 = vst [vmem:[%s8804_s29 + $0x28] sm:$0xff] %v5372_v7  ;;  %v5209_v23 = vadd.f32 %v5106_v46, %v8734_v21  ;;  %v4961_v7 = vadd.f32 %v4861_v48, %v4711_v0 }
 0x4e7   : > { %v5309_v34 = vadd.f32 %v8794_v31, %v5209_v23  ;;  %5145 = vmatmul.bf16.gmra.mxu1 %v9254_v50  ;;  %v4461_v50 = vadd.f32 %v4362_v41, %v8635_v32  ;;  %v4375_v23 = vpop.f32.mrf.mxu2 }
 0x4e9   : > { %v5341_v61 = vadd.f32 %v9272_v27, %v5309_v34  ;;  %v4712_v34 = vadd.f32 %v4613_v14, %v4461_v50  ;;  %v4626_v41 = vpop.f32.mrf.mxu3 }
 0x4eb   : > { %v5373_v45 = vmax.f32 %v5341_v61, 0.0  ;;  %v4462_v61 = vadd.f32 %v4365_v38, %v8641_v43  ;;  %v4962_v32 = vadd.f32 %v4863_v22, %v4712_v34 }
 0x4ec   : > { %v5108_v37 = vpop.f32.mrf.mxu1 }
 0x4ed   : > { %5405 = vst [vmem:[%s8804_s29 + $0x30] sm:$0xff] %v5373_v45  ;;  %v5210_v52 = vadd.f32 %v5108_v37, %v8743_v16  ;;  %v9274_v16 = vld [vmem:[#allocation32_spill] sm:$0xff]  ;;  %v4713_v37 = vadd.f32 %v4616_v49, %v4462_v61 }
 0x4ef   : > { %v5310_v21 = vadd.f32 %v8794_v31, %v5210_v52  ;;  %v4876_v52 = vpop.f32.mrf.mxu0  ;;  %v4377_v14 = vpop.f32.mrf.mxu2  ;;  %v4963_v50 = vadd.f32 %v4866_v24, %v4713_v37 }
 0x4f1   : > { %v5342_v4 = vadd.f32 %v9273_v5, %v5310_v21  ;;  %v9275_v21 = vld [vmem:[#allocation30_spill] sm:$0xff]  ;;  %v4628_v22 = vpop.f32.mrf.mxu3 }
 0x4f3   : > { %v5374_v33 = vmax.f32 %v5342_v4, 0.0 }
 0x4f4   : > { %v5111_v8 = vpop.f32.mrf.mxu1 }
 0x4f5   : > { %5406 = vst [vmem:[%s8804_s29 + $0x38] sm:$0xff] %v5374_v33  ;;  %v5211_v46 = vadd.f32 %v5111_v8, %v4961_v7  ;;  %v9276_v8 = vld [vmem:[#allocation38_spill] sm:$0xff] }
 0x4f7   : > { %v5311_v27 = vadd.f32 %v8794_v31, %v5211_v46  ;;  %5150 = vmatmul.bf16.gmra.mxu1 %v9256_v39  ;;  %v4463_v39 = vadd.f32 %v4367_v9, %v8651_v11  ;;  %v4878_v49 = vpop.f32.mrf.mxu0  ;;  %v4380_v34 = vpop.f32.mrf.mxu2 }
 0x4f9   : > { %v5343_v42 = vadd.f32 %v9274_v16, %v5311_v27  ;;  %v4714_v33 = vadd.f32 %v4618_v25, %v4463_v39  ;;  %v4464_v27 = vadd.f32 %v4370_v30, %v8657_v47  ;;  %v4631_v25 = vpop.f32.mrf.mxu3 }
 0x4fb   : > { %v5375_v63 = vmax.f32 %v5343_v42, 0.0  ;;  %v4964_v9 = vadd.f32 %v4868_v15, %v4714_v33  ;;  %v4715_v42 = vadd.f32 %v4621_v62, %v4464_v27  ;;  %v9278_v62 = vld [vmem:[#allocation43_spill] sm:$0xff] }
 0x4fc   : > { %v5113_v45 = vpop.f32.mrf.mxu1 }
 0x4fd   : > { %5407 = vst [vmem:[%s8804_s29 + $0x40] sm:$0xff] %v5375_v63  ;;  %v5212_v48 = vadd.f32 %v5113_v45, %v4962_v32  ;;  %v9277_v63 = vld [vmem:[#allocation36_spill] sm:$0xff]  ;;  %v4965_v37 = vadd.f32 %v4871_v6, %v4715_v42  ;;  %v4468_v42 = vadd.f32 %v4380_v34, %v8689_v19 }
 0x4ff   : > { %v5312_v0 = vadd.f32 %v8794_v31, %v5212_v48  ;;  %v4881_v45 = vpop.f32.mrf.mxu0 }
 0x501   : > { %v5344_v5 = vadd.f32 %v9275_v21, %v5312_v0  ;;  %v4382_v0 = vpop.f32.mrf.mxu2  ;;  %v4633_v39 = vpop.f32.mrf.mxu3 }
 0x503   : > { %v5376_v4 = vmax.f32 %v5344_v5, 0.0 }
 0x504   : > { %v5116_v43 = vpop.f32.mrf.mxu1 }
 0x505   : > { %5408 = vst [vmem:[%s8804_s29 + $0x48] sm:$0xff] %v5376_v4  ;;  %v5213_v38 = vadd.f32 %v5116_v43, %v4963_v50 }
 0x507   : > { %v5313_v7 = vadd.f32 %v8794_v31, %v5213_v38  ;;  %5155 = vmatmul.bf16.gmra.mxu1 %v9258_v36  ;;  %v4465_v36 = vadd.f32 %v4372_v1, %v8667_v13  ;;  %v4466_v13 = vadd.f32 %v4375_v23, %v8673_v53  ;;  %v4883_v50 = vpop.f32.mrf.mxu0 }
 0x509   : > { %v5345_v46 = vadd.f32 %v9276_v8, %v5313_v7  ;;  %v4716_v15 = vadd.f32 %v4623_v3, %v4465_v36  ;;  %v4385_v38 = vpop.f32.mrf.mxu2  ;;  %v4717_v3 = vadd.f32 %v4626_v41, %v4466_v13  ;;  %v9279_v7 = vld [vmem:[#allocation4_spill] sm:$0xff]  ;;  %v4636_v27 = vpop.f32.mrf.mxu3 }
 0x50a   : > { %v4470_v13 = vadd.f32 %v4385_v38, %v8705_v55 }
 0x50b   : > { %v5377_v11 = vmax.f32 %v5345_v46, 0.0  ;;  %v4966_v4 = vadd.f32 %v4873_v26, %v4716_v15  ;;  %v4967_v46 = vadd.f32 %v4876_v52, %v4717_v3 }
 0x50c   : > { %v5118_v16 = vpop.f32.mrf.mxu1 }
 0x50d   : > { %5409 = vst [vmem:[%s8804_s29 + $0x50] sm:$0xff] %v5377_v11  ;;  %v5214_v24 = vadd.f32 %v5118_v16, %v4964_v9  ;;  %v9280_v16 = vld [vmem:[#allocation6_spill] sm:$0xff] }
 0x50f   : > { %v5314_v61 = vadd.f32 %v8794_v31, %v5214_v24  ;;  %v4886_v11 = vpop.f32.mrf.mxu0 }
 0x511   : > { %v5346_v32 = vadd.f32 %v9277_v63, %v5314_v61  ;;  %v4387_v41 = vpop.f32.mrf.mxu2  ;;  %v4638_v63 = vpop.f32.mrf.mxu3 }
 0x513   : > { %v5378_v48 = vmax.f32 %v5346_v32, 0.0  ;;  %v4719_v32 = vadd.f32 %v4631_v25, %v4468_v42 }
 0x514   : > { %v5121_v47 = vpop.f32.mrf.mxu1 }
 0x515   : > { %5410 = vst [vmem:[%s8804_s29 + $0x58] sm:$0xff] %v5378_v48  ;;  %v5215_v30 = vadd.f32 %v5121_v47, %v4965_v37  ;;  %v9281_v48 = vld [vmem:[#allocation5_spill] sm:$0xff]  ;;  %v4969_v15 = vadd.f32 %v4881_v45, %v4719_v32  ;;  %v4721_v45 = vadd.f32 %v4636_v27, %v4470_v13 }
 0x517   : > { %v5315_v21 = vadd.f32 %v8794_v31, %v5215_v30  ;;  %6368 = vmatmul.msk.bf16.gmra.mxu1 %vm7634_vm9, %v9262_v20  ;;  %v4467_v20 = vadd.f32 %v4377_v14, %v8683_v54  ;;  %v4888_v36 = vpop.f32.mrf.mxu0 }
 0x519   : > { %v5347_v5 = vadd.f32 %v9278_v62, %v5315_v21  ;;  %v4718_v26 = vadd.f32 %v4628_v22, %v4467_v20  ;;  %v4390_v47 = vpop.f32.mrf.mxu2  ;;  %v4641_v62 = vpop.f32.mrf.mxu3 }
 0x51b   : > { %v5379_v1 = vmax.f32 %v5347_v5, 0.0  ;;  %v4968_v14 = vadd.f32 %v4878_v49, %v4718_v26  ;;  %v9282_v5 = vld [vmem:[#allocation11_spill] sm:$0xff]  ;;  %v9284_v26 = vld [vmem:[#allocation17_spill] sm:$0xff] }
 0x51c   : > { %v5123_v6 = vpop.f32.mrf.mxu1 }
 0x51d   : > { %5411 = vst [vmem:[%s8804_s29 + $0x60] sm:$0xff] %v5379_v1  ;;  %v5216_v43 = vadd.f32 %v5123_v6, %v4966_v4 }
 0x51f   : > { %v5316_v33 = vadd.f32 %v8794_v31, %v5216_v43  ;;  %v4891_v1 = vpop.f32.mrf.mxu0 }
 0x521   : > { %v5348_v8 = vadd.f32 %v9279_v7, %v5316_v33  ;;  %v4392_v43 = vpop.f32.mrf.mxu2  ;;  %v9283_v33 = vld [vmem:[#allocation9_spill] sm:$0xff]  ;;  %v4643_v7 = vpop.f32.mrf.mxu3 }
 0x522   : > { %v4473_v32 = vadd.f32 %v4392_v43, %v8731_v12 }
 0x523   : > { %v5380_v44 = vmax.f32 %v5348_v8, 0.0  ;;  %v4471_v8 = vadd.f32 %v4387_v41, %v8715_v10 }
 0x524   : > { %v5126_v53 = vpop.f32.mrf.mxu1 }
 0x525   : > { %5412 = vst [vmem:[%s8804_s29 + $0x68] sm:$0xff] %v5380_v44  ;;  %v5217_v23 = vadd.f32 %v5126_v53, %v4967_v46  ;;  %v4971_v44 = vadd.f32 %v4886_v11, %v4721_v45  ;;  %v4722_v53 = vadd.f32 %v4638_v63, %v4471_v8  ;;  %v9288_v8 = vld [vmem:[#allocation26_spill] sm:$0xff] }
 0x527   : > { %v5317_v9 = vadd.f32 %v8794_v31, %v5217_v23  ;;  %5165 = vmatmul.bf16.gmra.mxu1 %v9264_v57  ;;  %v4469_v57 = vadd.f32 %v4382_v0, %v8699_v56  ;;  %v4893_v38 = vpop.f32.mrf.mxu0 }
 0x529   : > { %v5349_v24 = vadd.f32 %v9280_v16, %v5317_v9  ;;  %v4720_v49 = vadd.f32 %v4633_v39, %v4469_v57  ;;  %v4472_v9 = vadd.f32 %v4390_v47, %v8721_v17  ;;  %v4646_v42 = vpop.f32.mrf.mxu3  ;;  %v4724_v47 = vadd.f32 %v4643_v7, %v4473_v32 }
 0x52b   : > { %v5381_v54 = vmax.f32 %v5349_v24, 0.0  ;;  %v4970_v6 = vadd.f32 %v4883_v50, %v4720_v49  ;;  %v4395_v50 = vpop.f32.mrf.mxu2  ;;  %v4972_v24 = vadd.f32 %v4888_v36, %v4722_v53  ;;  %v4723_v11 = vadd.f32 %v4641_v62, %v4472_v9  ;;  %v9289_v9 = vld [vmem:[#allocation24_spill] sm:$0xff] }
 0x52c   : > { %v5128_v61 = vpop.f32.mrf.mxu1  ;;  %v4474_v49 = vadd.f32 %v4395_v50, %v8737_v28  ;;  %v4974_v62 = vadd.f32 %v4893_v38, %v4724_v47 }
 0x52d   : > { %5413 = vst [vmem:[%s8804_s29 + $0x70] sm:$0xff] %v5381_v54  ;;  %v5218_v52 = vadd.f32 %v5128_v61, %v4968_v14 }
 0x52f   : > { %v5318_v22 = vadd.f32 %v8794_v31, %v5218_v52  ;;  %v4896_v54 = vpop.f32.mrf.mxu0  ;;  %v9285_v52 = vld [vmem:[#allocation15_spill] sm:$0xff] }
 0x531   : > { %v5350_v37 = vadd.f32 %v9281_v48, %v5318_v22  ;;  %v4973_v48 = vadd.f32 %v4891_v1, %v4723_v11  ;;  %v4648_v36 = vpop.f32.mrf.mxu3 }
 0x533   : > { %v5382_v30 = vmax.f32 %v5350_v37, 0.0  ;;  %v4397_v61 = vpop.f32.mrf.mxu2 }
 0x534   : > { %v5131_v19 = vpop.f32.mrf.mxu1  ;;  %v4475_v43 = vadd.f32 %v4397_v61, %v8747_v18 }
 0x535   : > { %5414 = vst [vmem:[%s8804_s29 + $0x78] sm:$0xff] %v5382_v30  ;;  %v5219_v34 = vadd.f32 %v5131_v19, %v4969_v15  ;;  %v9286_v15 = vld [vmem:[#allocation21_spill] sm:$0xff] }
 0x537   : > { %v5319_v21 = vadd.f32 %v8794_v31, %v5219_v34  ;;  %v4898_v30 = vpop.f32.mrf.mxu0 }
 0x539   : > { %v5351_v25 = vadd.f32 %v9282_v5, %v5319_v21  ;;  %v4651_v1 = vpop.f32.mrf.mxu3 }
 0x53b   : > { %v5383_v4 = vmax.f32 %v5351_v25, 0.0  ;;  %v4400_v34 = vpop.f32.mrf.mxu2  ;;  %v4725_v25 = vadd.f32 %v4646_v42, %v4474_v49 }
 0x53c   : > { %v5133_v56 = vpop.f32.mrf.mxu1 }
 0x53d   : > { %5415 = vst [vmem:[%s8804_s29 + $0x80] sm:$0xff] %v5383_v4  ;;  %v5220_v0 = vadd.f32 %v5133_v56, %v4970_v6  ;;  %v9287_v4 = vld [vmem:[#allocation19_spill] sm:$0xff]  ;;  %v4975_v45 = vadd.f32 %v4896_v54, %v4725_v25 }
 0x53f   : > { %v5320_v3 = vadd.f32 %v8794_v31, %v5220_v0  ;;  %v4901_v56 = vpop.f32.mrf.mxu0 }
 0x541   : > { %v5352_v39 = vadd.f32 %v9283_v33, %v5320_v3 }
 0x543   : > { %v5384_v20 = vmax.f32 %v5352_v39, 0.0  ;;  %v4402_v3 = vpop.f32.mrf.mxu2  ;;  %v4726_v39 = vadd.f32 %v4648_v36, %v4475_v43 }
 0x544   : > { %v5136_v55 = vpop.f32.mrf.mxu1 }
 0x545   : > { %5416 = vst [vmem:[%s8804_s29 + $0x88] sm:$0xff] %v5384_v20  ;;  %v5221_v46 = vadd.f32 %v5136_v55, %v4971_v44  ;;  %v4653_v44 = vpop.f32.mrf.mxu3  ;;  %v4476_v55 = vadd.f32 %v4400_v34, %v8750_v29 }
 0x547   : > { %v5321_v23 = vadd.f32 %v8794_v31, %v5221_v46  ;;  %v4976_v46 = vadd.f32 %v4898_v30, %v4726_v39  ;;  %v4903_v50 = vpop.f32.mrf.mxu0  ;;  %v9293_v39 = vld [vmem:[#allocation37_spill] sm:$0xff] }
 0x549   : > { %v5353_v27 = vadd.f32 %v9284_v26, %v5321_v23  ;;  %v4727_v26 = vadd.f32 %v4651_v1, %v4476_v55  ;;  %v9292_v1 = vld [vmem:[#allocation39_spill] sm:$0xff] }
 0x54b   : > { %v5385_v16 = vmax.f32 %v5353_v27, 0.0  ;;  %v4405_v23 = vpop.f32.mrf.mxu2 }
 0x54c   : > { %v5138_v10 = vpop.f32.mrf.mxu1 }
 0x54d   : > { %5417 = vst [vmem:[%s8804_s29 + $0x90] sm:$0xff] %v5385_v16  ;;  %v5222_v41 = vadd.f32 %v5138_v10, %v4972_v24  ;;  %v4477_v24 = vadd.f32 %v4402_v3, %v8757_v58  ;;  %v4977_v10 = vadd.f32 %v4901_v56, %v4727_v26 }
 0x54f   : > { %v5322_v14 = vadd.f32 %v8794_v31, %v5222_v41  ;;  %v4656_v41 = vpop.f32.mrf.mxu3  ;;  %v4728_v54 = vadd.f32 %v4653_v44, %v4477_v24 }
 0x551   : > { %v5354_v63 = vadd.f32 %v9285_v52, %v5322_v14  ;;  %v4906_v14 = vpop.f32.mrf.mxu0 }
 0x553   : > { %v5386_v22 = vmax.f32 %v5354_v63, 0.0  ;;  %v4407_v52 = vpop.f32.mrf.mxu2  ;;  %v9290_v63 = vld [vmem:[#allocation33_spill] sm:$0xff] }
 0x554   : > { %v5141_v17 = vpop.f32.mrf.mxu1  ;;  %v4479_v49 = vadd.f32 %v4407_v52, %v8767_v2 }
 0x555   : > { %5418 = vst [vmem:[%s8804_s29 + $0x98] sm:$0xff] %v5386_v22  ;;  %v5223_v37 = vadd.f32 %v5141_v17, %v4973_v48  ;;  %v4478_v22 = vadd.f32 %v4405_v23, %v8760_v59  ;;  %v4978_v17 = vadd.f32 %v4903_v50, %v4728_v54  ;;  %v9294_v23 = vld [vmem:[#allocation44_spill] sm:$0xff]  ;;  %v9295_v54 = vld [vmem:[#allocation42_spill] sm:$0xff] }
 0x557   : > { %v5323_v57 = vadd.f32 %v8794_v31, %v5223_v37  ;;  %v4658_v36 = vpop.f32.mrf.mxu3  ;;  %v4729_v47 = vadd.f32 %v4656_v41, %v4478_v22 }
 0x559   : > { %v5355_v19 = vadd.f32 %v9286_v15, %v5323_v57  ;;  %v4908_v30 = vpop.f32.mrf.mxu0  ;;  %v9291_v15 = vld [vmem:[#allocation31_spill] sm:$0xff] }
 0x55b   : > { %v5387_v21 = vmax.f32 %v5355_v19, 0.0  ;;  %v4410_v34 = vpop.f32.mrf.mxu2 }
 0x55c   : > { %v5143_v12 = vpop.f32.mrf.mxu1  ;;  %v4480_v43 = vadd.f32 %v4410_v34, %v8770_v51 }
 0x55d   : > { %5419 = vst [vmem:[%s8804_s29 + $0xa0] sm:$0xff] %v5387_v21  ;;  %v5224_v5 = vadd.f32 %v5143_v12, %v4974_v62  ;;  %v4979_v62 = vadd.f32 %v4906_v14, %v4729_v47 }
 0x55f   : > { %v5324_v13 = vadd.f32 %v8794_v31, %v5224_v5  ;;  %v4730_v5 = vadd.f32 %v4658_v36, %v4479_v49 }
 0x561   : > { %v5356_v6 = vadd.f32 %v9287_v4, %v5324_v13  ;;  %v4661_v13 = vpop.f32.mrf.mxu3 }
 0x563   : > { %v5388_v0 = vmax.f32 %v5356_v6, 0.0  ;;  %v4911_v6 = vpop.f32.mrf.mxu0 }
 0x564   : > { %v5146_v28 = vpop.f32.mrf.mxu1 }
 0x565   : > { %5420 = vst [vmem:[%s8804_s29 + $0xa8] sm:$0xff] %v5388_v0  ;;  %v5225_v33 = vadd.f32 %v5146_v28, %v4975_v45  ;;  %v4980_v0 = vadd.f32 %v4908_v30, %v4730_v5  ;;  %v4412_v45 = vpop.f32.mrf.mxu2  ;;  %v4731_v28 = vadd.f32 %v4661_v13, %v4480_v43 }
 0x567   : > { %v5325_v7 = vadd.f32 %v8794_v31, %v5225_v33  ;;  %v4981_v55 = vadd.f32 %v4911_v6, %v4731_v28 }
 0x569   : > { %v5357_v20 = vadd.f32 %v9288_v8, %v5325_v7  ;;  %v4663_v8 = vpop.f32.mrf.mxu3 }
 0x56b   : > { %v5389_v38 = vmax.f32 %v5357_v20, 0.0  ;;  %v4481_v20 = vadd.f32 %v4412_v45, %v8782_v40 }
 0x56c   : > { %v5148_v18 = vpop.f32.mrf.mxu1 }
 0x56d   : > { %5421 = vst [vmem:[%s8804_s29 + $0xb0] sm:$0xff] %v5389_v38  ;;  %v5226_v53 = vadd.f32 %v5148_v18, %v4976_v46  ;;  %v4913_v46 = vpop.f32.mrf.mxu0  ;;  %v4415_v18 = vpop.f32.mrf.mxu2  ;;  %v4732_v50 = vadd.f32 %v4663_v8, %v4481_v20 }
 0x56f   : > { %v5326_v27 = vadd.f32 %v8794_v31, %v5226_v53 }
 0x571   : > { %v5358_v16 = vadd.f32 %v9289_v9, %v5326_v27  ;;  %v4482_v27 = vadd.f32 %v4415_v18, %v8785_v60  ;;  %v4666_v24 = vpop.f32.mrf.mxu3 }
 0x573   : > { %v5390_v42 = vmax.f32 %v5358_v16, 0.0  ;;  %v4982_v16 = vadd.f32 %v4913_v46, %v4732_v50  ;;  %v4733_v41 = vadd.f32 %v4666_v24, %v4482_v27 }
 0x574   : > { %v5151_v29 = vpop.f32.mrf.mxu1 }
 0x575   : > { %5422 = vst [vmem:[%s8804_s29 + $0xb8] sm:$0xff] %v5390_v42  ;;  %v5227_v11 = vadd.f32 %v5151_v29, %v4977_v10  ;;  %v4916_v10 = vpop.f32.mrf.mxu0 }
 0x577   : > { %v5327_v61 = vadd.f32 %v8794_v31, %v5227_v11  ;;  %v4417_v11 = vpop.f32.mrf.mxu2 }
 0x578   : > { %v4483_v52 = vadd.f32 %v4417_v11, %v8789_v35  ;;  %v9297_v35 = vld [vmem:[#allocation58_spill] sm:$0xff] }
 0x579   : > { %v5359_v32 = vadd.f32 %v9290_v63, %v5327_v61  ;;  %v4983_v61 = vadd.f32 %v4916_v10, %v4733_v41  ;;  %v4668_v22 = vpop.f32.mrf.mxu3 }
 0x57b   : > { %v5391_v48 = vmax.f32 %v5359_v32, 0.0 }
 0x57c   : > { %v5153_v58 = vpop.f32.mrf.mxu1 }
 0x57d   : > { %5423 = vst [vmem:[%s8804_s29 + $0xc0] sm:$0xff] %v5391_v48  ;;  %v5228_v37 = vadd.f32 %v5153_v58, %v4978_v17  ;;  %v4734_v48 = vadd.f32 %v4668_v22, %v4483_v52  ;;  %v4918_v58 = vpop.f32.mrf.mxu0 }
 0x57f   : > { %v5328_v57 = vadd.f32 %v8794_v31, %v5228_v37  ;;  %v9296_v37 = vld [vmem:[#allocation56_spill] sm:$0xff]  ;;  %v4984_v47 = vadd.f32 %v4918_v58, %v4734_v48 }
 0x581   : > { %v5360_v19 = vadd.f32 %v9291_v15, %v5328_v57 }
 0x583   : > { %v5392_v21 = vmax.f32 %v5360_v19, 0.0 }
 0x584   : > { %v5156_v59 = vpop.f32.mrf.mxu1 }
 0x585   : > { %5424 = vst [vmem:[%s8804_s29 + $0xc8] sm:$0xff] %v5392_v21  ;;  %v5229_v12 = vadd.f32 %v5156_v59, %v4979_v62 }
 0x587   : > { %v5329_v25 = vadd.f32 %v8794_v31, %v5229_v12 }
 0x589   : > { %v5361_v4 = vadd.f32 %v9292_v1, %v5329_v25 }
 0x58b   : > { %v5393_v56 = vmax.f32 %v5361_v4, 0.0 }
 0x58c   : > { %v5158_v2 = vpop.f32.mrf.mxu1 }
 0x58d   : > { %5425 = vst [vmem:[%s8804_s29 + $0xd0] sm:$0xff] %v5393_v56  ;;  %v5230_v3 = vadd.f32 %v5158_v2, %v4980_v0 }
 0x58f   : > { %v5330_v33 = vadd.f32 %v8794_v31, %v5230_v3 }
 0x591   : > { %v5362_v7 = vadd.f32 %v9293_v39, %v5330_v33 }
 0x593   : > { %v5394_v44 = vmax.f32 %v5362_v7, 0.0 }
 0x594   : > { %v5161_v38 = vpop.f32.mrf.mxu1 }
 0x595   : > { %5426 = vst [vmem:[%s8804_s29 + $0xd8] sm:$0xff] %v5394_v44  ;;  %v5231_v51 = vadd.f32 %v5161_v38, %v4981_v55 }
 0x597   : > { %v5331_v53 = vadd.f32 %v8794_v31, %v5231_v51 }
 0x599   : > { %v5363_v26 = vadd.f32 %v9294_v23, %v5331_v53 }
 0x59b   : > { %v5395_v9 = vmax.f32 %v5363_v26, 0.0 }
 0x59c   : > { %v5163_v40 = vpop.f32.mrf.mxu1 }
 0x59d   : > { %5427 = vst [vmem:[%s8804_s29 + $0xe0] sm:$0xff] %v5395_v9  ;;  %v5232_v42 = vadd.f32 %v5163_v40, %v4982_v16 }
 0x59f   : > { %v5332_v29 = vadd.f32 %v8794_v31, %v5232_v42 }
 0x5a1   : > { %v5364_v14 = vadd.f32 %v9295_v54, %v5332_v29 }
 0x5a3   : > { %v5396_v63 = vmax.f32 %v5364_v14, 0.0 }
 0x5a4   : > { %v5166_v60 = vpop.f32.mrf.mxu1 }
 0x5a5   : > { %5428 = vst [vmem:[%s8804_s29 + $0xe8] sm:$0xff] %v5396_v63  ;;  %v5233_v32 = vadd.f32 %v5166_v60, %v4983_v61 }
 0x5a7   : > { %v5333_v17 = vadd.f32 %v8794_v31, %v5233_v32 }
 0x5a9   : > { %v5365_v36 = vadd.f32 %v9296_v37, %v5333_v17 }
 0x5ab   : > { %v5397_v57 = vmax.f32 %v5365_v36, 0.0 }
 0x5ac   : > { %v5168_v30 = vpop.f32.mrf.mxu1 }
 0x5ad   : > { %5429 = vst [vmem:[%s8804_s29 + $0xf0] sm:$0xff] %v5397_v57  ;;  %v5234_v15 = vadd.f32 %v5168_v30, %v4984_v47 }
 0x5af   : > { %v5334_v19 = vadd.f32 %v8794_v31, %v5234_v15 }
 0x5b1   : > { %v5366_v34 = vadd.f32 %v9297_v35, %v5334_v19 }
 0x5b3   : > { %v5398_v49 = vmax.f32 %v5366_v34, 0.0 }
 0x5b5   : > { %5430 = vst [vmem:[%s8804_s29 + $0xf8] sm:$0xff] %v5398_v49 }
 0x5b6 PF: > { %s15_s18 = sadd.s32 1, %s6646_s18  }
 0x5b7   : > { %p12_p4 = scmp.ge.s32.totalorder %s15_s18, 4  }
 0x5b9   :  { %14 = sbr.rel (!%p12_p4) target bundleno = 1 (0x1), region = 86 }

</bundles_post_ra>
